<compile_context>
chip_gen: v5e
topology: v5e:2x2
jax: 0.10.0
libtpu: 0.0.40
codegen_flags: <defaults>
</compile_context>

<pallas_src>
import functools

import jax
import jax.numpy as jnp
from jax.experimental import pallas as pl
from jax.experimental.pallas import tpu as pltpu

K = 9           # transform size (k x k output matrix)
N_POINTS = 16   # points per cloud
BATCH = 2
BN_EPS = 1e-5


def _round_up(x, m):
    return ((x + m - 1) // m) * m


OUT_PAD = _round_up(K * K, 128)   # lane-dense fc3 output width (81 -> 128)


# ---------------------------------------------------------------------------
# Pallas kernel: grid over point-chunks, running-max accumulator, FC at end.
# ---------------------------------------------------------------------------
def tnet_kernel(x_ref,                        # (B, tile_n, k)        f32 VMEM block
                w1_ref, b1_ref,               # (k, 64)  bf16, (1, 64)    f32
                w2_ref, b2_ref,               # (64, 128),     (1, 128)
                w3_ref, b3_ref,               # (128, 1024),   (1, 1024)
                wf1_hbm, bf1_ref,             # (1024, 512) bf16 HBM, (1, 512) f32
                wf2_hbm, bf2_ref,             # (512, 256)  bf16 HBM, (1, 256) f32
                wf3_ref, bf3_ref,             # (256, 128) bf16, (1, 128) f32 (eye folded, zero-padded)
                out_ref,                      # (B, 128) f32  (lane-dense)
                gmax_ref,                     # (B, 1024) f32 VMEM scratch (running max)
                wf1_vmem, wf2_vmem,           # VMEM scratch landing buffers for FC weights
                dma_sems,                     # DMA semaphores (2,)
                *, batch, tile_n, k):
    step = pl.program_id(0)
    nsteps = pl.num_programs(0)

    def mm_bias(a_f32, w, b):
        # Cast activations to bf16 only at the MXU input; accumulate in f32;
        # bias add / relu / max stay f32 (VPU path on all generations).
        return jnp.dot(a_f32.astype(w.dtype), w,
                       preferred_element_type=jnp.float32) + b

    @pl.when(step == 0)
    def _():
        # Start the big FC weight fetches now; they complete while the conv
        # stack is running on the MXU (waited on just before fc1/fc2).
        pltpu.make_async_copy(wf1_hbm, wf1_vmem, dma_sems.at[0]).start()
        pltpu.make_async_copy(wf2_hbm, wf2_vmem, dma_sems.at[1]).start()
        gmax_ref[...] = jnp.full_like(gmax_ref, -jnp.inf)

    # ---- conv1/bn1/relu -> conv2/bn2/relu -> conv3/bn3/relu on this chunk ----
    # conv1d(kernel_size=1) == per-point matmul at M = B * tile_n.
    x = x_ref[...].reshape(batch * tile_n, k)                        # (B*tile_n, k)
    h = jnp.maximum(mm_bias(x, w1_ref[...], b1_ref[...]), 0.0)       # (B*tile_n, 64)
    h = jnp.maximum(mm_bias(h, w2_ref[...], b2_ref[...]), 0.0)       # (B*tile_n, 128)
    h = jnp.maximum(mm_bias(h, w3_ref[...], b3_ref[...]), 0.0)       # (B*tile_n, 1024)

    # Running global max pool over points (torch.max(x, 2)[0]) — the full
    # (B*N, 1024) activation is never materialized.
    chunk_max = jnp.max(h.reshape(batch, tile_n, h.shape[-1]), axis=1)   # (B, 1024)
    gmax_ref[...] = jnp.maximum(gmax_ref[...], chunk_max)

    @pl.when(step == nsteps - 1)
    def _():
        # FC weights must have landed by now; overlap ends here.
        pltpu.make_async_copy(wf1_hbm, wf1_vmem, dma_sems.at[0]).wait()
        pltpu.make_async_copy(wf2_hbm, wf2_vmem, dma_sems.at[1]).wait()

        g = gmax_ref[...]                                            # (B, 1024)
        f = jnp.maximum(mm_bias(g, wf1_vmem[...], bf1_ref[...]), 0.0)   # (B, 512)
        f = jnp.maximum(mm_bias(f, wf2_vmem[...], bf2_ref[...]), 0.0)   # (B, 256)
        # fc3 + identity (eye folded into bf3); padded to 128 lanes so the
        # store is a single unmasked lane-dense write.
        out_ref[...] = mm_bias(f, wf3_ref[...], bf3_ref[...])        # (B, 128)


# ---------------------------------------------------------------------------
# Wrapper: point-tiled pallas_call, weights resident in VMEM once.
# ---------------------------------------------------------------------------
def _choose_point_tile(n, target=512):
    """Largest divisor of n that is <= target and multiple of 8 (or n itself)."""
    if n <= target:
        return n
    for t in range(target, 0, -1):
        if n % t == 0 and (t % 8 == 0 or t == n):
            return t
    return n


def _resident_spec(arr):
    nd = arr.ndim
    return pl.BlockSpec(arr.shape, lambda i, _nd=nd: (0,) * _nd)


def tnet_forward(x_bnk, params):
    """x_bnk: (B, N, k) float32 channels-last.  params: 12 folded bf16 weight / f32 bias arrays."""
    B, N, k = x_bnk.shape
    (w1, b1, w2, b2, w3, b3, wf1, bf1, wf2, bf2, wf3, bf3) = params
    out_cols = wf3.shape[1]                      # 128 (lane-dense padded)

    tile_n = _choose_point_tile(N)
    n_chunks = N // tile_n

    flops = 2 * (B * N * (k * 64 + 64 * 128 + 128 * 1024)
                 + B * (1024 * 512 + 512 * 256 + 256 * out_cols))
    bytes_accessed = (x_bnk.size * x_bnk.dtype.itemsize
                      + sum(int(p.size) * p.dtype.itemsize for p in params)
                      + B * out_cols * 4)

    in_specs = [
        pl.BlockSpec((B, tile_n, k), lambda i: (0, i, 0)),   # x point-chunks
        _resident_spec(w1), _resident_spec(b1),
        _resident_spec(w2), _resident_spec(b2),
        _resident_spec(w3), _resident_spec(b3),
        pl.BlockSpec(memory_space=pl.ANY), _resident_spec(bf1),   # wf1 stays in HBM
        pl.BlockSpec(memory_space=pl.ANY), _resident_spec(bf2),   # wf2 stays in HBM
        _resident_spec(wf3), _resident_spec(bf3),
    ]

    out_padded = pl.pallas_call(
        functools.partial(tnet_kernel, batch=B, tile_n=tile_n, k=k),
        out_shape=jax.ShapeDtypeStruct((B, out_cols), jnp.float32),
        grid_spec=pltpu.PrefetchScalarGridSpec(
            num_scalar_prefetch=0,
            grid=(n_chunks,),
            in_specs=in_specs,
            out_specs=pl.BlockSpec((B, out_cols), lambda i: (0, 0)),
            scratch_shapes=[
                pltpu.VMEM((B, 1024), jnp.float32),        # running max accumulator
                pltpu.VMEM(wf1.shape, wf1.dtype),          # fc1 weight landing buffer
                pltpu.VMEM(wf2.shape, wf2.dtype),          # fc2 weight landing buffer
                pltpu.SemaphoreType.DMA((2,)),
            ]),
        compiler_params=pltpu.CompilerParams(
            dimension_semantics=("arbitrary",),            # reduction over point-chunks
            vmem_limit_bytes=32 * 1024 * 1024),
        cost_estimate=pl.CostEstimate(flops=flops,
                                      transcendentals=0,
                                      bytes_accessed=bytes_accessed),
    )(x_bnk, *params)

    return out_padded[:, :k * k].reshape(B, k, k)


# ---------------------------------------------------------------------------
# Deterministic parameter construction + BN folding (plain-JAX glue).
# Weights -> bf16 (MXU/DMA format); biases stay f32.
# ---------------------------------------------------------------------------
def make_params(key, k=K):
    dims = [(k, 64), (64, 128), (128, 1024), (1024, 512), (512, 256), (256, k * k)]
    has_bn = [True, True, True, True, True, False]
    params = []
    for (cin, cout), bn in zip(dims, has_bn):
        key, kw, kb, kg, kbe, km, kv = jax.random.split(key, 7)
        W = jax.random.normal(kw, (cin, cout), jnp.float32) * (1.0 / jnp.sqrt(cin))
        b = jax.random.normal(kb, (cout,), jnp.float32) * 0.05
        if bn:
            gamma = jax.random.uniform(kg, (cout,), jnp.float32, 0.5, 1.5)
            beta = jax.random.normal(kbe, (cout,), jnp.float32) * 0.1
            r_mean = jax.random.normal(km, (cout,), jnp.float32) * 0.1
            r_var = jax.random.uniform(kv, (cout,), jnp.float32, 0.5, 1.5)
            scale = gamma / jnp.sqrt(r_var + BN_EPS)
            W = W * scale[None, :]
            b = (b - r_mean) * scale + beta
        params.append([W, b])

    # Fold the identity-matrix init into the fc3 bias (same for every batch).
    params[-1][1] = params[-1][1] + jnp.eye(k, dtype=jnp.float32).reshape(k * k)

    # Lane-dense pad of fc3 to 128 output columns; padded columns are exactly
    # zero and are sliced off by the wrapper before the (k, k) reshape.
    W3, b3 = params[-1]
    pad = OUT_PAD - k * k
    params[-1] = [jnp.pad(W3, ((0, 0), (0, pad))), jnp.pad(b3, ((0, pad),))]

    flat = []
    for W, b in params:
        flat.append(W.astype(jnp.bfloat16))        # weights: bf16 MXU/DMA format
        flat.append(b.reshape(1, -1).astype(jnp.float32))   # biases: f32
    return flat


# ---------------------------------------------------------------------------
# Pure-JAX reference mimicking the kernel arithmetic (bf16 MXU inputs,
# f32 accumulation) for a tight sanity check.
# ---------------------------------------------------------------------------
def tnet_reference(x_bnk, params):
    (w1, b1, w2, b2, w3, b3, wf1, bf1, wf2, bf2, wf3, bf3) = params

    def mm_bias(a, w, b):
        return jnp.dot(a.astype(w.dtype), w,
                       preferred_element_type=jnp.float32) + b

    h = jax.nn.relu(mm_bias(x_bnk, w1, b1))
    h = jax.nn.relu(mm_bias(h, w2, b2))
    h = jax.nn.relu(mm_bias(h, w3, b3))
    g = jnp.max(h, axis=1)                      # (B, 1024)
    f = jax.nn.relu(mm_bias(g, wf1, bf1))
    f = jax.nn.relu(mm_bias(f, wf2, bf2))
    o = mm_bias(f, wf3, bf3)                    # (B, 128)
    return o[:, :K * K].reshape(x_bnk.shape[0], K, K)


if __name__ == "__main__":
    key = jax.random.PRNGKey(0)
    key_x, key_p = jax.random.split(key)

    # PyTorch-style input: (B, k, N_points)  (NCL)
    x_torch_layout = jax.random.normal(key_x, (BATCH, K, N_POINTS), jnp.float32)
    # Kernel contract is channels-last; one transpose here (noise at N=16;
    # at production sizes feed channels-last end-to-end to avoid this pass).
    x_bnk = jnp.transpose(x_torch_layout, (0, 2, 1))   # (B, N, k)

    params = make_params(key_p)

    out = tnet_forward(x_bnk, params)
    out = jax.block_until_ready(out)

    ref = tnet_reference(x_bnk, params)
    assert out.shape == (BATCH, K, K)
    assert jnp.allclose(out, ref, atol=2e-3, rtol=2e-3), "kernel/reference mismatch"

    print("KERNEL_OK")
</pallas_src>

<mosaic_0001>
module attributes {stable_mosaic.version = 11 : i64} {
  func.func @tnet_kernel(%arg0: i32, %arg1: memref<2x16x9xf32, #tpu.memory_space<vmem>>, %arg2: memref<9x64xbf16, #tpu.memory_space<vmem>>, %arg3: memref<1x64xf32, #tpu.memory_space<vmem>>, %arg4: memref<64x128xbf16, #tpu.memory_space<vmem>>, %arg5: memref<1x128xf32, #tpu.memory_space<vmem>>, %arg6: memref<128x1024xbf16, #tpu.memory_space<vmem>>, %arg7: memref<1x1024xf32, #tpu.memory_space<vmem>>, %arg8: memref<1024x512xbf16, #tpu.memory_space<any>>, %arg9: memref<1x512xf32, #tpu.memory_space<vmem>>, %arg10: memref<512x256xbf16, #tpu.memory_space<any>>, %arg11: memref<1x256xf32, #tpu.memory_space<vmem>>, %arg12: memref<256x128xbf16, #tpu.memory_space<vmem>>, %arg13: memref<1x128xf32, #tpu.memory_space<vmem>>, %arg14: memref<2x128xf32, #tpu.memory_space<vmem>>, %arg15: memref<2x1024xf32, #tpu.memory_space<vmem>>, %arg16: memref<1024x512xbf16, #tpu.memory_space<vmem>>, %arg17: memref<512x256xbf16, #tpu.memory_space<vmem>>, %arg18: memref<2x!tpu.dma_semaphore, #tpu.memory_space<semaphore_mem>>) attributes {dimension_semantics = [#tpu.dimension_semantics<arbitrary>], iteration_bounds = array<i64: 1>, scalar_prefetch = 0 : i64, scratch_operands = 4 : i64, tpu.core_type = #tpu.core_type<tc>, window_params = [{transform_indices = @transform_0, window_bounds = array<i64: 2, 16, 9>}, {pipeline_mode = #tpu.pipeline_mode<synchronous>, transform_indices = @transform_1, window_bounds = array<i64: 9, 64>}, {pipeline_mode = #tpu.pipeline_mode<synchronous>, transform_indices = @transform_2, window_bounds = array<i64: 1, 64>}, {pipeline_mode = #tpu.pipeline_mode<synchronous>, transform_indices = @transform_3, window_bounds = array<i64: 64, 128>}, {pipeline_mode = #tpu.pipeline_mode<synchronous>, transform_indices = @transform_4, window_bounds = array<i64: 1, 128>}, {pipeline_mode = #tpu.pipeline_mode<synchronous>, transform_indices = @transform_5, window_bounds = array<i64: 128, 1024>}, {pipeline_mode = #tpu.pipeline_mode<synchronous>, transform_indices = @transform_6, window_bounds = array<i64: 1, 1024>}, {}, {pipeline_mode = #tpu.pipeline_mode<synchronous>, transform_indices = @transform_8, window_bounds = array<i64: 1, 512>}, {}, {pipeline_mode = #tpu.pipeline_mode<synchronous>, transform_indices = @transform_10, window_bounds = array<i64: 1, 256>}, {pipeline_mode = #tpu.pipeline_mode<synchronous>, transform_indices = @transform_11, window_bounds = array<i64: 256, 128>}, {pipeline_mode = #tpu.pipeline_mode<synchronous>, transform_indices = @transform_12, window_bounds = array<i64: 1, 128>}, {pipeline_mode = #tpu.pipeline_mode<synchronous>, transform_indices = @transform_13, window_bounds = array<i64: 2, 128>}]} {
    %c0_i32 = arith.constant 0 : i32
    %0 = arith.cmpi eq, %arg0, %c0_i32 : i32
    %1 = arith.extui %0 : i1 to i32
    %c0_i32_0 = arith.constant 0 : i32
    %2 = arith.cmpi ne, %1, %c0_i32_0 : i32
    scf.if %2 {
      %c0_i32_27 = arith.constant 0 : i32
      %37 = tpu.memref_slice %arg18[%c0_i32_27] : memref<2x!tpu.dma_semaphore, #tpu.memory_space<semaphore_mem>> -> memref<1x!tpu.dma_semaphore, #tpu.memory_space<semaphore_mem>>
      %38 = tpu.memref_squeeze %37 : memref<1x!tpu.dma_semaphore, #tpu.memory_space<semaphore_mem>> -> memref<!tpu.dma_semaphore, #tpu.memory_space<semaphore_mem>>
      tpu.enqueue_dma source(%arg8 : memref<1024x512xbf16, #tpu.memory_space<any>>) target(%arg16 : memref<1024x512xbf16, #tpu.memory_space<vmem>>) target_semaphore(%38 : memref<!tpu.dma_semaphore, #tpu.memory_space<semaphore_mem>>)
      %c1_i32 = arith.constant 1 : i32
      %39 = tpu.memref_slice %arg18[%c1_i32] : memref<2x!tpu.dma_semaphore, #tpu.memory_space<semaphore_mem>> -> memref<1x!tpu.dma_semaphore, #tpu.memory_space<semaphore_mem>>
      %40 = tpu.memref_squeeze %39 : memref<1x!tpu.dma_semaphore, #tpu.memory_space<semaphore_mem>> -> memref<!tpu.dma_semaphore, #tpu.memory_space<semaphore_mem>>
      tpu.enqueue_dma source(%arg10 : memref<512x256xbf16, #tpu.memory_space<any>>) target(%arg17 : memref<512x256xbf16, #tpu.memory_space<vmem>>) target_semaphore(%40 : memref<!tpu.dma_semaphore, #tpu.memory_space<semaphore_mem>>)
      %cst_28 = arith.constant 0xFF800000 : f32
      %41 = vector.broadcast %cst_28 : f32 to vector<2x1024xf32>
      %c0_29 = arith.constant 0 : index
      %c0_30 = arith.constant 0 : index
      %42 = vector.load %arg15[%c0_29, %c0_30] : memref<2x1024xf32, #tpu.memory_space<vmem>>, vector<2x1024xf32>
      tpu.vector_store %arg15[%c0_29, %c0_30], %41 {strides = array<i32>} : memref<2x1024xf32, #tpu.memory_space<vmem>>, vector<2x1024xf32>,
    } else {
    }
    %c0 = arith.constant 0 : index
    %c0_1 = arith.constant 0 : index
    %c0_2 = arith.constant 0 : index
    %3 = vector.load %arg1[%c0, %c0_1, %c0_2] : memref<2x16x9xf32, #tpu.memory_space<vmem>>, vector<2x16x9xf32>
    %4 = vector.shape_cast %3 : vector<2x16x9xf32> to vector<32x9xf32>
    %c0_3 = arith.constant 0 : index
    %c0_4 = arith.constant 0 : index
    %5 = vector.load %arg2[%c0_3, %c0_4] : memref<9x64xbf16, #tpu.memory_space<vmem>>, vector<9x64xbf16>
    %c0_5 = arith.constant 0 : index
    %c0_6 = arith.constant 0 : index
    %6 = vector.load %arg3[%c0_5, %c0_6] : memref<1x64xf32, #tpu.memory_space<vmem>>, vector<1x64xf32>
    %7 = arith.truncf %4 : vector<32x9xf32> to vector<32x9xbf16>
    %cst = arith.constant dense<0.000000e+00> : vector<32x64xf32>
    %8 = tpu.matmul %7, %5, %cst {dimension_numbers = #tpu.dot_dimension_numbers<[1], [0], [0], [1], [0, 0, 1, 1], [], []>} : vector<32x9xbf16>, vector<9x64xbf16>, vector<32x64xf32> -> vector<32x64xf32>
    %9 = vector.broadcast %6 : vector<1x64xf32> to vector<32x64xf32>
    %10 = arith.addf %8, %9 : vector<32x64xf32>
    %cst_7 = arith.constant 0.000000e+00 : f32
    %11 = vector.broadcast %cst_7 : f32 to vector<32x64xf32>
    %12 = arith.maximumf %10, %11 : vector<32x64xf32>
    %c0_8 = arith.constant 0 : index
    %c0_9 = arith.constant 0 : index
    %13 = vector.load %arg4[%c0_8, %c0_9] : memref<64x128xbf16, #tpu.memory_space<vmem>>, vector<64x128xbf16>
    %c0_10 = arith.constant 0 : index
    %c0_11 = arith.constant 0 : index
    %14 = vector.load %arg5[%c0_10, %c0_11] : memref<1x128xf32, #tpu.memory_space<vmem>>, vector<1x128xf32>
    %15 = arith.truncf %12 : vector<32x64xf32> to vector<32x64xbf16>
    %cst_12 = arith.constant dense<0.000000e+00> : vector<32x128xf32>
    %16 = tpu.matmul %15, %13, %cst_12 {dimension_numbers = #tpu.dot_dimension_numbers<[1], [0], [0], [1], [0, 0, 1, 1], [], []>} : vector<32x64xbf16>, vector<64x128xbf16>, vector<32x128xf32> -> vector<32x128xf32>
    %17 = vector.broadcast %14 : vector<1x128xf32> to vector<32x128xf32>
    %18 = arith.addf %16, %17 : vector<32x128xf32>
    %cst_13 = arith.constant 0.000000e+00 : f32
    %19 = vector.broadcast %cst_13 : f32 to vector<32x128xf32>
    %20 = arith.maximumf %18, %19 : vector<32x128xf32>
    %c0_14 = arith.constant 0 : index
    %c0_15 = arith.constant 0 : index
    %21 = vector.load %arg6[%c0_14, %c0_15] : memref<128x1024xbf16, #tpu.memory_space<vmem>>, vector<128x1024xbf16>
    %c0_16 = arith.constant 0 : index
    %c0_17 = arith.constant 0 : index
    %22 = vector.load %arg7[%c0_16, %c0_17] : memref<1x1024xf32, #tpu.memory_space<vmem>>, vector<1x1024xf32>
    %23 = arith.truncf %20 : vector<32x128xf32> to vector<32x128xbf16>
    %cst_18 = arith.constant dense<0.000000e+00> : vector<32x1024xf32>
    %24 = tpu.matmul %23, %21, %cst_18 {dimension_numbers = #tpu.dot_dimension_numbers<[1], [0], [0], [1], [0, 0, 1, 1], [], []>} : vector<32x128xbf16>, vector<128x1024xbf16>, vector<32x1024xf32> -> vector<32x1024xf32>
    %25 = vector.broadcast %22 : vector<1x1024xf32> to vector<32x1024xf32>
    %26 = arith.addf %24, %25 : vector<32x1024xf32>
    %cst_19 = arith.constant 0.000000e+00 : f32
    %27 = vector.broadcast %cst_19 : f32 to vector<32x1024xf32>
    %28 = arith.maximumf %26, %27 : vector<32x1024xf32>
    %29 = vector.shape_cast %28 : vector<32x1024xf32> to vector<2x16x1024xf32>
    %cst_20 = arith.constant dense<0xFF800000> : vector<2x1024xf32>
    %30 = vector.multi_reduction <maximumf>, %29, %cst_20 [1] : vector<2x16x1024xf32> to vector<2x1024xf32>
    %c0_21 = arith.constant 0 : index
    %c0_22 = arith.constant 0 : index
    %31 = vector.load %arg15[%c0_21, %c0_22] : memref<2x1024xf32, #tpu.memory_space<vmem>>, vector<2x1024xf32>
    %32 = arith.maximumf %31, %30 : vector<2x1024xf32>
    %c0_23 = arith.constant 0 : index
    %c0_24 = arith.constant 0 : index
    %33 = vector.load %arg15[%c0_23, %c0_24] : memref<2x1024xf32, #tpu.memory_space<vmem>>, vector<2x1024xf32>
    tpu.vector_store %arg15[%c0_23, %c0_24], %32 {strides = array<i32>} : memref<2x1024xf32, #tpu.memory_space<vmem>>, vector<2x1024xf32>,
    %c0_i32_25 = arith.constant 0 : i32
    %34 = arith.cmpi eq, %arg0, %c0_i32_25 : i32
    %35 = arith.extui %34 : i1 to i32
    %c0_i32_26 = arith.constant 0 : i32
    %36 = arith.cmpi ne, %35, %c0_i32_26 : i32
    scf.if %36 {
      %c0_i32_27 = arith.constant 0 : i32
      %37 = tpu.memref_slice %arg18[%c0_i32_27] : memref<2x!tpu.dma_semaphore, #tpu.memory_space<semaphore_mem>> -> memref<1x!tpu.dma_semaphore, #tpu.memory_space<semaphore_mem>>
      %38 = tpu.memref_squeeze %37 : memref<1x!tpu.dma_semaphore, #tpu.memory_space<semaphore_mem>> -> memref<!tpu.dma_semaphore, #tpu.memory_space<semaphore_mem>>
      tpu.wait_dma2 semaphore(%38 : memref<!tpu.dma_semaphore, #tpu.memory_space<semaphore_mem>>) src(%arg8 : memref<1024x512xbf16, #tpu.memory_space<any>>) dst(%arg16 : memref<1024x512xbf16, #tpu.memory_space<vmem>>)
      %c1_i32 = arith.constant 1 : i32
      %39 = tpu.memref_slice %arg18[%c1_i32] : memref<2x!tpu.dma_semaphore, #tpu.memory_space<semaphore_mem>> -> memref<1x!tpu.dma_semaphore, #tpu.memory_space<semaphore_mem>>
      %40 = tpu.memref_squeeze %39 : memref<1x!tpu.dma_semaphore, #tpu.memory_space<semaphore_mem>> -> memref<!tpu.dma_semaphore, #tpu.memory_space<semaphore_mem>>
      tpu.wait_dma2 semaphore(%40 : memref<!tpu.dma_semaphore, #tpu.memory_space<semaphore_mem>>) src(%arg10 : memref<512x256xbf16, #tpu.memory_space<any>>) dst(%arg17 : memref<512x256xbf16, #tpu.memory_space<vmem>>)
      %c0_28 = arith.constant 0 : index
      %c0_29 = arith.constant 0 : index
      %41 = vector.load %arg15[%c0_28, %c0_29] : memref<2x1024xf32, #tpu.memory_space<vmem>>, vector<2x1024xf32>
      %c0_30 = arith.constant 0 : index
      %c0_31 = arith.constant 0 : index
      %42 = vector.load %arg16[%c0_30, %c0_31] : memref<1024x512xbf16, #tpu.memory_space<vmem>>, vector<1024x512xbf16>
      %c0_32 = arith.constant 0 : index
      %c0_33 = arith.constant 0 : index
      %43 = vector.load %arg9[%c0_32, %c0_33] : memref<1x512xf32, #tpu.memory_space<vmem>>, vector<1x512xf32>
      %44 = arith.truncf %41 : vector<2x1024xf32> to vector<2x1024xbf16>
      %cst_34 = arith.constant dense<0.000000e+00> : vector<2x512xf32>
      %45 = tpu.matmul %44, %42, %cst_34 {dimension_numbers = #tpu.dot_dimension_numbers<[1], [0], [0], [1], [0, 0, 1, 1], [], []>} : vector<2x1024xbf16>, vector<1024x512xbf16>, vector<2x512xf32> -> vector<2x512xf32>
      %46 = vector.broadcast %43 : vector<1x512xf32> to vector<2x512xf32>
      %47 = arith.addf %45, %46 : vector<2x512xf32>
      %cst_35 = arith.constant 0.000000e+00 : f32
      %48 = vector.broadcast %cst_35 : f32 to vector<2x512xf32>
      %49 = arith.maximumf %47, %48 : vector<2x512xf32>
      %c0_36 = arith.constant 0 : index
      %c0_37 = arith.constant 0 : index
      %50 = vector.load %arg17[%c0_36, %c0_37] : memref<512x256xbf16, #tpu.memory_space<vmem>>, vector<512x256xbf16>
      %c0_38 = arith.constant 0 : index
      %c0_39 = arith.constant 0 : index
      %51 = vector.load %arg11[%c0_38, %c0_39] : memref<1x256xf32, #tpu.memory_space<vmem>>, vector<1x256xf32>
      %52 = arith.truncf %49 : vector<2x512xf32> to vector<2x512xbf16>
      %cst_40 = arith.constant dense<0.000000e+00> : vector<2x256xf32>
      %53 = tpu.matmul %52, %50, %cst_40 {dimension_numbers = #tpu.dot_dimension_numbers<[1], [0], [0], [1], [0, 0, 1, 1], [], []>} : vector<2x512xbf16>, vector<512x256xbf16>, vector<2x256xf32> -> vector<2x256xf32>
      %54 = vector.broadcast %51 : vector<1x256xf32> to vector<2x256xf32>
      %55 = arith.addf %53, %54 : vector<2x256xf32>
      %cst_41 = arith.constant 0.000000e+00 : f32
      %56 = vector.broadcast %cst_41 : f32 to vector<2x256xf32>
      %57 = arith.maximumf %55, %56 : vector<2x256xf32>
      %c0_42 = arith.constant 0 : index
      %c0_43 = arith.constant 0 : index
      %58 = vector.load %arg12[%c0_42, %c0_43] : memref<256x128xbf16, #tpu.memory_space<vmem>>, vector<256x128xbf16>
      %c0_44 = arith.constant 0 : index
      %c0_45 = arith.constant 0 : index
      %59 = vector.load %arg13[%c0_44, %c0_45] : memref<1x128xf32, #tpu.memory_space<vmem>>, vector<1x128xf32>
      %60 = arith.truncf %57 : vector<2x256xf32> to vector<2x256xbf16>
      %cst_46 = arith.constant dense<0.000000e+00> : vector<2x128xf32>
      %61 = tpu.matmul %60, %58, %cst_46 {dimension_numbers = #tpu.dot_dimension_numbers<[1], [0], [0], [1], [0, 0, 1, 1], [], []>} : vector<2x256xbf16>, vector<256x128xbf16>, vector<2x128xf32> -> vector<2x128xf32>
      %62 = vector.broadcast %59 : vector<1x128xf32> to vector<2x128xf32>
      %63 = arith.addf %61, %62 : vector<2x128xf32>
      %c0_47 = arith.constant 0 : index
      %c0_48 = arith.constant 0 : index
      %64 = vector.load %arg14[%c0_47, %c0_48] : memref<2x128xf32, #tpu.memory_space<vmem>>, vector<2x128xf32>
      tpu.vector_store %arg14[%c0_47, %c0_48], %63 {strides = array<i32>} : memref<2x128xf32, #tpu.memory_space<vmem>>, vector<2x128xf32>,
    } else {
    }
    return
  }
  func.func @transform_0(%arg0: i32) -> (i32, i32, i32) {
    %c0_i32 = arith.constant 0 : i32
    %c0_i32_0 = arith.constant 0 : i32
    %c0_i32_1 = arith.constant 0 : i32
    return %c0_i32, %arg0, %c0_i32_0 : i32, i32, i32
  }
  func.func @transform_1(%arg0: i32) -> (i32, i32) {
    %c0_i32 = arith.constant 0 : i32
    %c0_i32_0 = arith.constant 0 : i32
    %c0_i32_1 = arith.constant 0 : i32
    return %c0_i32, %c0_i32_0 : i32, i32
  }
  func.func @transform_2(%arg0: i32) -> (i32, i32) {
    %c0_i32 = arith.constant 0 : i32
    %c0_i32_0 = arith.constant 0 : i32
    %c0_i32_1 = arith.constant 0 : i32
    return %c0_i32, %c0_i32_0 : i32, i32
  }
  func.func @transform_3(%arg0: i32) -> (i32, i32) {
    %c0_i32 = arith.constant 0 : i32
    %c0_i32_0 = arith.constant 0 : i32
    %c0_i32_1 = arith.constant 0 : i32
    return %c0_i32, %c0_i32_0 : i32, i32
  }
  func.func @transform_4(%arg0: i32) -> (i32, i32) {
    %c0_i32 = arith.constant 0 : i32
    %c0_i32_0 = arith.constant 0 : i32
    %c0_i32_1 = arith.constant 0 : i32
    return %c0_i32, %c0_i32_0 : i32, i32
  }
  func.func @transform_5(%arg0: i32) -> (i32, i32) {
    %c0_i32 = arith.constant 0 : i32
    %c0_i32_0 = arith.constant 0 : i32
    %c0_i32_1 = arith.constant 0 : i32
    return %c0_i32, %c0_i32_0 : i32, i32
  }
  func.func @transform_6(%arg0: i32) -> (i32, i32) {
    %c0_i32 = arith.constant 0 : i32
    %c0_i32_0 = arith.constant 0 : i32
    %c0_i32_1 = arith.constant 0 : i32
    return %c0_i32, %c0_i32_0 : i32, i32
  }
  func.func @transform_8(%arg0: i32) -> (i32, i32) {
    %c0_i32 = arith.constant 0 : i32
    %c0_i32_0 = arith.constant 0 : i32
    %c0_i32_1 = arith.constant 0 : i32
    return %c0_i32, %c0_i32_0 : i32, i32
  }
  func.func @transform_10(%arg0: i32) -> (i32, i32) {
    %c0_i32 = arith.constant 0 : i32
    %c0_i32_0 = arith.constant 0 : i32
    %c0_i32_1 = arith.constant 0 : i32
    return %c0_i32, %c0_i32_0 : i32, i32
  }
  func.func @transform_11(%arg0: i32) -> (i32, i32) {
    %c0_i32 = arith.constant 0 : i32
    %c0_i32_0 = arith.constant 0 : i32
    %c0_i32_1 = arith.constant 0 : i32
    return %c0_i32, %c0_i32_0 : i32, i32
  }
  func.func @transform_12(%arg0: i32) -> (i32, i32) {
    %c0_i32 = arith.constant 0 : i32
    %c0_i32_0 = arith.constant 0 : i32
    %c0_i32_1 = arith.constant 0 : i32
    return %c0_i32, %c0_i32_0 : i32, i32
  }
  func.func @transform_13(%arg0: i32) -> (i32, i32) {
    %c0_i32 = arith.constant 0 : i32
    %c0_i32_0 = arith.constant 0 : i32
    %c0_i32_1 = arith.constant 0 : i32
    return %c0_i32, %c0_i32_0 : i32, i32
  }
}

</mosaic_0001>

<bundles_post_ra>
// kernel: tpu_custom_call.1
= control target key start
LH: loop header
LB: loop body
LE: loop exit
PB: predicated region body
PF: predicated region fallthrough
CT: control target
= control target key end

     0   :  { %18 = vsyncpa [#allocation7], 0  ;;  %s6248_s0 = inlined_call_operand.vmem [shape: f32[2,16,9], index: 0, kind: input, shape index: {}]   ;;  %s6249_s1 = inlined_call_operand.vmem [shape: bf16[9,64], index: 1, kind: input, shape index: {}]   ;;  %s6250_s2 = inlined_call_operand.hbm [shape: f32[1,64], index: 2, kind: input, shape index: {}]   ;;  %s6251_s3 = inlined_call_operand.vmem [shape: bf16[64,128], index: 3, kind: input, shape index: {}]   ;;  %s6252_s4 = inlined_call_operand.hbm [shape: f32[1,128], index: 4, kind: input, shape index: {}]   ;;  %s6253_s5 = inlined_call_operand.hbm [shape: bf16[128,1024], index: 5, kind: input, shape index: {}]   ;;  %s6254_s6 = inlined_call_operand.vmem [shape: f32[1,1024], index: 6, kind: input, shape index: {}]   ;;  %s6255_s7 = inlined_call_operand.hbm [shape: bf16[1024,512], index: 7, kind: input, shape index: {}]   ;;  %s6256_s8 = inlined_call_operand.vmem [shape: f32[1,512], index: 8, kind: input, shape index: {}]   ;;  %s6257_s9 = inlined_call_operand.hbm [shape: bf16[512,256], index: 9, kind: input, shape index: {}]   ;;  %s6258_s10 = inlined_call_operand.vmem [shape: f32[1,256], index: 10, kind: input, shape index: {}]   ;;  %s6259_s11 = inlined_call_operand.hbm [shape: bf16[256,128], index: 11, kind: input, shape index: {}]   ;;  %s6260_s12 = inlined_call_operand.vmem [shape: f32[1,128], index: 12, kind: input, shape index: {}]   ;;  %s6261_s13 = inlined_call_operand.hbm [shape: f32[2,128], index: 13, kind: output, shape index: {}]  }
   0x1   :  { %19 = vsyncpa [#allocation10], 0 }
   0x2   :  { %20 = vsyncpa [#allocation13], 0  ;;  %s44_s27 = sshll.u32 %s6252_s4, 4  ;;  %s45_s27 = int_to_ptr.hbm [resolvable:$true] %s44_s27 }
   0x3   :  { %21 = vsyncpa [#allocation8], 0  ;;  %s5955_s28 = smov [#allocation9]   ;;  %s31_s15 = sshll.u32 %s6250_s2, 4  ;;  %s32_s15 = int_to_ptr.hbm [resolvable:$true] %s31_s15 }
   0x4   :  { %s46_s29 = sshll.u32 %s5955_s28, 4  ;;  %s5956_s16 = smov [#allocation6]   ;;  %s47_s29 = int_to_ptr.vmem [resolvable:$true] %s46_s29 }
   0x5   :  { %49 = dma.hbm_to_vmem [thread:$0]  %s45_s27, 16, %s47_s29, [#allocation10]  }
   0x6   :  { %s33_s17 = sshll.u32 %s5956_s16, 4  ;;  %s54_s20 = sshll.u32 %s6253_s5, 4  ;;  %s34_s17 = int_to_ptr.vmem [resolvable:$true] %s33_s17  ;;  %s55_s20 = int_to_ptr.hbm [resolvable:$true] %s54_s20 }
   0x7   :  { %36 = dma.hbm_to_vmem [thread:$0]  %s32_s15, 16, %s34_s17, [#allocation7]  }
   0x8   :  { %s5957_s4 = smov [#allocation11]   ;;  %s73_s24 = sshll.u32 %s6259_s11, 4  ;;  %s74_s24 = int_to_ptr.hbm [resolvable:$true] %s73_s24 }
   0x9   :  { %s56_s21 = sshll.u32 %s5957_s4, 4  ;;  %s5958_s25 = smov 512   ;;  %s57_s21 = int_to_ptr.vmem [resolvable:$true] %s56_s21 }
   0xa   :  { %s5959_s2 = smov 32   ;;  %s5960_s26 = smov [#allocation12]  }
   0xb   :  { %62 = dma.hbm_to_vmem [thread:$0]  %s55_s20, 8192, %s57_s21, [#allocation10], %s5958_s25, %s5958_s25, %s5959_s2  }
   0xc   :  { %s75_s27 = sshll.u32 %s5960_s26, 4  ;;  %s5961_s28 = smov 64   ;;  %s76_s27 = int_to_ptr.vmem [resolvable:$true] %s75_s27 }
   0xd   :  { %s5962_s29 = smov 4  }
   0xe   :  { %81 = dma.hbm_to_vmem [thread:$0]  %s74_s24, 2048, %s76_s27, [#allocation13], %s5961_s28, %s5961_s28, %s5962_s29  }
   0xf   :  { %5943 = dma.done.wait [#allocation7], 16  }
  0x10   :  { %5944 = vsyncadd [#allocation7], 4294967280 }
  0x11   :  { %5945 = dma.done.wait [#allocation10], 8208  }
  0x12   :  { %5946 = vsyncadd [#allocation10], 4294959088 }
  0x13   :  { %5947 = dma.done.wait [#allocation13], 2048  }
  0x14   :  { %5948 = vsyncadd [#allocation13], 4294965248  ;;  %vm158_vm0 = vcmask 1043456   ;;  %vm159_vm1 = vcmask 1044480   ;;  %v5963_v0 = vmov 65535   ;;  %v134_v6 = vld [vmem:[%s6248_s0] sm:$0xff] }
  0x15   :  { %v160_v1 = vsel %vm158_vm0, 4294967295, %v5963_v0  ;;  %v3730_v2 = vld [vmem:[%s6249_s1] sm:$0xf]  ;;  %v5354_v3 = vld [vmem:[%s6249_s1] sm:$0x10]  ;;  %v135_v7 = vld [vmem:[%s6248_s0 + $0x8] sm:$0xff] }
  0x16   :  { %v161_v4 = vsel %vm159_vm1, %v160_v1, 0  ;;  %v3731_v5 = vor.u32 %v5354_v3, %v3730_v2  ;;  %v141_v9 = vpack.c.bf16 %v135_v7, %v134_v6  ;;  %vm151_vm2 = vcmask 72704   ;;  %v136_v10 = vld [vmem:[%s6248_s0 + $0x10] sm:$0xff]  ;;  %v137_v11 = vld [vmem:[%s6248_s0 + $0x18] sm:$0xff]  ;;  %v5356_v15 = vld [vmem:[%s6251_s3 + $0x8] sm:$0xff]  ;;  %s112_s28 = sshll.u32 %s6255_s7, 4  ;;  %s113_s28 = int_to_ptr.hbm [resolvable:$true] %s112_s28 }
  0x17   :  { %v142_v12 = vpack.c.bf16 %v137_v11, %v136_v10  ;;  %v5358_v13 = vld [vmem:[%s6251_s3 + $0x18] sm:$0xff]  ;;  %v5357_v14 = vld [vmem:[%s6251_s3 + $0x10] sm:$0xff]  ;;  %v5355_v16 = vld [vmem:[%s6251_s3] sm:$0xff]  ;;  %vm226_vm3 = vcmask 523264   ;;  %s5964_s29 = smov [#allocation3]   ;;  %s126_s14 = sshll.u32 %s6257_s9, 4  ;;  %s127_s14 = int_to_ptr.hbm [resolvable:$true] %s126_s14 }
  0x18   :  { %v163_v8 = vand.u32 %v3731_v5, %v161_v4  ;;  %237 = vmatpush.bf16.msra.mxu1 %v5358_v13  ;;  %v3978_v17 = vld [vmem:[#allocation11 + $0x1c0] sm:$0xf]  ;;  %v5415_v19 = vld [vmem:[#allocation11 + $0x1c4] sm:$0xf]  ;;  %v3986_v23 = vld [vmem:[#allocation11 + $0x1c8] sm:$0xf] }
  0x19   :  { %v5419_v18 = vld [vmem:[#allocation11 + $0x1dc] sm:$0xf0]  ;;  %v3980_v22 = vld [vmem:[#allocation11 + $0x1e0] sm:$0xf0]  ;;  %v5420_v24 = vld [vmem:[#allocation11 + $0x1e4] sm:$0xf0] }
  0x1a   :  { %172 = vmatpush.bf16.msra.mxu0 %v163_v8  ;;  %v3979_v21 = vor.u32 %v5419_v18, %v3978_v17  ;;  %v3983_v25 = vor.u32 %v5415_v19, %v3980_v22  ;;  %v3987_v26 = vor.u32 %v5420_v24, %v3986_v23  ;;  %v5416_v27 = vld [vmem:[#allocation11 + $0x1cc] sm:$0xf]  ;;  %v3946_v29 = vld [vmem:[#allocation11 + $0x180] sm:$0xf]  ;;  %v5407_v32 = vld [vmem:[#allocation11 + $0x184] sm:$0xf] }
  0x1b   :  { %v3988_v28 = vld [vmem:[#allocation11 + $0x1e8] sm:$0xf0]  ;;  %v5411_v31 = vld [vmem:[#allocation11 + $0x19c] sm:$0xf0]  ;;  %v3948_v33 = vld [vmem:[#allocation11 + $0x1a0] sm:$0xf0] }
  0x1c   :  { %238 = vmatpush.bf16.msra.mxu1 %v5357_v14  ;;  %660 = vmatpush.bf16.msra.mxu2 %v3979_v21  ;;  %v3991_v30 = vor.u32 %v5416_v27, %v3988_v28  ;;  %v5771_v34 = vld [vmem:[#allocation6] ss:$0 sm:$0xff]  ;;  %v3947_v35 = vor.u32 %v5411_v31, %v3946_v29  ;;  %v3951_v36 = vor.u32 %v5407_v32, %v3948_v33  ;;  %v3954_v37 = vld [vmem:[#allocation11 + $0x188] sm:$0xf]  ;;  %v5408_v40 = vld [vmem:[#allocation11 + $0x18c] sm:$0xf] }
  0x1d   :  { %3732 = vmatmul.msk.bf16.vlgmr.msra.gmra.mxu0 %vm151_vm2, %v141_v9  ;;  %679 = vmatpush.bf16.msra.mxu3 %v3983_v25  ;;  %v5412_v38 = vld [vmem:[#allocation11 + $0x1a4] sm:$0xf0]  ;;  %v3956_v41 = vld [vmem:[#allocation11 + $0x1a8] sm:$0xf0]  ;;  %v3914_v42 = vld [vmem:[#allocation11 + $0x140] sm:$0xf] }
  0x1e   :  { %698 = vmatpush.bf16.msrb.mxu0 %v3987_v26  ;;  %v3955_v39 = vor.u32 %v5412_v38, %v3954_v37  ;;  %v3959_v43 = vor.u32 %v5408_v40, %v3956_v41  ;;  %v5403_v44 = vld [vmem:[#allocation11 + $0x15c] sm:$0xf0]  ;;  %v5399_v45 = vld [vmem:[#allocation11 + $0x144] sm:$0xf]  ;;  %v3922_v48 = vld [vmem:[#allocation11 + $0x148] sm:$0xf] }
  0x1f   :  { %v3916_v46 = vld [vmem:[#allocation11 + $0x160] sm:$0xf0]  ;;  %v3915_v47 = vor.u32 %v5403_v44, %v3914_v42  ;;  %v5404_v49 = vld [vmem:[#allocation11 + $0x164] sm:$0xf0]  ;;  %v5400_v50 = vld [vmem:[#allocation11 + $0x14c] sm:$0xf] }
  0x20   :  { %239 = vmatpush.bf16.msra.mxu1 %v5356_v15  ;;  %661 = vmatpush.bf16.msra.mxu2 %v3947_v35  ;;  %v3919_v52 = vor.u32 %v5399_v45, %v3916_v46  ;;  %v3923_v53 = vor.u32 %v5404_v49, %v3922_v48  ;;  %v3924_v54 = vld [vmem:[#allocation11 + $0x168] sm:$0xf0]  ;;  %v3882_v55 = vld [vmem:[#allocation11 + $0x100] sm:$0xf]  ;;  %v5391_v59 = vld [vmem:[#allocation11 + $0x104] sm:$0xf] }
  0x21   :  { %680 = vmatpush.bf16.msra.mxu3 %v3951_v36  ;;  %v5395_v56 = vld [vmem:[#allocation11 + $0x11c] sm:$0xf0]  ;;  %v3927_v58 = vor.u32 %v5400_v50, %v3924_v54  ;;  %v3884_v60 = vld [vmem:[#allocation11 + $0x120] sm:$0xf0]  ;;  %v3890_v61 = vld [vmem:[#allocation11 + $0x108] sm:$0xf] }
  0x22   :  { %699 = vmatpush.bf16.msrb.mxu0 %v3955_v39  ;;  %v5396_v63 = vld [vmem:[#allocation11 + $0x124] sm:$0xf0]  ;;  %v5392_v0 = vld [vmem:[#allocation11 + $0x10c] sm:$0xf]  ;;  %v3883_v2 = vor.u32 %v5395_v56, %v3882_v55  ;;  %v3887_v5 = vor.u32 %v5391_v59, %v3884_v60  ;;  %v5387_v17 = vld [vmem:[#allocation11 + $0xdc] sm:$0xf0] }
  0x23   :  { %v3892_v1 = vld [vmem:[#allocation11 + $0x128] sm:$0xf0]  ;;  %v3891_v6 = vor.u32 %v5396_v63, %v3890_v61  ;;  %v5383_v18 = vld [vmem:[#allocation11 + $0xc4] sm:$0xf]  ;;  %v3858_v21 = vld [vmem:[#allocation11 + $0xc8] sm:$0xf] }
  0x24   :  { %240 = vmatpush.bf16.msra.mxu1 %v5355_v16  ;;  %662 = vmatpush.bf16.msra.mxu2 %v3915_v47  ;;  %v3895_v7 = vor.u32 %v5392_v0, %v3892_v1  ;;  %v3850_v16 = vld [vmem:[#allocation11 + $0xc0] sm:$0xf]  ;;  %v5388_v22 = vld [vmem:[#allocation11 + $0xe4] sm:$0xf0]  ;;  %v5384_v25 = vld [vmem:[#allocation11 + $0xcc] sm:$0xf] }
  0x25   :  { %681 = vmatpush.bf16.msra.mxu3 %v3919_v52  ;;  %v3851_v19 = vor.u32 %v5387_v17, %v3850_v16  ;;  %v3859_v24 = vor.u32 %v5388_v22, %v3858_v21  ;;  %v3860_v26 = vld [vmem:[#allocation11 + $0xe8] sm:$0xf0]  ;;  %v3818_v28 = vld [vmem:[#allocation11 + $0x80] sm:$0xf]  ;;  %v3820_v32 = vld [vmem:[#allocation11 + $0xa0] sm:$0xf0] }
  0x26   :  { %700 = vmatpush.bf16.msrb.mxu0 %v3923_v53  ;;  %v3863_v27 = vor.u32 %v5384_v25, %v3860_v26  ;;  %v5379_v29 = vld [vmem:[#allocation11 + $0x9c] sm:$0xf0]  ;;  %v3826_v33 = vld [vmem:[#allocation11 + $0x88] sm:$0xf]  ;;  %v5376_v37 = vld [vmem:[#allocation11 + $0x8c] sm:$0xf] }
  0x27   :  { %v3819_v31 = vor.u32 %v5379_v29, %v3818_v28  ;;  %v3828_v38 = vld [vmem:[#allocation11 + $0xa8] sm:$0xf0]  ;;  %v3786_v40 = vld [vmem:[#allocation11 + $0x40] sm:$0xf]  ;;  %v5367_v42 = vld [vmem:[#allocation11 + $0x44] sm:$0xf] }
  0x28   :  { %717 = vmatpush.bf16.msrb.mxu1 %v3991_v30  ;;  %663 = vmatpush.bf16.msra.mxu2 %v3883_v2  ;;  %v5375_v30 = vld [vmem:[#allocation11 + $0x84] sm:$0xf]  ;;  %v3831_v39 = vor.u32 %v5376_v37, %v3828_v38  ;;  %v5371_v41 = vld [vmem:[#allocation11 + $0x5c] sm:$0xf0]  ;;  %v3794_v45 = vld [vmem:[#allocation11 + $0x48] sm:$0xf] }
  0x29   :  { %682 = vmatpush.bf16.msra.mxu3 %v3887_v5  ;;  %v3823_v35 = vor.u32 %v5375_v30, %v3820_v32  ;;  %v3788_v44 = vld [vmem:[#allocation11 + $0x60] sm:$0xf0]  ;;  %v5372_v46 = vld [vmem:[#allocation11 + $0x64] sm:$0xf0]  ;;  %v5368_v49 = vld [vmem:[#allocation11 + $0x4c] sm:$0xf] }
  0x2a   :  { %701 = vmatpush.bf16.msrb.mxu0 %v3891_v6  ;;  %v3791_v47 = vor.u32 %v5367_v42, %v3788_v44  ;;  %v3795_v48 = vor.u32 %v5372_v46, %v3794_v45  ;;  %v3796_v50 = vld [vmem:[#allocation11 + $0x68] sm:$0xf0]  ;;  %v3754_v52 = vld [vmem:[#allocation11] sm:$0xf]  ;;  %v5359_v54 = vld [vmem:[#allocation11 + $0x4] sm:$0xf] }
  0x2b   :  { %v5363_v53 = vld [vmem:[#allocation11 + $0x1c] sm:$0xf0]  ;;  %v3756_v56 = vld [vmem:[#allocation11 + $0x20] sm:$0xf0]  ;;  %v5360_v61 = vld [vmem:[#allocation11 + $0xc] sm:$0xf] }
  0x2c   :  { %718 = vmatpush.bf16.msrb.mxu1 %v3959_v43  ;;  %664 = vmatpush.bf16.msra.mxu2 %v3851_v19  ;;  %v3787_v43 = vor.u32 %v5371_v41, %v3786_v40  ;;  %v3755_v55 = vor.u32 %v5363_v53, %v3754_v52  ;;  %v3759_v59 = vor.u32 %v5359_v54, %v3756_v56  ;;  %v5417_v0 = vld [vmem:[#allocation11 + $0x1d4] sm:$0xf]  ;;  %v3994_v2 = vld [vmem:[#allocation11 + $0x1d0] sm:$0xf]  ;;  %v4002_v5 = vld [vmem:[#allocation11 + $0x1d8] sm:$0xf] }
  0x2d   :  { %3733 = vmatmul.msk.bf16.gmra.mxu0 %vm151_vm2, %v142_v12  ;;  %v3996_v1 = vld [vmem:[#allocation11 + $0x1f0] sm:$0xf0]  ;;  %v5422_v6 = vld [vmem:[#allocation11 + $0x1f4] sm:$0xf0]  ;;  %v5413_v16 = vld [vmem:[#allocation11 + $0x1ac] sm:$0xf0] }
  0x2e   :  { %702 = vmatpush.bf16.msrb.mxu0 %v3859_v24  ;;  %v3970_v17 = vld [vmem:[#allocation11 + $0x198] sm:$0xf]  ;;  %v5410_v21 = vld [vmem:[#allocation11 + $0x19c] sm:$0xf]  ;;  %v3932_v25 = vld [vmem:[#allocation11 + $0x170] sm:$0xf0] }
  0x2f   :  { %v3972_v22 = vld [vmem:[#allocation11 + $0x1b8] sm:$0xf0]  ;;  %v5405_v28 = vld [vmem:[#allocation11 + $0x16c] sm:$0xf0]  ;;  %v3938_v29 = vld [vmem:[#allocation11 + $0x158] sm:$0xf] }
  0x30   :  { %719 = vmatpush.bf16.msrb.mxu1 %v3927_v58  ;;  %665 = vmatpush.bf16.msra.mxu2 %v3819_v31  ;;  %v5364_v58 = vld [vmem:[#allocation11 + $0x24] sm:$0xf0]  ;;  %v3975_v24 = vor.u32 %v5410_v21, %v3972_v22  ;;  %v5406_v31 = vld [vmem:[#allocation11 + $0x174] sm:$0xf0]  ;;  %v5402_v32 = vld [vmem:[#allocation11 + $0x15c] sm:$0xf] }
  0x31   :  { %v3900_v37 = vld [vmem:[#allocation11 + $0x130] sm:$0xf0]  ;;  %v3898_v38 = vld [vmem:[#allocation11 + $0x110] sm:$0xf]  ;;  %v3906_v41 = vld [vmem:[#allocation11 + $0x118] sm:$0xf] }
  0x32   :  { %v5397_v40 = vld [vmem:[#allocation11 + $0x12c] sm:$0xf0]  ;;  %v5398_v42 = vld [vmem:[#allocation11 + $0x134] sm:$0xf0]  ;;  %v5394_v45 = vld [vmem:[#allocation11 + $0x11c] sm:$0xf] }
  0x33   :  { %v3907_v44 = vor.u32 %v5398_v42, %v3906_v41  ;;  %v3908_v46 = vld [vmem:[#allocation11 + $0x138] sm:$0xf0]  ;;  %v5389_v52 = vld [vmem:[#allocation11 + $0xec] sm:$0xf0]  ;;  %v3874_v53 = vld [vmem:[#allocation11 + $0xd8] sm:$0xf] }
  0x34   :  { %720 = vmatpush.bf16.msrb.mxu1 %v3895_v7  ;;  %666 = vmatpush.bf16.msra.mxu2 %v3787_v43  ;;  %v3899_v43 = vor.u32 %v5397_v40, %v3898_v38  ;;  %v5390_v54 = vld [vmem:[#allocation11 + $0xf4] sm:$0xf0]  ;;  %v5361_v21 = vld [vmem:[#allocation11 + $0x14] sm:$0xf]  ;;  %s114_s5 = sshll.u32 %s5964_s29, 4  ;;  %s5965_s15 = smov [#allocation4]   ;;  %s115_s5 = int_to_ptr.vmem [resolvable:$true] %s114_s5 }
  0x35   :  { %v3772_v22 = vld [vmem:[#allocation11 + $0x30] sm:$0xf0]  ;;  %117 = dma.hbm_to_vmem [thread:$0]  %s113_s28, 32768, %s115_s5, [#allocation5]  ;;  %vm986_vm4 = vcmask 1041408   ;;  %vm988_vm5 = vcmask 1045508  }
  0x36   :  { %s128_s16 = sshll.u32 %s5965_s15, 4  ;;  %vm1005_vm6 = vcmask 1041409   ;;  %vm1007_vm7 = vcmask 1043459   ;;  %vm1009_vm8 = vcmask 1045509   ;;  %vm1011_vm9 = vcmask 1047559   ;;  %s129_s16 = int_to_ptr.vmem [resolvable:$true] %s128_s16 }
  0x37   :  { %131 = dma.hbm_to_vmem [thread:$0]  %s127_s14, 8192, %s129_s16, [#allocation5 + $0x1] }
  0x38   :  { %721 = vmatpush.bf16.msrb.mxu1 %v3863_v27  ;;  %667 = vmatpush.bf16.msra.mxu2 %v3755_v55  ;;  %v3930_v27 = vld [vmem:[#allocation11 + $0x150] sm:$0xf] }
  0x39   :  { %v3931_v30 = vor.u32 %v5405_v28, %v3930_v27  ;;  %v3778_v27 = vld [vmem:[#allocation11 + $0x18] sm:$0xf] }
  0x3c   :  { %722 = vmatpush.bf16.msrb.mxu1 %v3831_v39 }
  0x9a   :  { %v174_v20 = vpop.f32.mrf.mxu0 }
  0x9b   :  { %v175_v51 = vadd.f32 %v5771_v34, %v174_v20  ;;  %v3852_v20 = vld [vmem:[#allocation11 + $0xe0] sm:$0xf0] }
  0x9c   :  { %v3855_v23 = vor.u32 %v5383_v18, %v3852_v20  ;;  %v5414_v18 = vld [vmem:[#allocation11 + $0x1b4] sm:$0xf0] }
  0x9d   :  { %v184_v3 = vmax.f32 %v175_v51, 0.0  ;;  %v3799_v51 = vor.u32 %v5368_v49, %v3796_v50  ;;  %v3971_v20 = vor.u32 %v5414_v18, %v3970_v17  ;;  %v3868_v49 = vld [vmem:[#allocation11 + $0xf0] sm:$0xf0]  ;;  %v3866_v50 = vld [vmem:[#allocation11 + $0xd0] sm:$0xf] }
  0x9e   :  { %683 = vmatpush.bf16.msra.mxu3 %v3855_v23  ;;  %v5401_v23 = vld [vmem:[#allocation11 + $0x154] sm:$0xf]  ;;  %v3867_v56 = vor.u32 %v5389_v52, %v3866_v50  ;;  %v5370_v17 = vld [vmem:[#allocation11 + $0x5c] sm:$0xf] }
  0x9f   :  { %723 = vmatpush.bf16.msrb.mxu1 %v3799_v51  ;;  %v3935_v26 = vor.u32 %v5401_v23, %v3932_v25  ;;  %v3770_v25 = vld [vmem:[#allocation11 + $0x10] sm:$0xf] }
  0xa2   :  { %v176_v57 = vpop.f32.mrf.mxu0  ;;  %684 = vmatpush.bf16.msra.mxu3 %v3823_v35 }
  0xa3   :  { %v177_v62 = vadd.f32 %v5771_v34, %v176_v57  ;;  %v3762_v57 = vld [vmem:[#allocation11 + $0x8] sm:$0xf] }
  0xa4   :  { %v3763_v60 = vor.u32 %v5364_v58, %v3762_v57  ;;  %v3875_v57 = vor.u32 %v5390_v54, %v3874_v53  ;;  %v5386_v58 = vld [vmem:[#allocation11 + $0xdc] sm:$0xf] }
  0xa5   :  { %v185_v4 = vmax.f32 %v177_v62, 0.0  ;;  %v3764_v62 = vld [vmem:[#allocation11 + $0x28] sm:$0xf0] }
  0xa6   :  { %685 = vmatpush.bf16.msra.mxu3 %v3791_v47  ;;  %v3767_v63 = vor.u32 %v5360_v61, %v3764_v62  ;;  %v3911_v47 = vor.u32 %v5394_v45, %v3908_v46  ;;  %v3836_v62 = vld [vmem:[#allocation11 + $0xb0] sm:$0xf0] }
  0xa7   :  { %v197_v8 = vpack.c.bf16 %v185_v4, %v184_v3  ;;  %v3999_v3 = vor.u32 %v5417_v0, %v3996_v1  ;;  %v5421_v4 = vld [vmem:[#allocation11 + $0x1ec] sm:$0xf0] }
  0xa8   :  { %724 = vmatpush.bf16.msrb.mxu1 %v3767_v63  ;;  %v3995_v7 = vor.u32 %v5421_v4, %v3994_v2  ;;  %v3834_v63 = vld [vmem:[#allocation11 + $0x90] sm:$0xf]  ;;  %v5382_v4 = vld [vmem:[#allocation11 + $0xb4] sm:$0xf0] }
  0xa9   :  { %3750 = vmatmul.msk.bf16.vlgmr.msra.gmra.mxu1 %vm226_vm3, %v197_v8  ;;  %v4003_v8 = vor.u32 %v5422_v6, %v4002_v5  ;;  %v5381_v0 = vld [vmem:[#allocation11 + $0xac] sm:$0xf0]  ;;  %v5378_v5 = vld [vmem:[#allocation11 + $0x9c] sm:$0xf] }
  0xaa   :  { %v179_v9 = vpop.f32.mrf.mxu0  ;;  %686 = vmatpush.bf16.msra.mxu3 %v3759_v59  ;;  %736 = vmatpush.bf16.msrb.mxu2 %v3995_v7  ;;  %v3876_v59 = vld [vmem:[#allocation11 + $0xf8] sm:$0xf0]  ;;  %v3835_v2 = vor.u32 %v5381_v0, %v3834_v63 }
  0xab   :  { %v180_v10 = vadd.f32 %v5771_v34, %v179_v9  ;;  %v5418_v9 = vld [vmem:[#allocation11 + $0x1dc] sm:$0xf]  ;;  %v3879_v61 = vor.u32 %v5386_v58, %v3876_v59 }
  0xac   :  { %v5772_v6 = vld [vmem:[#allocation9] ss:$0 sm:$0xff] }
  0xad   :  { %v186_v13 = vmax.f32 %v180_v10, 0.0  ;;  %v4004_v10 = vld [vmem:[#allocation11 + $0x1f8] sm:$0xf0] }
  0xae   :  { %755 = vmatpush.bf16.msrb.mxu3 %v3999_v3  ;;  %v3842_v3 = vld [vmem:[#allocation11 + $0x98] sm:$0xf] }
  0xaf   :  { %v3843_v7 = vor.u32 %v5382_v4, %v3842_v3 }
  0xb2   :  { %v181_v11 = vpop.f32.mrf.mxu0 }
  0xb3   :  { %v182_v12 = vadd.f32 %v5771_v34, %v181_v11  ;;  %v5380_v34 = vld [vmem:[#allocation11 + $0xa4] sm:$0xf0]  ;;  %v4007_v11 = vor.u32 %v5418_v9, %v4004_v10  ;;  %v5369_v9 = vld [vmem:[#allocation11 + $0x54] sm:$0xf] }
  0xb4   :  { %v3827_v36 = vor.u32 %v5380_v34, %v3826_v33  ;;  %v3940_v33 = vld [vmem:[#allocation11 + $0x178] sm:$0xf0]  ;;  %v3939_v34 = vor.u32 %v5406_v31, %v3938_v29  ;;  %v5366_v29 = vld [vmem:[#allocation11 + $0x34] sm:$0xf0]  ;;  %v3775_v31 = vor.u32 %v5361_v21, %v3772_v22 }
  0xb5   :  { %v187_v14 = vmax.f32 %v182_v12, 0.0  ;;  %v5409_v12 = vld [vmem:[#allocation11 + $0x194] sm:$0xf]  ;;  %793 = vmatpush.bf16.msra.mxu1 %v4007_v11  ;;  %v3943_v35 = vor.u32 %v5402_v32, %v3940_v33  ;;  %v3779_v33 = vor.u32 %v5366_v29, %v3778_v27 }
  0xb6   :  { %703 = vmatpush.bf16.msrb.mxu0 %v3827_v36  ;;  %v5393_v36 = vld [vmem:[#allocation11 + $0x114] sm:$0xf] }
  0xb7   :  { %v198_v15 = vpack.c.bf16 %v187_v14, %v186_v13  ;;  %v3964_v13 = vld [vmem:[#allocation11 + $0x1b0] sm:$0xf0]  ;;  %v3962_v14 = vld [vmem:[#allocation11 + $0x190] sm:$0xf]  ;;  %v3903_v39 = vor.u32 %v5393_v36, %v3900_v37 }
  0xb8   :  { %v3963_v19 = vor.u32 %v5413_v16, %v3962_v14  ;;  %v3804_v11 = vld [vmem:[#allocation11 + $0x70] sm:$0xf0]  ;;  %v5374_v16 = vld [vmem:[#allocation11 + $0x74] sm:$0xf0] }
  0xb9   :  { %3751 = vmatmul.msk.bf16.gmra.mxu1 %vm226_vm3, %v198_v15  ;;  %v3967_v15 = vor.u32 %v5409_v12, %v3964_v13  ;;  %v3802_v12 = vld [vmem:[#allocation11 + $0x50] sm:$0xf]  ;;  %v3807_v14 = vor.u32 %v5369_v9, %v3804_v11 }
  0xba   :  { %704 = vmatpush.bf16.msrb.mxu0 %v3795_v48  ;;  %737 = vmatpush.bf16.msrb.mxu2 %v3963_v19  ;;  %v5385_v48 = vld [vmem:[#allocation11 + $0xd4] sm:$0xf]  ;;  %v5373_v13 = vld [vmem:[#allocation11 + $0x6c] sm:$0xf0] }
  0xbb   :  { %756 = vmatpush.bf16.msrb.mxu3 %v3967_v15  ;;  %794 = vmatpush.bf16.msra.mxu1 %v3975_v24  ;;  %v3871_v51 = vor.u32 %v5385_v48, %v3868_v49  ;;  %v3810_v15 = vld [vmem:[#allocation11 + $0x58] sm:$0xf]  ;;  %v3803_v18 = vor.u32 %v5373_v13, %v3802_v12 }
  0xbc   :  { %v3811_v19 = vor.u32 %v5374_v16, %v3810_v15  ;;  %v6091_v49 = vld [vmem:[%s6254_s6] sm:$0xff] }
  0xbd   :  { %v326_v50 = vperm.slane %v6091_v49, 2  ;;  %v327_v53 = vperm.slane %v6091_v49, 3  ;;  %v324_v0 = vperm.slane %v6091_v49, 0 }
  0xbe   :  { %705 = vmatpush.bf16.msrb.mxu0 %v3763_v60  ;;  %738 = vmatpush.bf16.msrb.mxu2 %v3931_v30  ;;  %v5377_v60 = vld [vmem:[#allocation11 + $0x94] sm:$0xf] }
  0xbf   :  { %757 = vmatpush.bf16.msrb.mxu3 %v3935_v26  ;;  %795 = vmatpush.bf16.msra.mxu1 %v3943_v35  ;;  %v3839_v1 = vor.u32 %v5377_v60, %v3836_v62  ;;  %v5365_v26 = vld [vmem:[#allocation11 + $0x2c] sm:$0xf0]  ;;  %v3780_v35 = vld [vmem:[#allocation11 + $0x38] sm:$0xf0] }
  0xc0   :  { %v3771_v32 = vor.u32 %v5365_v26, %v3770_v25 }
  0xc2   :  { %774 = vmatpush.bf16.msra.mxu0 %v4003_v8  ;;  %739 = vmatpush.bf16.msrb.mxu2 %v3899_v43  ;;  %v3844_v8 = vld [vmem:[#allocation11 + $0xb8] sm:$0xf0] }
  0xc3   :  { %758 = vmatpush.bf16.msrb.mxu3 %v3903_v39  ;;  %796 = vmatpush.bf16.msra.mxu1 %v3911_v47  ;;  %v3847_v10 = vor.u32 %v5378_v5, %v3844_v8 }
  0xc6   :  { %775 = vmatpush.bf16.msra.mxu0 %v3971_v20  ;;  %740 = vmatpush.bf16.msrb.mxu2 %v3867_v56  ;;  %v3812_v20 = vld [vmem:[#allocation11 + $0x78] sm:$0xf0] }
  0xc7   :  { %759 = vmatpush.bf16.msrb.mxu3 %v3871_v51  ;;  %797 = vmatpush.bf16.msra.mxu1 %v3879_v61  ;;  %v3815_v24 = vor.u32 %v5370_v17, %v3812_v20 }
  0xca   :  { %776 = vmatpush.bf16.msra.mxu0 %v3939_v34  ;;  %741 = vmatpush.bf16.msrb.mxu2 %v3835_v2  ;;  %v5362_v34 = vld [vmem:[#allocation11 + $0x1c] sm:$0xf] }
  0xcb   :  { %760 = vmatpush.bf16.msrb.mxu3 %v3839_v1  ;;  %798 = vmatpush.bf16.msra.mxu1 %v3847_v10  ;;  %v3783_v39 = vor.u32 %v5362_v34, %v3780_v35 }
  0xce   :  { %777 = vmatpush.bf16.msra.mxu0 %v3907_v44  ;;  %742 = vmatpush.bf16.msrb.mxu2 %v3803_v18 }
  0xcf   :  { %761 = vmatpush.bf16.msrb.mxu3 %v3807_v14  ;;  %799 = vmatpush.bf16.msra.mxu1 %v3815_v24 }
  0xd2   :  { %778 = vmatpush.bf16.msra.mxu0 %v3875_v57  ;;  %743 = vmatpush.bf16.msrb.mxu2 %v3771_v32 }
  0xd3   :  { %762 = vmatpush.bf16.msrb.mxu3 %v3775_v31  ;;  %800 = vmatpush.bf16.msra.mxu1 %v3783_v39 }
  0xd6   :  { %779 = vmatpush.bf16.msra.mxu0 %v3843_v7 }
  0xda   :  { %780 = vmatpush.bf16.msra.mxu0 %v3811_v19 }
  0xde   :  { %781 = vmatpush.bf16.msra.mxu0 %v3779_v33 }
 0x126   :  { %v242_v55 = vpop.f32.mrf.mxu1 }
 0x127   :  { %v243_v23 = vadd.f32 %v5772_v6, %v242_v55  ;;  %v325_v55 = vperm.slane %v6091_v49, 1 }
 0x129   :  { %v252_v36 = vmax.f32 %v243_v23, 0.0 }
 0x12e   :  { %v244_v28 = vpop.f32.mrf.mxu1 }
 0x12f   :  { %v245_v30 = vadd.f32 %v5772_v6, %v244_v28 }
 0x131   :  { %v253_v37 = vmax.f32 %v245_v30, 0.0 }
 0x133   :  { %v321_v38 = vpack.c.bf16 %v253_v37, %v252_v36 }
 0x135   :  { %668 = vmatmul.bf16.vlgmr.msra.gmra.mxu2 %v321_v38  ;;  %687 = vmatmul.bf16.vlgmr.msra.gmra.mxu3 %v321_v38 }
 0x136   :  { %706 = vmatmul.bf16.vlgmr.msrb.gmra.mxu0 %v321_v38  ;;  %725 = vmatmul.bf16.vlgmr.msrb.gmra.mxu1 %v321_v38  ;;  %v247_v40 = vpop.f32.mrf.mxu1 }
 0x137   :  { %v248_v41 = vadd.f32 %v5772_v6, %v247_v40 }
 0x139   :  { %v254_v44 = vmax.f32 %v248_v41, 0.0 }
 0x13e   :  { %v249_v42 = vpop.f32.mrf.mxu1 }
 0x13f   :  { %v250_v43 = vadd.f32 %v5772_v6, %v249_v42 }
 0x141   :  { %v255_v45 = vmax.f32 %v250_v43, 0.0 }
 0x143   :  { %v322_v46 = vpack.c.bf16 %v255_v45, %v254_v44 }
 0x145   :  { %673 = vmatmul.bf16.gmra.mxu2 %v322_v46  ;;  %692 = vmatmul.bf16.gmra.mxu3 %v322_v46 }
 0x146   :  { %711 = vmatmul.bf16.gmra.mxu0 %v322_v46  ;;  %730 = vmatmul.bf16.gmra.mxu1 %v322_v46 }
 0x155   :  { %744 = vmatmul.bf16.vlgmr.msrb.gmra.mxu2 %v321_v38  ;;  %763 = vmatmul.bf16.vlgmr.msrb.gmra.mxu3 %v321_v38 }
 0x156   :  { %782 = vmatmul.bf16.vlgmr.msra.gmra.mxu0 %v321_v38  ;;  %801 = vmatmul.bf16.vlgmr.msra.gmra.mxu1 %v321_v38 }
 0x165   :  { %749 = vmatmul.bf16.gmra.mxu2 %v322_v46  ;;  %768 = vmatmul.bf16.gmra.mxu3 %v322_v46 }
 0x166   :  { %787 = vmatmul.bf16.gmra.mxu0 %v322_v46  ;;  %806 = vmatmul.bf16.gmra.mxu1 %v322_v46 }
 0x1b3   :  { %v707_v47 = vpop.f32.mrf.mxu0  ;;  %v726_v48 = vpop.f32.mrf.mxu1 }
 0x1b4   :  { %v708_v54 = vadd.f32 %v707_v47, %v326_v50  ;;  %v727_v60 = vadd.f32 %v726_v48, %v327_v53 }
 0x1b6   :  { %v814_v62 = vmax.f32 %v708_v54, 0.0  ;;  %v815_v6 = vmax.f32 %v727_v60, 0.0 }
 0x1b8   :  { %v669_v51 = vpop.f32.mrf.mxu2  ;;  %v688_v52 = vpop.f32.mrf.mxu3 }
 0x1b9   :  { %v689_v63 = vadd.f32 %v688_v52, %v325_v55  ;;  %v670_v12 = vadd.f32 %v669_v51, %v324_v0 }
 0x1bb   :  { %v709_v56 = vpop.f32.mrf.mxu0  ;;  %v728_v57 = vpop.f32.mrf.mxu1  ;;  %v813_v8 = vmax.f32 %v689_v63, 0.0  ;;  %v812_v17 = vmax.f32 %v670_v12, 0.0 }
 0x1bc   :  { %v710_v58 = vadd.f32 %v709_v56, %v326_v50  ;;  %v729_v59 = vadd.f32 %v728_v57, %v327_v53 }
 0x1be   :  { %v822_v61 = vmax.f32 %v710_v58, 0.0  ;;  %v823_v1 = vmax.f32 %v729_v59, 0.0 }
 0x1c0   :  { %v671_v2 = vpop.f32.mrf.mxu2  ;;  %v690_v3 = vpop.f32.mrf.mxu3  ;;  %v858_v4 = vmax.f32 %v814_v62, %v822_v61  ;;  %v865_v13 = vmax.f32 %v815_v6, %v823_v1 }
 0x1c1   :  { %v691_v5 = vadd.f32 %v690_v3, %v325_v55  ;;  %v672_v7 = vadd.f32 %v671_v2, %v324_v0 }
 0x1c2   :  { %v859_v14 = vrot.slane %v858_v4, 4  ;;  %v866_v18 = vrot.slane %v865_v13, 4 }
 0x1c3   :  { %v821_v9 = vmax.f32 %v691_v5, 0.0  ;;  %v712_v10 = vpop.f32.mrf.mxu0  ;;  %v731_v11 = vpop.f32.mrf.mxu1  ;;  %v820_v16 = vmax.f32 %v672_v7, 0.0 }
 0x1c4   :  { %v860_v22 = vmax.f32 %v858_v4, %v859_v14  ;;  %v713_v23 = vadd.f32 %v712_v10, %v326_v50  ;;  %v732_v25 = vadd.f32 %v731_v11, %v327_v53  ;;  %v867_v28 = vmax.f32 %v865_v13, %v866_v18 }
 0x1c5   :  { %v851_v15 = vmax.f32 %v813_v8, %v821_v9  ;;  %v844_v24 = vmax.f32 %v812_v17, %v820_v16  ;;  %v6098_v18 = vperm.slane %v6091_v49, 5 }
 0x1c6   :  { %v861_v32 = vrot.slane %v860_v22, 2  ;;  %v830_v33 = vmax.f32 %v713_v23, 0.0  ;;  %v831_v35 = vmax.f32 %v732_v25, 0.0  ;;  %v868_v40 = vrot.slane %v867_v28, 2 }
 0x1c7   :  { %v852_v19 = vrot.slane %v851_v15, 4  ;;  %v845_v34 = vrot.slane %v844_v24, 4 }
 0x1c8   :  { %v674_v20 = vpop.f32.mrf.mxu2  ;;  %v693_v21 = vpop.f32.mrf.mxu3  ;;  %v862_v48 = vmax.f32 %v860_v22, %v861_v32  ;;  %v869_v60 = vmax.f32 %v867_v28, %v868_v40  ;;  %v6101_v22 = vperm.slane %v6091_v49, 6 }
 0x1c9   :  { %v853_v29 = vmax.f32 %v851_v15, %v852_v19  ;;  %v675_v38 = vadd.f32 %v674_v20, %v324_v0  ;;  %v694_v39 = vadd.f32 %v693_v21, %v325_v55  ;;  %v846_v51 = vmax.f32 %v844_v24, %v845_v34 }
 0x1ca   :  { %v870_v7 = vrot.slane %v869_v60, 1 }
 0x1cb   :  { %v714_v26 = vpop.f32.mrf.mxu0  ;;  %v733_v27 = vpop.f32.mrf.mxu1  ;;  %v854_v41 = vrot.slane %v853_v29, 2  ;;  %v829_v54 = vmax.f32 %v694_v39, 0.0  ;;  %v847_v3 = vrot.slane %v846_v51, 2  ;;  %v6110_v39 = vperm.slane %v6091_v49, 4 }
 0x1cc   :  { %v715_v30 = vadd.f32 %v714_v26, %v326_v50  ;;  %v734_v31 = vadd.f32 %v733_v27, %v327_v53  ;;  %v828_v53 = vmax.f32 %v675_v38, 0.0  ;;  %v871_v25 = vmax.f32 %v869_v60, %v870_v7 }
 0x1cd   :  { %v855_v61 = vmax.f32 %v853_v29, %v854_v41  ;;  %v848_v15 = vmax.f32 %v846_v51, %v847_v3  ;;  %v6104_v27 = vperm.slane %v6091_v49, 7 }
 0x1ce   :  { %v838_v36 = vmax.f32 %v715_v30, 0.0  ;;  %v839_v37 = vmax.f32 %v734_v31, 0.0  ;;  %v976_v40 = vrot.slane %v871_v25, 2 }
 0x1cf   :  { %v856_v8 = vrot.slane %v855_v61, 1  ;;  %v849_v32 = vrot.slane %v848_v15, 1 }
 0x1d0   :  { %v914_v42 = vmax.f32 %v830_v33, %v838_v36  ;;  %v921_v43 = vmax.f32 %v831_v35, %v839_v37  ;;  %v676_v44 = vpop.f32.mrf.mxu2  ;;  %v695_v45 = vpop.f32.mrf.mxu3 }
 0x1d1   :  { %v677_v46 = vadd.f32 %v676_v44, %v324_v0  ;;  %v696_v47 = vadd.f32 %v695_v45, %v325_v55  ;;  %v863_v55 = vrot.slane %v862_v48, 1  ;;  %v857_v26 = vmax.f32 %v855_v61, %v856_v8 }
 0x1d2   :  { %v915_v50 = vrot.slane %v914_v42, 4  ;;  %v922_v52 = vrot.slane %v921_v43, 4 }
 0x1d3   :  { %v836_v56 = vmax.f32 %v677_v46, 0.0  ;;  %v837_v57 = vmax.f32 %v696_v47, 0.0  ;;  %v783_v58 = vpop.f32.mrf.mxu0  ;;  %v802_v59 = vpop.f32.mrf.mxu1  ;;  %v864_v19 = vmax.f32 %v862_v48, %v863_v55  ;;  %v974_v41 = vrot.slane %v857_v26, 6 }
 0x1d4   :  { %v916_v62 = vmax.f32 %v914_v42, %v915_v50  ;;  %v923_v63 = vmax.f32 %v921_v43, %v922_v52  ;;  %v784_v42 = vadd.f32 %v783_v58, %v6101_v22  ;;  %v803_v43 = vadd.f32 %v802_v59, %v6104_v27 }
 0x1d5   :  { %v900_v1 = vmax.f32 %v828_v53, %v836_v56  ;;  %v907_v2 = vmax.f32 %v829_v54, %v837_v57  ;;  %v975_v36 = vrot.slane %v864_v19, 4  ;;  %v850_v50 = vmax.f32 %v848_v15, %v849_v32 }
 0x1d6   :  { %v917_v4 = vrot.slane %v916_v62, 2  ;;  %v924_v0 = vrot.slane %v923_v63, 2 }
 0x1d7   :  { %v901_v5 = vrot.slane %v900_v1, 4  ;;  %v908_v6 = vrot.slane %v907_v2, 4  ;;  %v987_v59 = vsel %vm986_vm4, %v850_v50, %v974_v41 }
 0x1d8   :  { %v918_v9 = vmax.f32 %v916_v62, %v917_v4  ;;  %v925_v10 = vmax.f32 %v923_v63, %v924_v0  ;;  %v745_v11 = vpop.f32.mrf.mxu2  ;;  %v764_v12 = vpop.f32.mrf.mxu3  ;;  %v818_v62 = vmax.f32 %v784_v42, 0.0  ;;  %v819_v63 = vmax.f32 %v803_v43, 0.0 }
 0x1d9   :  { %v902_v13 = vmax.f32 %v900_v1, %v901_v5  ;;  %v909_v14 = vmax.f32 %v907_v2, %v908_v6  ;;  %v765_v33 = vadd.f32 %v764_v12, %v6098_v18  ;;  %v746_v3 = vadd.f32 %v745_v11, %v6110_v39 }
 0x1da   :  { %v919_v16 = vrot.slane %v918_v9, 1  ;;  %v926_v17 = vrot.slane %v925_v10, 1  ;;  %v989_v6 = vsel %vm988_vm5, %v975_v36, %v976_v40 }
 0x1db   :  { %v903_v20 = vrot.slane %v902_v13, 2  ;;  %v910_v21 = vrot.slane %v909_v14, 2  ;;  %v785_v23 = vpop.f32.mrf.mxu0  ;;  %v804_v24 = vpop.f32.mrf.mxu1  ;;  %v817_v52 = vmax.f32 %v765_v33, 0.0  ;;  %v816_v11 = vmax.f32 %v746_v3, 0.0 }
 0x1dc   :  { %v920_v28 = vmax.f32 %v918_v9, %v919_v16  ;;  %v927_v29 = vmax.f32 %v925_v10, %v926_v17  ;;  %v786_v34 = vadd.f32 %v785_v23, %v6101_v22  ;;  %v805_v35 = vadd.f32 %v804_v24, %v6104_v27 }
 0x1dd   :  { %v904_v30 = vmax.f32 %v902_v13, %v903_v20  ;;  %v911_v31 = vmax.f32 %v909_v14, %v910_v21  ;;  %v990_v9 = vsel %vm158_vm0, %v987_v59, %v989_v6 }
 0x1de   :  { %v981_v46 = vrot.slane %v920_v28, 4  ;;  %v982_v47 = vrot.slane %v927_v29, 2  ;;  %v826_v53 = vmax.f32 %v786_v34, 0.0  ;;  %v827_v54 = vmax.f32 %v805_v35, 0.0 }
 0x1df   :  { %v905_v37 = vrot.slane %v904_v30, 1  ;;  %v912_v38 = vrot.slane %v911_v31, 1 }
 0x1e0   :  { %v747_v44 = vpop.f32.mrf.mxu2  ;;  %v766_v45 = vpop.f32.mrf.mxu3  ;;  %v995_v1 = vsel %vm988_vm5, %v981_v46, %v982_v47  ;;  %v886_v55 = vmax.f32 %v818_v62, %v826_v53  ;;  %v893_v5 = vmax.f32 %v819_v63, %v827_v54 }
 0x1e1   :  { %v913_v48 = vmax.f32 %v911_v31, %v912_v38  ;;  %v767_v51 = vadd.f32 %v766_v45, %v6098_v18  ;;  %v906_v56 = vmax.f32 %v904_v30, %v905_v37  ;;  %v748_v57 = vadd.f32 %v747_v44, %v6110_v39 }
 0x1e2   :  { %v887_v16 = vrot.slane %v886_v55, 4  ;;  %v894_v17 = vrot.slane %v893_v5, 4 }
 0x1e3   :  { %v980_v49 = vrot.slane %v913_v48, 6  ;;  %v825_v60 = vmax.f32 %v767_v51, 0.0  ;;  %v788_v61 = vpop.f32.mrf.mxu0  ;;  %v807_v58 = vpop.f32.mrf.mxu1  ;;  %v824_v8 = vmax.f32 %v748_v57, 0.0 }
 0x1e4   :  { %v789_v19 = vadd.f32 %v788_v61, %v6101_v22  ;;  %v808_v23 = vadd.f32 %v807_v58, %v6104_v27  ;;  %v888_v31 = vmax.f32 %v886_v55, %v887_v16  ;;  %v895_v32 = vmax.f32 %v893_v5, %v894_v17 }
 0x1e5   :  { %v994_v2 = vsel %vm986_vm4, %v906_v56, %v980_v49  ;;  %v879_v4 = vmax.f32 %v817_v52, %v825_v60  ;;  %v872_v21 = vmax.f32 %v816_v11, %v824_v8 }
 0x1e6   :  { %v996_v0 = vsel %vm158_vm0, %v994_v2, %v995_v1  ;;  %v834_v33 = vmax.f32 %v789_v19, 0.0  ;;  %v835_v35 = vmax.f32 %v808_v23, 0.0  ;;  %v889_v46 = vrot.slane %v888_v31, 2 }
 0x1e7   :  { %v1004_v7 = vrot.slane %v996_v0, 7  ;;  %v880_v14 = vrot.slane %v879_v4, 4  ;;  %v873_v34 = vrot.slane %v872_v21, 4  ;;  %v896_v47 = vrot.slane %v895_v32, 2 }
 0x1e8   :  { %v750_v10 = vpop.f32.mrf.mxu2  ;;  %v769_v12 = vpop.f32.mrf.mxu3  ;;  %v890_v59 = vmax.f32 %v888_v31, %v889_v46 }
 0x1e9   :  { %v1006_v13 = vsel %vm1005_vm6, %v1004_v7, %v990_v9  ;;  %v881_v28 = vmax.f32 %v879_v4, %v880_v14  ;;  %v751_v38 = vadd.f32 %v750_v10, %v6110_v39  ;;  %v770_v40 = vadd.f32 %v769_v12, %v6098_v18 }
 0x1ea   :  { %v1008_v15 = vsel %vm1007_vm7, %v1004_v7, %v1006_v13  ;;  %v874_v48 = vmax.f32 %v872_v21, %v873_v34  ;;  %v897_v1 = vmax.f32 %v895_v32, %v896_v47  ;;  %v891_v6 = vrot.slane %v890_v59, 1 }
 0x1eb   :  { %v1010_v20 = vsel %vm1009_vm8, %v1004_v7, %v1008_v15  ;;  %v790_v24 = vpop.f32.mrf.mxu0  ;;  %v809_v25 = vpop.f32.mrf.mxu1  ;;  %v882_v43 = vrot.slane %v881_v28, 2  ;;  %v832_v52 = vmax.f32 %v751_v38, 0.0  ;;  %v833_v53 = vmax.f32 %v770_v40, 0.0 }
 0x1ec   :  { %v6129_v26 = vsel %vm1011_vm9, %v1004_v7, %v1010_v20  ;;  %v791_v29 = vadd.f32 %v790_v24, %v6101_v22  ;;  %v810_v30 = vadd.f32 %v809_v25, %v6104_v27  ;;  %v898_v9 = vrot.slane %v897_v1, 1 }
 0x1ed   :  { %v883_v49 = vmax.f32 %v881_v28, %v882_v43  ;;  %v892_v19 = vmax.f32 %v890_v59, %v891_v6 }
 0x1ee   :  { %v842_v36 = vmax.f32 %v791_v29, 0.0  ;;  %v843_v37 = vmax.f32 %v810_v30, 0.0  ;;  %v899_v20 = vmax.f32 %v897_v1, %v898_v9 }
 0x1ef   :  { %v884_v3 = vrot.slane %v883_v49, 1  ;;  %v978_v31 = vrot.slane %v892_v19, 4 }
 0x1f0   :  { %v752_v41 = vpop.f32.mrf.mxu2  ;;  %v771_v42 = vpop.f32.mrf.mxu3  ;;  %v942_v44 = vmax.f32 %v834_v33, %v842_v36  ;;  %v949_v45 = vmax.f32 %v835_v35, %v843_v37  ;;  %v979_v32 = vrot.slane %v899_v20, 2 }
 0x1f1   :  { %v753_v22 = vadd.f32 %v752_v41, %v6110_v39  ;;  %v772_v27 = vadd.f32 %v771_v42, %v6098_v18  ;;  %v875_v39 = vrot.slane %v874_v48, 2  ;;  %v885_v11 = vmax.f32 %v883_v49, %v884_v3 }
 0x1f2   :  { %v943_v51 = vrot.slane %v942_v44, 4  ;;  %v950_v50 = vrot.slane %v949_v45, 4  ;;  %v992_v41 = vsel %vm988_vm5, %v978_v31, %v979_v32 }
 0x1f3   :  { %v840_v54 = vmax.f32 %v753_v22, 0.0  ;;  %v841_v56 = vmax.f32 %v772_v27, 0.0  ;;  %v876_v10 = vmax.f32 %v874_v48, %v875_v39  ;;  %v977_v25 = vrot.slane %v885_v11, 6 }
 0x1f4   :  { %v944_v57 = vmax.f32 %v942_v44, %v943_v51  ;;  %v951_v60 = vmax.f32 %v949_v45, %v950_v50 }
 0x1f5   :  { %v928_v61 = vmax.f32 %v832_v52, %v840_v54  ;;  %v935_v58 = vmax.f32 %v833_v53, %v841_v56  ;;  %v877_v21 = vrot.slane %v876_v10, 1 }
 0x1f6   :  { %v945_v62 = vrot.slane %v944_v57, 2  ;;  %v952_v63 = vrot.slane %v951_v60, 2 }
 0x1f7   :  { %v929_v2 = vrot.slane %v928_v61, 4  ;;  %v936_v18 = vrot.slane %v935_v58, 4  ;;  %v878_v33 = vmax.f32 %v876_v10, %v877_v21 }
 0x1f8   :  { %v946_v4 = vmax.f32 %v944_v57, %v945_v62  ;;  %v953_v0 = vmax.f32 %v951_v60, %v952_v63 }
 0x1f9   :  { %v930_v55 = vmax.f32 %v928_v61, %v929_v2  ;;  %v937_v5 = vmax.f32 %v935_v58, %v936_v18  ;;  %v991_v36 = vsel %vm986_vm4, %v878_v33, %v977_v25 }
 0x1fa   :  { %v947_v7 = vrot.slane %v946_v4, 1  ;;  %v954_v8 = vrot.slane %v953_v0, 1  ;;  %v993_v43 = vsel %vm158_vm0, %v991_v36, %v992_v41 }
 0x1fb   :  { %v931_v12 = vrot.slane %v930_v55, 2  ;;  %v938_v13 = vrot.slane %v937_v5, 2 }
 0x1fc   :  { %v948_v14 = vmax.f32 %v946_v4, %v947_v7  ;;  %v955_v15 = vmax.f32 %v953_v0, %v954_v8 }
 0x1fd   :  { %v932_v16 = vmax.f32 %v930_v55, %v931_v12  ;;  %v939_v17 = vmax.f32 %v937_v5, %v938_v13 }
 0x1fe   :  { %v984_v28 = vrot.slane %v948_v14, 4  ;;  %v985_v29 = vrot.slane %v955_v15, 2 }
 0x1ff   :  { %v933_v23 = vrot.slane %v932_v16, 1  ;;  %v940_v24 = vrot.slane %v939_v17, 1 }
 0x200   :  { %v998_v37 = vsel %vm988_vm5, %v984_v28, %v985_v29 }
 0x201   :  { %v941_v30 = vmax.f32 %v939_v17, %v940_v24  ;;  %v934_v34 = vmax.f32 %v932_v16, %v933_v23 }
 0x203   :  { %v983_v35 = vrot.slane %v941_v30, 6 }
 0x205   :  { %v997_v38 = vsel %vm986_vm4, %v934_v34, %v983_v35 }
 0x206   :  { %v999_v40 = vsel %vm158_vm0, %v997_v38, %v998_v37 }
 0x207   :  { %v1015_v42 = vrot.slane %v999_v40, 7 }
 0x209   :  { %v1016_v44 = vsel %vm1005_vm6, %v1015_v42, %v993_v43 }
 0x20a   :  { %v1017_v45 = vsel %vm1007_vm7, %v1015_v42, %v1016_v44 }
 0x20b   :  { %v1018_v46 = vsel %vm1009_vm8, %v1015_v42, %v1017_v45 }
 0x20c   :  { %v1019_v22 = vsel %vm1011_vm9, %v1015_v42, %v1018_v46 }
 0x20d   :  { %5949 = dma.done.wait [#allocation5], 32768 }
 0x20e   :  { %5950 = vsyncadd [#allocation5], 4294934528 }
 0x20f   :  { %5951 = dma.done.wait [#allocation5 + $0x1], 8192 }
 0x210   :  { %5952 = vsyncadd [#allocation5 + $0x1], 4294959104  ;;  %1299 = vst [vmem:[#allocation1] ss:$4 sm:$0xff] %v6129_v26  ;;  %v4122_v27 = vld [vmem:[#allocation3 + $0xe0] sm:$0xf] }
 0x211   :  { %1301 = vst [vmem:[#allocation1 + $0x20] ss:$4 sm:$0xff] %v1019_v22  ;;  %v5453_v47 = vld [vmem:[#allocation3 + $0xec] sm:$0xf0]  ;;  %v4250_v48 = vld [vmem:[#allocation3 + $0x1e0] sm:$0xf] }
 0x212   :  { %v4123_v51 = vor.u32 %v5453_v47, %v4122_v27  ;;  %v5485_v50 = vld [vmem:[#allocation3 + $0x1ec] sm:$0xf0]  ;;  %v4378_v52 = vld [vmem:[#allocation3 + $0x2e0] sm:$0xf]  ;;  %s5966_s4 = smov [#allocation14]   ;;  %s3703_s24 = sshll.u32 %s6261_s13, 4  ;;  %s3704_s24 = int_to_ptr.hbm [resolvable:$true] %s3703_s24 }
 0x213   :  { %v5517_v53 = vld [vmem:[#allocation3 + $0x2ec] sm:$0xf0]  ;;  %v4251_v54 = vor.u32 %v5485_v50, %v4250_v48  ;;  %v4106_v49 = vld [vmem:[#allocation3 + $0xc0] sm:$0xf]  ;;  %s3701_s21 = sshll.u32 %s5966_s4, 4  ;;  %s3702_s21 = int_to_ptr.vmem [resolvable:$true] %s3701_s21 }
 0x214   :  { %v4379_v56 = vor.u32 %v5517_v53, %v4378_v52  ;;  %v5449_v57 = vld [vmem:[#allocation3 + $0xcc] sm:$0xf0]  ;;  %v4234_v60 = vld [vmem:[#allocation3 + $0x1c0] sm:$0xf]  ;;  %2615 = vmatpush.bf16.msra.mxu2 %v4123_v51 }
 0x215   :  { %v4107_v61 = vor.u32 %v5449_v57, %v4106_v49  ;;  %v5481_v58 = vld [vmem:[#allocation3 + $0x1cc] sm:$0xf0]  ;;  %v4506_v59 = vld [vmem:[#allocation3 + $0x3e0] sm:$0xf]  ;;  %2628 = vmatpush.bf16.msra.mxu3 %v4251_v54 }
 0x216   :  { %v5549_v62 = vld [vmem:[#allocation3 + $0x3ec] sm:$0xf0]  ;;  %2641 = vmatpush.bf16.msrb.mxu0 %v4379_v56  ;;  %v4235_v26 = vor.u32 %v5481_v58, %v4234_v60  ;;  %v4362_v1 = vld [vmem:[#allocation3 + $0x2c0] sm:$0xf] }
 0x217   :  { %v4507_v63 = vor.u32 %v5549_v62, %v4506_v59  ;;  %v5513_v39 = vld [vmem:[#allocation3 + $0x2cc] sm:$0xf0]  ;;  %v4090_v2 = vld [vmem:[#allocation3 + $0xa0] sm:$0xf] }
 0x218   :  { %v4363_v18 = vor.u32 %v5513_v39, %v4362_v1  ;;  %v5445_v3 = vld [vmem:[#allocation3 + $0xac] sm:$0xf0]  ;;  %v4218_v4 = vld [vmem:[#allocation3 + $0x1a0] sm:$0xf]  ;;  %2616 = vmatpush.bf16.msra.mxu2 %v4107_v61 }
 0x219   :  { %v5477_v0 = vld [vmem:[#allocation3 + $0x1ac] sm:$0xf0]  ;;  %2654 = vmatpush.bf16.msrb.mxu1 %v4507_v63  ;;  %v4490_v55 = vld [vmem:[#allocation3 + $0x3c0] sm:$0xf]  ;;  %v4091_v7 = vor.u32 %v5445_v3, %v4090_v2  ;;  %2629 = vmatpush.bf16.msra.mxu3 %v4235_v26 }
 0x21a   :  { %v5545_v5 = vld [vmem:[#allocation3 + $0x3cc] sm:$0xf0]  ;;  %v4346_v6 = vld [vmem:[#allocation3 + $0x2a0] sm:$0xf]  ;;  %2642 = vmatpush.bf16.msrb.mxu0 %v4363_v18  ;;  %v4219_v13 = vor.u32 %v5477_v0, %v4218_v4 }
 0x21b   :  { %v4491_v8 = vor.u32 %v5545_v5, %v4490_v55  ;;  %v5509_v9 = vld [vmem:[#allocation3 + $0x2ac] sm:$0xf0]  ;;  %v4074_v10 = vld [vmem:[#allocation3 + $0x80] sm:$0xf] }
 0x21c   :  { %v5441_v12 = vld [vmem:[#allocation3 + $0x8c] sm:$0xf0]  ;;  %v4347_v11 = vor.u32 %v5509_v9, %v4346_v6  ;;  %v4202_v14 = vld [vmem:[#allocation3 + $0x180] sm:$0xf]  ;;  %2617 = vmatpush.bf16.msra.mxu2 %v4091_v7 }
 0x21d   :  { %v5473_v15 = vld [vmem:[#allocation3 + $0x18c] sm:$0xf0]  ;;  %v4474_v16 = vld [vmem:[#allocation3 + $0x3a0] sm:$0xf]  ;;  %2655 = vmatpush.bf16.msrb.mxu1 %v4491_v8  ;;  %v4075_v23 = vor.u32 %v5441_v12, %v4074_v10  ;;  %2630 = vmatpush.bf16.msra.mxu3 %v4219_v13 }
 0x21e   :  { %v5541_v17 = vld [vmem:[#allocation3 + $0x3ac] sm:$0xf0]  ;;  %v4330_v19 = vld [vmem:[#allocation3 + $0x280] sm:$0xf]  ;;  %2643 = vmatpush.bf16.msrb.mxu0 %v4347_v11  ;;  %v4203_v28 = vor.u32 %v5473_v15, %v4202_v14 }
 0x21f   :  { %v5505_v20 = vld [vmem:[#allocation3 + $0x28c] sm:$0xf0]  ;;  %v4475_v21 = vor.u32 %v5541_v17, %v4474_v16  ;;  %v4458_v24 = vld [vmem:[#allocation3 + $0x380] sm:$0xf] }
 0x220   :  { %v5537_v25 = vld [vmem:[#allocation3 + $0x38c] sm:$0xf0]  ;;  %v4331_v29 = vor.u32 %v5505_v20, %v4330_v19  ;;  %v4058_v30 = vld [vmem:[#allocation3 + $0x60] sm:$0xf]  ;;  %2618 = vmatpush.bf16.msra.mxu2 %v4075_v23 }
 0x221   :  { %v5437_v31 = vld [vmem:[#allocation3 + $0x6c] sm:$0xf0]  ;;  %v4186_v32 = vld [vmem:[#allocation3 + $0x160] sm:$0xf]  ;;  %2656 = vmatpush.bf16.msrb.mxu1 %v4475_v21  ;;  %v4459_v36 = vor.u32 %v5537_v25, %v4458_v24  ;;  %2631 = vmatpush.bf16.msra.mxu3 %v4203_v28 }
 0x222   :  { %v5469_v33 = vld [vmem:[#allocation3 + $0x16c] sm:$0xf0]  ;;  %v4314_v34 = vld [vmem:[#allocation3 + $0x260] sm:$0xf]  ;;  %v4059_v37 = vor.u32 %v5437_v31, %v4058_v30  ;;  %2644 = vmatpush.bf16.msrb.mxu0 %v4331_v29 }
 0x223   :  { %v5501_v35 = vld [vmem:[#allocation3 + $0x26c] sm:$0xf0]  ;;  %v4442_v38 = vld [vmem:[#allocation3 + $0x360] sm:$0xf]  ;;  %v4187_v41 = vor.u32 %v5469_v33, %v4186_v32 }
 0x224   :  { %v5533_v40 = vld [vmem:[#allocation3 + $0x36c] sm:$0xf0]  ;;  %v4315_v42 = vor.u32 %v5501_v35, %v4314_v34  ;;  %v4042_v43 = vld [vmem:[#allocation3 + $0x40] sm:$0xf]  ;;  %2619 = vmatpush.bf16.msra.mxu2 %v4059_v37 }
 0x225   :  { %v5433_v44 = vld [vmem:[#allocation3 + $0x4c] sm:$0xf0]  ;;  %v4170_v45 = vld [vmem:[#allocation3 + $0x140] sm:$0xf]  ;;  %2657 = vmatpush.bf16.msrb.mxu1 %v4459_v36  ;;  %v4443_v47 = vor.u32 %v5533_v40, %v4442_v38  ;;  %2632 = vmatpush.bf16.msra.mxu3 %v4187_v41 }
 0x226   :  { %v5465_v46 = vld [vmem:[#allocation3 + $0x14c] sm:$0xf0]  ;;  %v4298_v22 = vld [vmem:[#allocation3 + $0x240] sm:$0xf]  ;;  %v4043_v48 = vor.u32 %v5433_v44, %v4042_v43  ;;  %2645 = vmatpush.bf16.msrb.mxu0 %v4315_v42 }
 0x227   :  { %v5497_v27 = vld [vmem:[#allocation3 + $0x24c] sm:$0xf0]  ;;  %v4426_v51 = vld [vmem:[#allocation3 + $0x340] sm:$0xf]  ;;  %v4171_v52 = vor.u32 %v5465_v46, %v4170_v45 }
 0x228   :  { %v5529_v50 = vld [vmem:[#allocation3 + $0x34c] sm:$0xf0]  ;;  %v4299_v53 = vor.u32 %v5497_v27, %v4298_v22  ;;  %v4026_v54 = vld [vmem:[#allocation3 + $0x20] sm:$0xf]  ;;  %2620 = vmatpush.bf16.msra.mxu2 %v4043_v48 }
 0x229   :  { %v5429_v56 = vld [vmem:[#allocation3 + $0x2c] sm:$0xf0]  ;;  %v4154_v49 = vld [vmem:[#allocation3 + $0x120] sm:$0xf]  ;;  %2658 = vmatpush.bf16.msrb.mxu1 %v4443_v47  ;;  %v4427_v58 = vor.u32 %v5529_v50, %v4426_v51  ;;  %2633 = vmatpush.bf16.msra.mxu3 %v4171_v52 }
 0x22a   :  { %v5461_v57 = vld [vmem:[#allocation3 + $0x12c] sm:$0xf0]  ;;  %v4282_v60 = vld [vmem:[#allocation3 + $0x220] sm:$0xf]  ;;  %v4027_v62 = vor.u32 %v5429_v56, %v4026_v54  ;;  %2646 = vmatpush.bf16.msrb.mxu0 %v4299_v53 }
 0x22b   :  { %v5493_v61 = vld [vmem:[#allocation3 + $0x22c] sm:$0xf0]  ;;  %v4010_v59 = vld [vmem:[#allocation3] sm:$0xf]  ;;  %v4155_v39 = vor.u32 %v5461_v57, %v4154_v49 }
 0x22c   :  { %v5425_v26 = vld [vmem:[#allocation3 + $0xc] sm:$0xf0]  ;;  %v4410_v63 = vld [vmem:[#allocation3 + $0x320] sm:$0xf]  ;;  %v4283_v2 = vor.u32 %v5493_v61, %v4282_v60  ;;  %2621 = vmatpush.bf16.msra.mxu2 %v4027_v62 }
 0x22d   :  { %v5525_v1 = vld [vmem:[#allocation3 + $0x32c] sm:$0xf0]  ;;  %v4138_v18 = vld [vmem:[#allocation3 + $0x100] sm:$0xf]  ;;  %2659 = vmatpush.bf16.msrb.mxu1 %v4427_v58  ;;  %v4011_v10 = vor.u32 %v5425_v26, %v4010_v59  ;;  %2634 = vmatpush.bf16.msra.mxu3 %v4155_v39 }
 0x22e   :  { %v5457_v3 = vld [vmem:[#allocation3 + $0x10c] sm:$0xf0]  ;;  %v4634_v4 = vld [vmem:[#allocation3 + $0x4e0] sm:$0xf]  ;;  %v4411_v6 = vor.u32 %v5525_v1, %v4410_v63  ;;  %2647 = vmatpush.bf16.msrb.mxu0 %v4283_v2 }
 0x22f   :  { %v5581_v0 = vld [vmem:[#allocation3 + $0x4ec] sm:$0xf0]  ;;  %v4762_v55 = vld [vmem:[#allocation3 + $0x5e0] sm:$0xf]  ;;  %v4139_v14 = vor.u32 %v5457_v3, %v4138_v18 }
 0x230   :  { %v5613_v5 = vld [vmem:[#allocation3 + $0x5ec] sm:$0xf0]  ;;  %v4266_v7 = vld [vmem:[#allocation3 + $0x200] sm:$0xf]  ;;  %v4635_v15 = vor.u32 %v5581_v0, %v4634_v4  ;;  %2622 = vmatpush.bf16.msra.mxu2 %v4011_v10 }
 0x231   :  { %v5489_v8 = vld [vmem:[#allocation3 + $0x20c] sm:$0xf0]  ;;  %v4890_v9 = vld [vmem:[#allocation3 + $0x6e0] sm:$0xf]  ;;  %v4763_v19 = vor.u32 %v5613_v5, %v4762_v55  ;;  %2660 = vmatpush.bf16.msrb.mxu1 %v4411_v6  ;;  %2635 = vmatpush.bf16.msra.mxu3 %v4139_v14 }
 0x232   :  { %v5645_v12 = vld [vmem:[#allocation3 + $0x6ec] sm:$0xf0]  ;;  %v4394_v13 = vld [vmem:[#allocation3 + $0x300] sm:$0xf]  ;;  %v4267_v20 = vor.u32 %v5489_v8, %v4266_v7 }
 0x233   :  { %v5521_v11 = vld [vmem:[#allocation3 + $0x30c] sm:$0xf0]  ;;  %v5018_v16 = vld [vmem:[#allocation3 + $0x7e0] sm:$0xf]  ;;  %v4891_v24 = vor.u32 %v5645_v12, %v4890_v9 }
 0x234   :  { %v5677_v17 = vld [vmem:[#allocation3 + $0x7ec] sm:$0xf0]  ;;  %v4618_v21 = vld [vmem:[#allocation3 + $0x4c0] sm:$0xf]  ;;  %v4395_v25 = vor.u32 %v5521_v11, %v4394_v13  ;;  %2667 = vmatpush.bf16.msrb.mxu2 %v4635_v15  ;;  %2648 = vmatpush.bf16.msrb.mxu0 %v4267_v20 }
 0x235   :  { %v5577_v23 = vld [vmem:[#allocation3 + $0x4cc] sm:$0xf0]  ;;  %v4746_v28 = vld [vmem:[#allocation3 + $0x5c0] sm:$0xf]  ;;  %v5019_v30 = vor.u32 %v5677_v17, %v5018_v16  ;;  %2680 = vmatpush.bf16.msrb.mxu3 %v4763_v19 }
 0x236   :  { %v5609_v29 = vld [vmem:[#allocation3 + $0x5cc] sm:$0xf0]  ;;  %v4874_v31 = vld [vmem:[#allocation3 + $0x6c0] sm:$0xf]  ;;  %v4619_v33 = vor.u32 %v5577_v23, %v4618_v21  ;;  %2661 = vmatpush.bf16.msrb.mxu1 %v4395_v25 }
 0x237   :  { %v5641_v32 = vld [vmem:[#allocation3 + $0x6cc] sm:$0xf0]  ;;  %v5002_v34 = vld [vmem:[#allocation3 + $0x7c0] sm:$0xf]  ;;  %v4747_v36 = vor.u32 %v5609_v29, %v4746_v28 }
 0x238   :  { %v5673_v35 = vld [vmem:[#allocation3 + $0x7cc] sm:$0xf0]  ;;  %v4602_v37 = vld [vmem:[#allocation3 + $0x4a0] sm:$0xf]  ;;  %2693 = vmatpush.bf16.msra.mxu0 %v4891_v24  ;;  %v4875_v40 = vor.u32 %v5641_v32, %v4874_v31  ;;  %2668 = vmatpush.bf16.msrb.mxu2 %v4619_v33 }
 0x239   :  { %v5573_v38 = vld [vmem:[#allocation3 + $0x4ac] sm:$0xf0]  ;;  %v4730_v41 = vld [vmem:[#allocation3 + $0x5a0] sm:$0xf]  ;;  %v5003_v44 = vor.u32 %v5673_v35, %v5002_v34  ;;  %2681 = vmatpush.bf16.msrb.mxu3 %v4747_v36 }
 0x23a   :  { %v5605_v42 = vld [vmem:[#allocation3 + $0x5ac] sm:$0xf0]  ;;  %v4858_v43 = vld [vmem:[#allocation3 + $0x6a0] sm:$0xf]  ;;  %2706 = vmatpush.bf16.msra.mxu1 %v5019_v30  ;;  %v4603_v27 = vor.u32 %v5573_v38, %v4602_v37 }
 0x23b   :  { %v5637_v45 = vld [vmem:[#allocation3 + $0x6ac] sm:$0xf0]  ;;  %v4586_v46 = vld [vmem:[#allocation3 + $0x480] sm:$0xf]  ;;  %v4731_v51 = vor.u32 %v5605_v42, %v4730_v41 }
 0x23c   :  { %v4986_v22 = vld [vmem:[#allocation3 + $0x7a0] sm:$0xf]  ;;  %v5669_v47 = vld [vmem:[#allocation3 + $0x7ac] sm:$0xf0]  ;;  %2694 = vmatpush.bf16.msra.mxu0 %v4875_v40  ;;  %v4859_v54 = vor.u32 %v5637_v45, %v4858_v43  ;;  %2669 = vmatpush.bf16.msrb.mxu2 %v4603_v27  ;;  %v5451_v45 = vld [vmem:[#allocation3 + $0xe4] sm:$0xf] }
 0x23d   :  { %v1302_v48 = vld.sshfl [vmem:[#allocation1] sm:$0xff pattern:$0x73625140]  ;;  %v5569_v50 = vld [vmem:[#allocation3 + $0x48c] sm:$0xf0]  ;;  %v4987_v60 = vor.u32 %v5669_v47, %v4986_v22  ;;  %2682 = vmatpush.bf16.msrb.mxu3 %v4731_v51 }
 0x23e   :  { %v6148_v52 = vpack.c.bf16 %v1302_v48, %v1302_v48  ;;  %v1303_v53 = vld.sshfl [vmem:[#allocation1 + $0x8] sm:$0xff pattern:$0x73625140]  ;;  %v5601_v49 = vld [vmem:[#allocation3 + $0x58c] sm:$0xf0]  ;;  %2707 = vmatpush.bf16.msra.mxu1 %v5003_v44  ;;  %v4587_v59 = vor.u32 %v5569_v50, %v4586_v46 }
 0x23f   :  { %v4714_v56 = vld [vmem:[#allocation3 + $0x580] sm:$0xf]  ;;  %v6150_v57 = vpack.c.bf16 %v1303_v53, %v1303_v53  ;;  %v5633_v58 = vld [vmem:[#allocation3 + $0x68c] sm:$0xf0]  ;;  %v4124_v22 = vld [vmem:[#allocation3 + $0xf0] sm:$0xf0] }
 0x240   :  { %v4842_v61 = vld [vmem:[#allocation3 + $0x680] sm:$0xf]  ;;  %2623 = vmatmul.bf16.vlgmr.msra.gmra.mxu2 %v6148_v52  ;;  %v5665_v26 = vld [vmem:[#allocation3 + $0x78c] sm:$0xf0]  ;;  %v4715_v63 = vor.u32 %v5601_v49, %v4714_v56  ;;  %2695 = vmatpush.bf16.msra.mxu0 %v4859_v54  ;;  %v5483_v27 = vld [vmem:[#allocation3 + $0x1e4] sm:$0xf] }
 0x241   :  { %v4970_v62 = vld [vmem:[#allocation3 + $0x780] sm:$0xf]  ;;  %2636 = vmatmul.bf16.vlgmr.msra.gmra.mxu3 %v6150_v57  ;;  %v5565_v39 = vld [vmem:[#allocation3 + $0x46c] sm:$0xf0]  ;;  %v4843_v2 = vor.u32 %v5633_v58, %v4842_v61  ;;  %2670 = vmatpush.bf16.msrb.mxu2 %v4587_v59  ;;  %v4252_v47 = vld [vmem:[#allocation3 + $0x1f0] sm:$0xf0] }
 0x242   :  { %v4570_v1 = vld [vmem:[#allocation3 + $0x460] sm:$0xf]  ;;  %v5597_v3 = vld [vmem:[#allocation3 + $0x56c] sm:$0xf0]  ;;  %2708 = vmatpush.bf16.msra.mxu1 %v4987_v60  ;;  %v4971_v4 = vor.u32 %v5665_v26, %v4970_v62  ;;  %2683 = vmatpush.bf16.msrb.mxu3 %v4715_v63  ;;  %v5515_v53 = vld [vmem:[#allocation3 + $0x2e4] sm:$0xf]  ;;  %v4127_v63 = vor.u32 %v5451_v45, %v4124_v22 }
 0x243   :  { %v4698_v18 = vld [vmem:[#allocation3 + $0x560] sm:$0xf]  ;;  %v5629_v55 = vld [vmem:[#allocation3 + $0x66c] sm:$0xf0]  ;;  %v4571_v5 = vor.u32 %v5565_v39, %v4570_v1  ;;  %v4380_v56 = vld [vmem:[#allocation3 + $0x2f0] sm:$0xf0] }
 0x244   :  { %v4826_v0 = vld [vmem:[#allocation3 + $0x660] sm:$0xf]  ;;  %v5661_v8 = vld [vmem:[#allocation3 + $0x76c] sm:$0xf0]  ;;  %v4699_v9 = vor.u32 %v5597_v3, %v4698_v18  ;;  %2696 = vmatpush.bf16.msra.mxu0 %v4843_v2  ;;  %v5447_v58 = vld [vmem:[#allocation3 + $0xc4] sm:$0xf]  ;;  %v4255_v18 = vor.u32 %v5483_v27, %v4252_v47 }
 0x245   :  { %v4554_v6 = vld [vmem:[#allocation3 + $0x440] sm:$0xf]  ;;  %v5561_v10 = vld [vmem:[#allocation3 + $0x44c] sm:$0xf0]  ;;  %v4827_v13 = vor.u32 %v5629_v55, %v4826_v0  ;;  %2671 = vmatpush.bf16.msrb.mxu2 %v4571_v5  ;;  %v4108_v59 = vld [vmem:[#allocation3 + $0xd0] sm:$0xf0]  ;;  %v4383_v55 = vor.u32 %v5515_v53, %v4380_v56 }
 0x246   :  { %v4954_v7 = vld [vmem:[#allocation3 + $0x760] sm:$0xf]  ;;  %v1304_v12 = vld.sshfl [vmem:[#allocation1 + $0x10] sm:$0xff pattern:$0x73625140]  ;;  %2709 = vmatpush.bf16.msra.mxu1 %v4971_v4  ;;  %v4555_v21 = vor.u32 %v5561_v10, %v4554_v6  ;;  %2684 = vmatpush.bf16.msrb.mxu3 %v4699_v9 }
 0x247   :  { %v4682_v11 = vld [vmem:[#allocation3 + $0x540] sm:$0xf]  ;;  %v5593_v14 = vld [vmem:[#allocation3 + $0x54c] sm:$0xf0]  ;;  %v6154_v16 = vpack.c.bf16 %v1304_v12, %v1304_v12  ;;  %v4955_v17 = vor.u32 %v5661_v8, %v4954_v7  ;;  %v5547_v62 = vld [vmem:[#allocation3 + $0x3e4] sm:$0xf] }
 0x248   :  { %v4810_v15 = vld [vmem:[#allocation3 + $0x640] sm:$0xf]  ;;  %v5625_v19 = vld [vmem:[#allocation3 + $0x64c] sm:$0xf0]  ;;  %v4683_v28 = vor.u32 %v5593_v14, %v4682_v11  ;;  %2697 = vmatpush.bf16.msra.mxu0 %v4827_v13  ;;  %v5479_v1 = vld [vmem:[#allocation3 + $0x1c4] sm:$0xf]  ;;  %v4111_v13 = vor.u32 %v5447_v58, %v4108_v59 }
 0x249   :  { %v1305_v20 = vld.sshfl [vmem:[#allocation1 + $0x18] sm:$0xff pattern:$0x73625140]  ;;  %v4938_v23 = vld [vmem:[#allocation3 + $0x740] sm:$0xf]  ;;  %2649 = vmatmul.bf16.vlgmr.msrb.gmra.mxu0 %v6154_v16  ;;  %v4811_v31 = vor.u32 %v5625_v19, %v4810_v15  ;;  %2672 = vmatpush.bf16.msrb.mxu2 %v4555_v21 }
 0x24a   :  { %v5657_v24 = vld [vmem:[#allocation3 + $0x74c] sm:$0xf0]  ;;  %v6157_v25 = vpack.c.bf16 %v1305_v20, %v1305_v20  ;;  %v4538_v29 = vld [vmem:[#allocation3 + $0x420] sm:$0xf]  ;;  %2710 = vmatpush.bf16.msra.mxu1 %v4955_v17  ;;  %2685 = vmatpush.bf16.msrb.mxu3 %v4683_v28  ;;  %v4508_v39 = vld [vmem:[#allocation3 + $0x3f0] sm:$0xf0] }
 0x24b   :  { %v5557_v30 = vld [vmem:[#allocation3 + $0x42c] sm:$0xf0]  ;;  %v4666_v32 = vld [vmem:[#allocation3 + $0x520] sm:$0xf]  ;;  %v4939_v35 = vor.u32 %v5657_v24, %v4938_v23  ;;  %v4236_v4 = vld [vmem:[#allocation3 + $0x1d0] sm:$0xf0]  ;;  %v4511_v8 = vor.u32 %v5547_v62, %v4508_v39 }
 0x24c   :  { %v5589_v33 = vld [vmem:[#allocation3 + $0x52c] sm:$0xf0]  ;;  %v4794_v34 = vld [vmem:[#allocation3 + $0x620] sm:$0xf]  ;;  %2662 = vmatmul.bf16.vlgmr.msrb.gmra.mxu1 %v6157_v25  ;;  %v4539_v40 = vor.u32 %v5557_v30, %v4538_v29  ;;  %2698 = vmatpush.bf16.msra.mxu0 %v4811_v31  ;;  %v5511_v6 = vld [vmem:[#allocation3 + $0x2c4] sm:$0xf]  ;;  %v4239_v17 = vor.u32 %v5479_v1, %v4236_v4 }
 0x24d   :  { %v5621_v36 = vld [vmem:[#allocation3 + $0x62c] sm:$0xf0]  ;;  %v4522_v37 = vld [vmem:[#allocation3 + $0x400] sm:$0xf]  ;;  %v4667_v46 = vor.u32 %v5589_v33, %v4666_v32  ;;  %v4364_v9 = vld [vmem:[#allocation3 + $0x2d0] sm:$0xf0] }
 0x24e   :  { %v5553_v38 = vld [vmem:[#allocation3 + $0x40c] sm:$0xf0]  ;;  %v4650_v41 = vld [vmem:[#allocation3 + $0x500] sm:$0xf]  ;;  %v4795_v48 = vor.u32 %v5621_v36, %v4794_v34  ;;  %2711 = vmatpush.bf16.msra.mxu1 %v4939_v35  ;;  %2673 = vmatpush.bf16.msrb.mxu2 %v4539_v40  ;;  %v5543_v11 = vld [vmem:[#allocation3 + $0x3c4] sm:$0xf]  ;;  %v4367_v23 = vor.u32 %v5511_v6, %v4364_v9 }
 0x24f   :  { %v5585_v42 = vld [vmem:[#allocation3 + $0x50c] sm:$0xf0]  ;;  %v4922_v43 = vld [vmem:[#allocation3 + $0x720] sm:$0xf]  ;;  %v4523_v61 = vor.u32 %v5553_v38, %v4522_v37  ;;  %2686 = vmatpush.bf16.msrb.mxu3 %v4667_v46  ;;  %v4492_v14 = vld [vmem:[#allocation3 + $0x3d0] sm:$0xf0] }
 0x250   :  { %v5653_v44 = vld [vmem:[#allocation3 + $0x72c] sm:$0xf0]  ;;  %v4778_v51 = vld [vmem:[#allocation3 + $0x600] sm:$0xf]  ;;  %v4651_v26 = vor.u32 %v5585_v42, %v4650_v41  ;;  %2699 = vmatpush.bf16.msra.mxu0 %v4795_v48  ;;  %v5443_v19 = vld [vmem:[#allocation3 + $0xa4] sm:$0xf]  ;;  %v4495_v30 = vor.u32 %v5543_v11, %v4492_v14 }
 0x251   :  { %v5617_v50 = vld [vmem:[#allocation3 + $0x60c] sm:$0xf0]  ;;  %v4923_v54 = vor.u32 %v5653_v44, %v4922_v43  ;;  %v4906_v49 = vld [vmem:[#allocation3 + $0x700] sm:$0xf]  ;;  %v4092_v20 = vld [vmem:[#allocation3 + $0xb0] sm:$0xf0] }
 0x252   :  { %v5649_v60 = vld [vmem:[#allocation3 + $0x70c] sm:$0xf0]  ;;  %v1306_v2 = vld.sshfl [vmem:[#allocation1 + $0x20] sm:$0xff pattern:$0x73625140]  ;;  %v4779_v3 = vor.u32 %v5617_v50, %v4778_v51  ;;  %2674 = vmatpush.bf16.msrb.mxu2 %v4523_v61  ;;  %v4095_v33 = vor.u32 %v5443_v19, %v4092_v20 }
 0x253   :  { %v1307_v0 = vld.sshfl [vmem:[#allocation1 + $0x28] sm:$0xff pattern:$0x73625140]  ;;  %2712 = vmatpush.bf16.msra.mxu1 %v4923_v54  ;;  %v4907_v5 = vor.u32 %v5649_v60, %v4906_v49  ;;  %v1308_v7 = vld.sshfl [vmem:[#allocation1 + $0x30] sm:$0xff pattern:$0x73625140]  ;;  %v6160_v10 = vpack.c.bf16 %v1306_v2, %v1306_v2  ;;  %2687 = vmatpush.bf16.msrb.mxu3 %v4651_v26 }
 0x254   :  { %v1309_v12 = vld.sshfl [vmem:[#allocation1 + $0x38] sm:$0xff pattern:$0x73625140]  ;;  %v6162_v15 = vpack.c.bf16 %v1307_v0, %v1307_v0  ;;  %2700 = vmatpush.bf16.msra.mxu0 %v4779_v3  ;;  %v6164_v21 = vpack.c.bf16 %v1308_v7, %v1308_v7  ;;  %v5475_v24 = vld [vmem:[#allocation3 + $0x1a4] sm:$0xf] }
 0x255   :  { %v4220_v28 = vld [vmem:[#allocation3 + $0x1b0] sm:$0xf0]  ;;  %v6166_v29 = vpack.c.bf16 %v1309_v12, %v1309_v12  ;;  %2675 = vmatmul.bf16.vlgmr.msrb.gmra.mxu2 %v6160_v10  ;;  %v5507_v31 = vld [vmem:[#allocation3 + $0x2a4] sm:$0xf] }
 0x256   :  { %2719 = vmatpush.bf16.msra.mxu2 %v4127_v63  ;;  %v4348_v32 = vld [vmem:[#allocation3 + $0x2b0] sm:$0xf0]  ;;  %2688 = vmatmul.bf16.vlgmr.msrb.gmra.mxu3 %v6162_v15  ;;  %v5539_v34 = vld [vmem:[#allocation3 + $0x3a4] sm:$0xf]  ;;  %v4223_v36 = vor.u32 %v5475_v24, %v4220_v28 }
 0x257   :  { %2732 = vmatpush.bf16.msra.mxu3 %v4255_v18  ;;  %2713 = vmatpush.bf16.msra.mxu1 %v4907_v5  ;;  %v4476_v35 = vld [vmem:[#allocation3 + $0x3b0] sm:$0xf0]  ;;  %v5439_v37 = vld [vmem:[#allocation3 + $0x84] sm:$0xf]  ;;  %v4351_v40 = vor.u32 %v5507_v31, %v4348_v32 }
 0x258   :  { %2745 = vmatpush.bf16.msrb.mxu0 %v4383_v55  ;;  %v4076_v38 = vld [vmem:[#allocation3 + $0x90] sm:$0xf0]  ;;  %v5471_v41 = vld [vmem:[#allocation3 + $0x184] sm:$0xf]  ;;  %v4479_v43 = vor.u32 %v5539_v34, %v4476_v35 }
 0x259   :  { %2701 = vmatmul.bf16.vlgmr.msra.gmra.mxu0 %v6164_v21  ;;  %v4204_v42 = vld [vmem:[#allocation3 + $0x190] sm:$0xf0]  ;;  %v5503_v44 = vld [vmem:[#allocation3 + $0x284] sm:$0xf]  ;;  %v4079_v46 = vor.u32 %v5439_v37, %v4076_v38 }
 0x25a   :  { %2720 = vmatpush.bf16.msra.mxu2 %v4111_v13  ;;  %v4332_v45 = vld [vmem:[#allocation3 + $0x290] sm:$0xf0]  ;;  %v5535_v22 = vld [vmem:[#allocation3 + $0x384] sm:$0xf]  ;;  %v4207_v47 = vor.u32 %v5471_v41, %v4204_v42 }
 0x25b   :  { %2758 = vmatpush.bf16.msrb.mxu1 %v4511_v8  ;;  %2733 = vmatpush.bf16.msra.mxu3 %v4239_v17  ;;  %v4460_v27 = vld [vmem:[#allocation3 + $0x390] sm:$0xf0]  ;;  %v5435_v48 = vld [vmem:[#allocation3 + $0x64] sm:$0xf]  ;;  %v4335_v50 = vor.u32 %v5503_v44, %v4332_v45 }
 0x25c   :  { %2746 = vmatpush.bf16.msrb.mxu0 %v4367_v23  ;;  %2714 = vmatmul.bf16.vlgmr.msra.gmra.mxu1 %v6166_v29  ;;  %v4060_v51 = vld [vmem:[#allocation3 + $0x70] sm:$0xf0]  ;;  %v5467_v53 = vld [vmem:[#allocation3 + $0x164] sm:$0xf]  ;;  %v4463_v56 = vor.u32 %v5535_v22, %v4460_v27 }
 0x25d   :  { %v4188_v54 = vld [vmem:[#allocation3 + $0x170] sm:$0xf0]  ;;  %v5499_v49 = vld [vmem:[#allocation3 + $0x264] sm:$0xf]  ;;  %v4063_v61 = vor.u32 %v5435_v48, %v4060_v51 }
 0x25e   :  { %2721 = vmatpush.bf16.msra.mxu2 %v4095_v33  ;;  %v4316_v60 = vld [vmem:[#allocation3 + $0x270] sm:$0xf0]  ;;  %v5531_v58 = vld [vmem:[#allocation3 + $0x364] sm:$0xf]  ;;  %v4191_v62 = vor.u32 %v5467_v53, %v4188_v54 }
 0x25f   :  { %2759 = vmatpush.bf16.msrb.mxu1 %v4495_v30  ;;  %2734 = vmatpush.bf16.msra.mxu3 %v4223_v36  ;;  %v4444_v59 = vld [vmem:[#allocation3 + $0x370] sm:$0xf0]  ;;  %v5431_v26 = vld [vmem:[#allocation3 + $0x44] sm:$0xf]  ;;  %v4319_v1 = vor.u32 %v5499_v49, %v4316_v60 }
 0x260   :  { %2747 = vmatpush.bf16.msrb.mxu0 %v4351_v40  ;;  %v4044_v63 = vld [vmem:[#allocation3 + $0x50] sm:$0xf0]  ;;  %v5463_v39 = vld [vmem:[#allocation3 + $0x144] sm:$0xf]  ;;  %v4447_v18 = vor.u32 %v5531_v58, %v4444_v59 }
 0x261   :  { %v4172_v2 = vld [vmem:[#allocation3 + $0x150] sm:$0xf0]  ;;  %v5495_v3 = vld [vmem:[#allocation3 + $0x244] sm:$0xf]  ;;  %v4047_v0 = vor.u32 %v5431_v26, %v4044_v63 }
 0x262   :  { %2722 = vmatpush.bf16.msra.mxu2 %v4079_v46  ;;  %v4300_v4 = vld [vmem:[#allocation3 + $0x250] sm:$0xf0]  ;;  %v5527_v55 = vld [vmem:[#allocation3 + $0x344] sm:$0xf]  ;;  %v4175_v6 = vor.u32 %v5463_v39, %v4172_v2 }
 0x263   :  { %2760 = vmatpush.bf16.msrb.mxu1 %v4479_v43  ;;  %2735 = vmatpush.bf16.msra.mxu3 %v4207_v47  ;;  %v4428_v5 = vld [vmem:[#allocation3 + $0x350] sm:$0xf0]  ;;  %v5427_v7 = vld [vmem:[#allocation3 + $0x24] sm:$0xf]  ;;  %v4303_v9 = vor.u32 %v5495_v3, %v4300_v4 }
 0x264   :  { %2748 = vmatpush.bf16.msrb.mxu0 %v4335_v50  ;;  %v4028_v8 = vld [vmem:[#allocation3 + $0x30] sm:$0xf0]  ;;  %v5459_v12 = vld [vmem:[#allocation3 + $0x124] sm:$0xf]  ;;  %v4431_v11 = vor.u32 %v5527_v55, %v4428_v5 }
 0x265   :  { %v4156_v13 = vld [vmem:[#allocation3 + $0x130] sm:$0xf0]  ;;  %v5491_v14 = vld [vmem:[#allocation3 + $0x224] sm:$0xf]  ;;  %v4031_v20 = vor.u32 %v5427_v7, %v4028_v8 }
 0x266   :  { %2723 = vmatpush.bf16.msra.mxu2 %v4063_v61  ;;  %v4284_v17 = vld [vmem:[#allocation3 + $0x230] sm:$0xf0]  ;;  %v5423_v19 = vld [vmem:[#allocation3 + $0x4] sm:$0xf]  ;;  %v4159_v30 = vor.u32 %v5459_v12, %v4156_v13 }
 0x267   :  { %2761 = vmatpush.bf16.msrb.mxu1 %v4463_v56  ;;  %2736 = vmatpush.bf16.msra.mxu3 %v4191_v62  ;;  %v4012_v23 = vld [vmem:[#allocation3 + $0x10] sm:$0xf0]  ;;  %v5523_v24 = vld [vmem:[#allocation3 + $0x324] sm:$0xf]  ;;  %v4287_v34 = vor.u32 %v5491_v14, %v4284_v17 }
 0x268   :  { %2749 = vmatpush.bf16.msrb.mxu0 %v4319_v1  ;;  %v4412_v28 = vld [vmem:[#allocation3 + $0x330] sm:$0xf0]  ;;  %v5455_v31 = vld [vmem:[#allocation3 + $0x104] sm:$0xf]  ;;  %v4015_v43 = vor.u32 %v5423_v19, %v4012_v23 }
 0x269   :  { %v4140_v32 = vld [vmem:[#allocation3 + $0x110] sm:$0xf0]  ;;  %v5579_v33 = vld [vmem:[#allocation3 + $0x4e4] sm:$0xf]  ;;  %v4415_v38 = vor.u32 %v5523_v24, %v4412_v28 }
 0x26a   :  { %2724 = vmatpush.bf16.msra.mxu2 %v4047_v0  ;;  %v4636_v35 = vld [vmem:[#allocation3 + $0x4f0] sm:$0xf0]  ;;  %v5611_v36 = vld [vmem:[#allocation3 + $0x5e4] sm:$0xf]  ;;  %v4143_v22 = vor.u32 %v5455_v31, %v4140_v32 }
 0x26b   :  { %2762 = vmatpush.bf16.msrb.mxu1 %v4447_v18  ;;  %2737 = vmatpush.bf16.msra.mxu3 %v4175_v6  ;;  %v4764_v37 = vld [vmem:[#allocation3 + $0x5f0] sm:$0xf0]  ;;  %v5487_v40 = vld [vmem:[#allocation3 + $0x204] sm:$0xf]  ;;  %v4639_v27 = vor.u32 %v5579_v33, %v4636_v35 }
 0x26c   :  { %2750 = vmatpush.bf16.msrb.mxu0 %v4303_v9  ;;  %v4268_v41 = vld [vmem:[#allocation3 + $0x210] sm:$0xf0]  ;;  %v5643_v42 = vld [vmem:[#allocation3 + $0x6e4] sm:$0xf]  ;;  %v4767_v51 = vor.u32 %v5611_v36, %v4764_v37 }
 0x26d   :  { %v4892_v44 = vld [vmem:[#allocation3 + $0x6f0] sm:$0xf0]  ;;  %v5519_v45 = vld [vmem:[#allocation3 + $0x304] sm:$0xf]  ;;  %v4271_v50 = vor.u32 %v5487_v40, %v4268_v41 }
 0x26e   :  { %2725 = vmatpush.bf16.msra.mxu2 %v4031_v20  ;;  %v4396_v46 = vld [vmem:[#allocation3 + $0x310] sm:$0xf0]  ;;  %v5675_v47 = vld [vmem:[#allocation3 + $0x7e4] sm:$0xf]  ;;  %v4895_v56 = vor.u32 %v5643_v42, %v4892_v44 }
 0x26f   :  { %2763 = vmatpush.bf16.msrb.mxu1 %v4431_v11  ;;  %2738 = vmatpush.bf16.msra.mxu3 %v4159_v30  ;;  %v5020_v48 = vld [vmem:[#allocation3 + $0x7f0] sm:$0xf0]  ;;  %v5575_v53 = vld [vmem:[#allocation3 + $0x4c4] sm:$0xf]  ;;  %v4399_v49 = vor.u32 %v5519_v45, %v4396_v46 }
 0x270   :  { %2751 = vmatpush.bf16.msrb.mxu0 %v4287_v34  ;;  %v4620_v54 = vld [vmem:[#allocation3 + $0x4d0] sm:$0xf0]  ;;  %v5607_v60 = vld [vmem:[#allocation3 + $0x5c4] sm:$0xf]  ;;  %v5023_v58 = vor.u32 %v5675_v47, %v5020_v48 }
 0x271   :  { %v4748_v61 = vld [vmem:[#allocation3 + $0x5d0] sm:$0xf0]  ;;  %v5639_v59 = vld [vmem:[#allocation3 + $0x6c4] sm:$0xf]  ;;  %v4623_v26 = vor.u32 %v5575_v53, %v4620_v54 }
 0x272   :  { %2726 = vmatpush.bf16.msra.mxu2 %v4015_v43  ;;  %v4876_v62 = vld [vmem:[#allocation3 + $0x6d0] sm:$0xf0]  ;;  %v5671_v63 = vld [vmem:[#allocation3 + $0x7c4] sm:$0xf]  ;;  %v4751_v39 = vor.u32 %v5607_v60, %v4748_v61 }
 0x273   :  { %2764 = vmatpush.bf16.msrb.mxu1 %v4415_v38  ;;  %2739 = vmatpush.bf16.msra.mxu3 %v4143_v22  ;;  %v5004_v1 = vld [vmem:[#allocation3 + $0x7d0] sm:$0xf0]  ;;  %v5571_v2 = vld [vmem:[#allocation3 + $0x4a4] sm:$0xf]  ;;  %v4879_v3 = vor.u32 %v5639_v59, %v4876_v62 }
 0x274   :  { %2752 = vmatpush.bf16.msrb.mxu0 %v4271_v50  ;;  %v4604_v18 = vld [vmem:[#allocation3 + $0x4b0] sm:$0xf0]  ;;  %v5603_v4 = vld [vmem:[#allocation3 + $0x5a4] sm:$0xf]  ;;  %v5007_v55 = vor.u32 %v5671_v63, %v5004_v1 }
 0x275   :  { %v4732_v0 = vld [vmem:[#allocation3 + $0x5b0] sm:$0xf0]  ;;  %v5635_v5 = vld [vmem:[#allocation3 + $0x6a4] sm:$0xf]  ;;  %2727 = vmatmul.bf16.vlgmr.msra.gmra.mxu2 %v6148_v52  ;;  %v4607_v7 = vor.u32 %v5571_v2, %v4604_v18 }
 0x276   :  { %2771 = vmatpush.bf16.msrb.mxu2 %v4639_v27  ;;  %v4860_v6 = vld [vmem:[#allocation3 + $0x6b0] sm:$0xf0]  ;;  %v5667_v8 = vld [vmem:[#allocation3 + $0x7a4] sm:$0xf]  ;;  %2740 = vmatmul.bf16.vlgmr.msra.gmra.mxu3 %v6150_v57  ;;  %v4735_v12 = vor.u32 %v5603_v4, %v4732_v0 }
 0x277   :  { %2784 = vmatpush.bf16.msrb.mxu3 %v4767_v51  ;;  %2765 = vmatpush.bf16.msrb.mxu1 %v4399_v49  ;;  %v4988_v9 = vld [vmem:[#allocation3 + $0x7b0] sm:$0xf0]  ;;  %v5567_v13 = vld [vmem:[#allocation3 + $0x484] sm:$0xf]  ;;  %v4863_v14 = vor.u32 %v5635_v5, %v4860_v6 }
 0x278   :  { %2797 = vmatpush.bf16.msra.mxu0 %v4895_v56  ;;  %v4588_v11 = vld [vmem:[#allocation3 + $0x490] sm:$0xf0]  ;;  %v5599_v17 = vld [vmem:[#allocation3 + $0x584] sm:$0xf]  ;;  %v4991_v20 = vor.u32 %v5667_v8, %v4988_v9  ;;  %v4130_v8 = vld [vmem:[#allocation3 + $0xe8] sm:$0xf] }
 0x279   :  { %2753 = vmatmul.bf16.vlgmr.msrb.gmra.mxu0 %v6154_v16  ;;  %v4716_v19 = vld [vmem:[#allocation3 + $0x590] sm:$0xf0]  ;;  %v5631_v23 = vld [vmem:[#allocation3 + $0x684] sm:$0xf]  ;;  %v4591_v28 = vor.u32 %v5567_v13, %v4588_v11  ;;  %v5454_v9 = vld [vmem:[#allocation3 + $0xf4] sm:$0xf0] }
 0x27a   :  { %2772 = vmatpush.bf16.msrb.mxu2 %v4623_v26  ;;  %2766 = vmatmul.bf16.vlgmr.msrb.gmra.mxu1 %v6157_v25  ;;  %v4844_v24 = vld [vmem:[#allocation3 + $0x690] sm:$0xf0]  ;;  %v5663_v30 = vld [vmem:[#allocation3 + $0x784] sm:$0xf]  ;;  %v4719_v32 = vor.u32 %v5599_v17, %v4716_v19  ;;  %v5486_v11 = vld [vmem:[#allocation3 + $0x1f4] sm:$0xf0] }
 0x27b   :  { %2810 = vmatpush.bf16.msra.mxu1 %v5023_v58  ;;  %2785 = vmatpush.bf16.msrb.mxu3 %v4751_v39  ;;  %v4972_v31 = vld [vmem:[#allocation3 + $0x790] sm:$0xf0]  ;;  %v5563_v33 = vld [vmem:[#allocation3 + $0x464] sm:$0xf]  ;;  %v4847_v35 = vor.u32 %v5631_v23, %v4844_v24  ;;  %v5518_v23 = vld [vmem:[#allocation3 + $0x2f4] sm:$0xf0] }
 0x27c   :  { %2798 = vmatpush.bf16.msra.mxu0 %v4879_v3  ;;  %v4572_v34 = vld [vmem:[#allocation3 + $0x470] sm:$0xf0]  ;;  %v5595_v36 = vld [vmem:[#allocation3 + $0x564] sm:$0xf]  ;;  %v4975_v38 = vor.u32 %v5663_v30, %v4972_v31 }
 0x27d   :  { %v4700_v37 = vld [vmem:[#allocation3 + $0x570] sm:$0xf0]  ;;  %v5627_v40 = vld [vmem:[#allocation3 + $0x664] sm:$0xf]  ;;  %v4575_v42 = vor.u32 %v5563_v33, %v4572_v34 }
 0x27e   :  { %2773 = vmatpush.bf16.msrb.mxu2 %v4607_v7  ;;  %v4828_v41 = vld [vmem:[#allocation3 + $0x670] sm:$0xf0]  ;;  %v5659_v43 = vld [vmem:[#allocation3 + $0x764] sm:$0xf]  ;;  %v4703_v45 = vor.u32 %v5595_v36, %v4700_v37  ;;  %v4514_v36 = vld [vmem:[#allocation3 + $0x3e8] sm:$0xf] }
 0x27f   :  { %2811 = vmatpush.bf16.msra.mxu1 %v5007_v55  ;;  %2786 = vmatpush.bf16.msrb.mxu3 %v4735_v12  ;;  %v4956_v44 = vld [vmem:[#allocation3 + $0x770] sm:$0xf0]  ;;  %v5559_v46 = vld [vmem:[#allocation3 + $0x444] sm:$0xf]  ;;  %v4831_v27 = vor.u32 %v5627_v40, %v4828_v41  ;;  %v4258_v12 = vld [vmem:[#allocation3 + $0x1e8] sm:$0xf] }
 0x280   :  { %2799 = vmatpush.bf16.msra.mxu0 %v4863_v14  ;;  %v4556_v22 = vld [vmem:[#allocation3 + $0x450] sm:$0xf0]  ;;  %v5591_v47 = vld [vmem:[#allocation3 + $0x544] sm:$0xf]  ;;  %v4959_v51 = vor.u32 %v5659_v43, %v4956_v44  ;;  %v4259_v33 = vor.u32 %v5486_v11, %v4258_v12  ;;  %v5550_v37 = vld [vmem:[#allocation3 + $0x3f4] sm:$0xf0] }
 0x281   :  { %v4684_v48 = vld [vmem:[#allocation3 + $0x550] sm:$0xf0]  ;;  %v5623_v50 = vld [vmem:[#allocation3 + $0x644] sm:$0xf]  ;;  %v4559_v54 = vor.u32 %v5559_v46, %v4556_v22  ;;  %v4242_v40 = vld [vmem:[#allocation3 + $0x1c8] sm:$0xf]  ;;  %v4515_v46 = vor.u32 %v5550_v37, %v4514_v36 }
 0x282   :  { %2774 = vmatpush.bf16.msrb.mxu2 %v4591_v28  ;;  %v4812_v53 = vld [vmem:[#allocation3 + $0x650] sm:$0xf0]  ;;  %v5655_v56 = vld [vmem:[#allocation3 + $0x744] sm:$0xf]  ;;  %v4687_v60 = vor.u32 %v5591_v47, %v4684_v48  ;;  %v4131_v28 = vor.u32 %v5454_v9, %v4130_v8  ;;  %v5482_v41 = vld [vmem:[#allocation3 + $0x1d4] sm:$0xf0] }
 0x283   :  { %2812 = vmatpush.bf16.msra.mxu1 %v4991_v20  ;;  %2787 = vmatpush.bf16.msrb.mxu3 %v4719_v32  ;;  %v4940_v49 = vld [vmem:[#allocation3 + $0x750] sm:$0xf0]  ;;  %v5555_v61 = vld [vmem:[#allocation3 + $0x424] sm:$0xf]  ;;  %v4815_v59 = vor.u32 %v5623_v50, %v4812_v53  ;;  %v4386_v20 = vld [vmem:[#allocation3 + $0x2e8] sm:$0xf] }
 0x284   :  { %2800 = vmatpush.bf16.msra.mxu0 %v4847_v35  ;;  %v4540_v58 = vld [vmem:[#allocation3 + $0x430] sm:$0xf0]  ;;  %v5587_v62 = vld [vmem:[#allocation3 + $0x524] sm:$0xf]  ;;  %v4943_v63 = vor.u32 %v5655_v56, %v4940_v49  ;;  %v4114_v32 = vld [vmem:[#allocation3 + $0xc8] sm:$0xf] }
 0x285   :  { %v4668_v26 = vld [vmem:[#allocation3 + $0x530] sm:$0xf0]  ;;  %v5619_v1 = vld [vmem:[#allocation3 + $0x624] sm:$0xf]  ;;  %v4543_v2 = vor.u32 %v5555_v61, %v4540_v58  ;;  %v5450_v35 = vld [vmem:[#allocation3 + $0xd4] sm:$0xf0] }
 0x286   :  { %2775 = vmatpush.bf16.msrb.mxu2 %v4575_v42  ;;  %v4796_v39 = vld [vmem:[#allocation3 + $0x630] sm:$0xf0]  ;;  %v5551_v18 = vld [vmem:[#allocation3 + $0x404] sm:$0xf]  ;;  %v4671_v0 = vor.u32 %v5587_v62, %v4668_v26  ;;  %v4370_v43 = vld [vmem:[#allocation3 + $0x2c8] sm:$0xf] }
 0x287   :  { %2813 = vmatpush.bf16.msra.mxu1 %v4975_v38  ;;  %2788 = vmatpush.bf16.msrb.mxu3 %v4703_v45  ;;  %v5651_v3 = vld [vmem:[#allocation3 + $0x724] sm:$0xf]  ;;  %v4924_v4 = vld [vmem:[#allocation3 + $0x730] sm:$0xf0]  ;;  %v4799_v7 = vor.u32 %v5619_v1, %v4796_v39  ;;  %v4387_v38 = vor.u32 %v5518_v23, %v4386_v20  ;;  %v5514_v44 = vld [vmem:[#allocation3 + $0x2d4] sm:$0xf0]  ;;  %v4115_v45 = vor.u32 %v5450_v35, %v4114_v32 }
 0x288   :  { %2801 = vmatpush.bf16.msra.mxu0 %v4831_v27  ;;  %v4524_v55 = vld [vmem:[#allocation3 + $0x410] sm:$0xf0]  ;;  %v5583_v5 = vld [vmem:[#allocation3 + $0x504] sm:$0xf]  ;;  %v4927_v13 = vor.u32 %v5651_v3, %v4924_v4  ;;  %v4098_v22 = vld [vmem:[#allocation3 + $0xa8] sm:$0xf]  ;;  %v4243_v27 = vor.u32 %v5482_v41, %v4242_v40  ;;  %v4371_v50 = vor.u32 %v5514_v44, %v4370_v43 }
 0x289   :  { %v4652_v6 = vld [vmem:[#allocation3 + $0x510] sm:$0xf0]  ;;  %v5615_v14 = vld [vmem:[#allocation3 + $0x604] sm:$0xf]  ;;  %v4527_v19 = vor.u32 %v5551_v18, %v4524_v55  ;;  %v5446_v47 = vld [vmem:[#allocation3 + $0xb4] sm:$0xf0] }
 0x28a   :  { %2776 = vmatpush.bf16.msrb.mxu2 %v4559_v54  ;;  %v4780_v17 = vld [vmem:[#allocation3 + $0x610] sm:$0xf0]  ;;  %v4655_v24 = vor.u32 %v5583_v5, %v4652_v6  ;;  %v5647_v30 = vld [vmem:[#allocation3 + $0x704] sm:$0xf]  ;;  %v4498_v48 = vld [vmem:[#allocation3 + $0x3c8] sm:$0xf] }
 0x28b   :  { %2814 = vmatpush.bf16.msra.mxu1 %v4959_v51  ;;  %2789 = vmatpush.bf16.msrb.mxu3 %v4687_v60  ;;  %v4908_v31 = vld [vmem:[#allocation3 + $0x710] sm:$0xf0]  ;;  %v4783_v34 = vor.u32 %v5615_v14, %v4780_v17  ;;  %v5546_v51 = vld [vmem:[#allocation3 + $0x3d4] sm:$0xf0]  ;;  %v4226_v53 = vld [vmem:[#allocation3 + $0x1a8] sm:$0xf]  ;;  %v4099_v60 = vor.u32 %v5446_v47, %v4098_v22 }
 0x28c   :  { %2802 = vmatpush.bf16.msra.mxu0 %v4815_v59  ;;  %v4911_v42 = vor.u32 %v5647_v30, %v4908_v31  ;;  %v5478_v54 = vld [vmem:[#allocation3 + $0x1b4] sm:$0xf0]  ;;  %v4354_v56 = vld [vmem:[#allocation3 + $0x2a8] sm:$0xf]  ;;  %v4499_v61 = vor.u32 %v5546_v51, %v4498_v48 }
 0x28d   :  { %v5510_v49 = vld [vmem:[#allocation3 + $0x2b4] sm:$0xf0]  ;;  %v4082_v58 = vld [vmem:[#allocation3 + $0x88] sm:$0xf]  ;;  %v4227_v59 = vor.u32 %v5478_v54, %v4226_v53 }
 0x28e   :  { %2777 = vmatpush.bf16.msrb.mxu2 %v4543_v2  ;;  %v5442_v62 = vld [vmem:[#allocation3 + $0x94] sm:$0xf0]  ;;  %v4482_v26 = vld [vmem:[#allocation3 + $0x3a8] sm:$0xf]  ;;  %v4355_v1 = vor.u32 %v5510_v49, %v4354_v56 }
 0x28f   :  { %2815 = vmatpush.bf16.msra.mxu1 %v4943_v63  ;;  %2790 = vmatpush.bf16.msrb.mxu3 %v4671_v0  ;;  %v5542_v63 = vld [vmem:[#allocation3 + $0x3b4] sm:$0xf0]  ;;  %v4210_v39 = vld [vmem:[#allocation3 + $0x188] sm:$0xf]  ;;  %v4083_v4 = vor.u32 %v5442_v62, %v4082_v58 }
 0x290   :  { %2803 = vmatpush.bf16.msra.mxu0 %v4799_v7  ;;  %v5474_v2 = vld [vmem:[#allocation3 + $0x194] sm:$0xf0]  ;;  %v4338_v18 = vld [vmem:[#allocation3 + $0x288] sm:$0xf]  ;;  %v4483_v0 = vor.u32 %v5542_v63, %v4482_v26 }
 0x291   :  { %v5506_v3 = vld [vmem:[#allocation3 + $0x294] sm:$0xf0]  ;;  %v4066_v55 = vld [vmem:[#allocation3 + $0x68] sm:$0xf]  ;;  %v4211_v5 = vor.u32 %v5474_v2, %v4210_v39 }
 0x292   :  { %2778 = vmatpush.bf16.msrb.mxu2 %v4527_v19  ;;  %v5438_v6 = vld [vmem:[#allocation3 + $0x74] sm:$0xf0]  ;;  %v4466_v7 = vld [vmem:[#allocation3 + $0x388] sm:$0xf]  ;;  %v4339_v9 = vor.u32 %v5506_v3, %v4338_v18 }
 0x293   :  { %2816 = vmatpush.bf16.msra.mxu1 %v4927_v13  ;;  %2791 = vmatpush.bf16.msrb.mxu3 %v4655_v24  ;;  %v5538_v8 = vld [vmem:[#allocation3 + $0x394] sm:$0xf0]  ;;  %v4194_v12 = vld [vmem:[#allocation3 + $0x168] sm:$0xf]  ;;  %v4067_v17 = vor.u32 %v5438_v6, %v4066_v55 }
 0x294   :  { %2804 = vmatpush.bf16.msra.mxu0 %v4783_v34  ;;  %v5470_v13 = vld [vmem:[#allocation3 + $0x174] sm:$0xf0]  ;;  %v4322_v11 = vld [vmem:[#allocation3 + $0x268] sm:$0xf]  ;;  %v4467_v19 = vor.u32 %v5538_v8, %v4466_v7 }
 0x295   :  { %2779 = vmatmul.bf16.vlgmr.msrb.gmra.mxu2 %v6160_v10  ;;  %v5502_v14 = vld [vmem:[#allocation3 + $0x274] sm:$0xf0]  ;;  %v4050_v20 = vld [vmem:[#allocation3 + $0x48] sm:$0xf]  ;;  %v4195_v23 = vor.u32 %v5470_v13, %v4194_v12 }
 0x296   :  { %2823 = vmatpush.bf16.msra.mxu2 %v4131_v28  ;;  %2792 = vmatmul.bf16.vlgmr.msrb.gmra.mxu3 %v6162_v15  ;;  %v5434_v24 = vld [vmem:[#allocation3 + $0x54] sm:$0xf0]  ;;  %v4450_v28 = vld [vmem:[#allocation3 + $0x368] sm:$0xf]  ;;  %v4323_v31 = vor.u32 %v5502_v14, %v4322_v11 }
 0x297   :  { %2836 = vmatpush.bf16.msra.mxu3 %v4259_v33  ;;  %2817 = vmatpush.bf16.msra.mxu1 %v4911_v42  ;;  %v5534_v30 = vld [vmem:[#allocation3 + $0x374] sm:$0xf0]  ;;  %v4178_v32 = vld [vmem:[#allocation3 + $0x148] sm:$0xf]  ;;  %v4051_v36 = vor.u32 %v5434_v24, %v4050_v20 }
 0x298   :  { %2849 = vmatpush.bf16.msrb.mxu0 %v4387_v38  ;;  %v5466_v33 = vld [vmem:[#allocation3 + $0x154] sm:$0xf0]  ;;  %v4306_v34 = vld [vmem:[#allocation3 + $0x248] sm:$0xf]  ;;  %v4451_v37 = vor.u32 %v5534_v30, %v4450_v28 }
 0x299   :  { %2805 = vmatmul.bf16.vlgmr.msra.gmra.mxu0 %v6164_v21  ;;  %v5498_v35 = vld [vmem:[#allocation3 + $0x254] sm:$0xf0]  ;;  %v4034_v38 = vld [vmem:[#allocation3 + $0x28] sm:$0xf]  ;;  %v4179_v40 = vor.u32 %v5466_v33, %v4178_v32 }
 0x29a   :  { %2824 = vmatpush.bf16.msra.mxu2 %v4115_v45  ;;  %2818 = vmatmul.bf16.vlgmr.msra.gmra.mxu1 %v6166_v29  ;;  %v5430_v41 = vld [vmem:[#allocation3 + $0x34] sm:$0xf0]  ;;  %v4434_v42 = vld [vmem:[#allocation3 + $0x348] sm:$0xf]  ;;  %v4307_v44 = vor.u32 %v5498_v35, %v4306_v34 }
 0x29b   :  { %2862 = vmatpush.bf16.msrb.mxu1 %v4515_v46  ;;  %2837 = vmatpush.bf16.msra.mxu3 %v4243_v27  ;;  %v5530_v43 = vld [vmem:[#allocation3 + $0x354] sm:$0xf0]  ;;  %v4162_v45 = vld [vmem:[#allocation3 + $0x128] sm:$0xf]  ;;  %v4035_v47 = vor.u32 %v5430_v41, %v4034_v38 }
 0x29c   :  { %2850 = vmatpush.bf16.msrb.mxu0 %v4371_v50  ;;  %v5462_v46 = vld [vmem:[#allocation3 + $0x134] sm:$0xf0]  ;;  %v4290_v22 = vld [vmem:[#allocation3 + $0x228] sm:$0xf]  ;;  %v4435_v48 = vor.u32 %v5530_v43, %v4434_v42 }
 0x29d   :  { %v5494_v27 = vld [vmem:[#allocation3 + $0x234] sm:$0xf0]  ;;  %v4018_v51 = vld [vmem:[#allocation3 + $0x8] sm:$0xf]  ;;  %v4163_v54 = vor.u32 %v5462_v46, %v4162_v45 }
 0x29e   :  { %2825 = vmatpush.bf16.msra.mxu2 %v4099_v60  ;;  %v5426_v50 = vld [vmem:[#allocation3 + $0x14] sm:$0xf0]  ;;  %v4146_v53 = vld [vmem:[#allocation3 + $0x108] sm:$0xf] }
 0x29f   :  { %2863 = vmatpush.bf16.msrb.mxu1 %v4499_v61  ;;  %2838 = vmatpush.bf16.msra.mxu3 %v4227_v59  ;;  %v5458_v56 = vld [vmem:[#allocation3 + $0x114] sm:$0xf0]  ;;  %v4418_v49 = vld [vmem:[#allocation3 + $0x328] sm:$0xf]  ;;  %v4291_v61 = vor.u32 %v5494_v27, %v4290_v22  ;;  %v4019_v39 = vor.u32 %v5426_v50, %v4018_v51 }
 0x2a0   :  { %2851 = vmatpush.bf16.msrb.mxu0 %v4355_v1  ;;  %v5526_v60 = vld [vmem:[#allocation3 + $0x334] sm:$0xf0]  ;;  %v4642_v58 = vld [vmem:[#allocation3 + $0x4e8] sm:$0xf] }
 0x2a1   :  { %v5582_v59 = vld [vmem:[#allocation3 + $0x4f4] sm:$0xf0]  ;;  %v4770_v62 = vld [vmem:[#allocation3 + $0x5e8] sm:$0xf]  ;;  %v4419_v2 = vor.u32 %v5526_v60, %v4418_v49 }
 0x2a2   :  { %2826 = vmatpush.bf16.msra.mxu2 %v4083_v4  ;;  %v5614_v26 = vld [vmem:[#allocation3 + $0x5f4] sm:$0xf0]  ;;  %v4274_v63 = vld [vmem:[#allocation3 + $0x208] sm:$0xf]  ;;  %v4147_v4 = vor.u32 %v5458_v56, %v4146_v53 }
 0x2a3   :  { %2864 = vmatpush.bf16.msrb.mxu1 %v4483_v0  ;;  %2839 = vmatpush.bf16.msra.mxu3 %v4211_v5  ;;  %v5490_v1 = vld [vmem:[#allocation3 + $0x214] sm:$0xf0]  ;;  %v4898_v18 = vld [vmem:[#allocation3 + $0x6e8] sm:$0xf]  ;;  %v4643_v0 = vor.u32 %v5582_v59, %v4642_v58  ;;  %v4771_v7 = vor.u32 %v5614_v26, %v4770_v62 }
 0x2a4   :  { %2852 = vmatpush.bf16.msrb.mxu0 %v4339_v9  ;;  %v5646_v3 = vld [vmem:[#allocation3 + $0x6f4] sm:$0xf0]  ;;  %v4402_v55 = vld [vmem:[#allocation3 + $0x308] sm:$0xf]  ;;  %v4275_v8 = vor.u32 %v5490_v1, %v4274_v63 }
 0x2a5   :  { %v5522_v5 = vld [vmem:[#allocation3 + $0x314] sm:$0xf0]  ;;  %v4626_v6 = vld [vmem:[#allocation3 + $0x4c8] sm:$0xf]  ;;  %v4899_v11 = vor.u32 %v5646_v3, %v4898_v18 }
 0x2a6   :  { %2827 = vmatpush.bf16.msra.mxu2 %v4067_v17  ;;  %v5578_v9 = vld [vmem:[#allocation3 + $0x4d4] sm:$0xf0]  ;;  %v5026_v12 = vld [vmem:[#allocation3 + $0x7e8] sm:$0xf] }
 0x2a7   :  { %2865 = vmatpush.bf16.msrb.mxu1 %v4467_v19  ;;  %2840 = vmatpush.bf16.msra.mxu3 %v4195_v23  ;;  %v5678_v13 = vld [vmem:[#allocation3 + $0x7f4] sm:$0xf0]  ;;  %v4754_v14 = vld [vmem:[#allocation3 + $0x5c8] sm:$0xf]  ;;  %v4403_v19 = vor.u32 %v5522_v5, %v4402_v55  ;;  %v4627_v24 = vor.u32 %v5578_v9, %v4626_v6 }
 0x2a8   :  { %2853 = vmatpush.bf16.msrb.mxu0 %v4323_v31  ;;  %v5610_v17 = vld [vmem:[#allocation3 + $0x5d4] sm:$0xf0]  ;;  %v4882_v20 = vld [vmem:[#allocation3 + $0x6c8] sm:$0xf]  ;;  %v5027_v28 = vor.u32 %v5678_v13, %v5026_v12 }
 0x2a9   :  { %v5642_v23 = vld [vmem:[#allocation3 + $0x6d4] sm:$0xf0]  ;;  %v4610_v30 = vld [vmem:[#allocation3 + $0x4a8] sm:$0xf]  ;;  %v4755_v31 = vor.u32 %v5610_v17, %v4754_v14 }
 0x2aa   :  { %2828 = vmatpush.bf16.msra.mxu2 %v4051_v36  ;;  %v5574_v32 = vld [vmem:[#allocation3 + $0x4b4] sm:$0xf0]  ;;  %v5010_v33 = vld [vmem:[#allocation3 + $0x7c8] sm:$0xf]  ;;  %v4883_v35 = vor.u32 %v5642_v23, %v4882_v20 }
 0x2ab   :  { %2866 = vmatpush.bf16.msrb.mxu1 %v4451_v37  ;;  %2841 = vmatpush.bf16.msra.mxu3 %v4179_v40  ;;  %v5674_v34 = vld [vmem:[#allocation3 + $0x7d4] sm:$0xf0]  ;;  %v4738_v36 = vld [vmem:[#allocation3 + $0x5a8] sm:$0xf]  ;;  %v4611_v41 = vor.u32 %v5574_v32, %v4610_v30 }
 0x2ac   :  { %2854 = vmatpush.bf16.msrb.mxu0 %v4307_v44  ;;  %v5606_v37 = vld [vmem:[#allocation3 + $0x5b4] sm:$0xf0]  ;;  %v4866_v38 = vld [vmem:[#allocation3 + $0x6a8] sm:$0xf]  ;;  %v5011_v42 = vor.u32 %v5674_v34, %v5010_v33 }
 0x2ad   :  { %v5638_v40 = vld [vmem:[#allocation3 + $0x6b4] sm:$0xf0]  ;;  %v4594_v43 = vld [vmem:[#allocation3 + $0x488] sm:$0xf]  ;;  %v4739_v44 = vor.u32 %v5606_v37, %v4738_v36 }
 0x2ae   :  { %2829 = vmatpush.bf16.msra.mxu2 %v4035_v47  ;;  %v5570_v45 = vld [vmem:[#allocation3 + $0x494] sm:$0xf0]  ;;  %v4994_v46 = vld [vmem:[#allocation3 + $0x7a8] sm:$0xf]  ;;  %v4867_v27 = vor.u32 %v5638_v40, %v4866_v38 }
 0x2af   :  { %2867 = vmatpush.bf16.msrb.mxu1 %v4435_v48  ;;  %2842 = vmatpush.bf16.msra.mxu3 %v4163_v54  ;;  %v5670_v22 = vld [vmem:[#allocation3 + $0x7b4] sm:$0xf0]  ;;  %v4722_v47 = vld [vmem:[#allocation3 + $0x588] sm:$0xf]  ;;  %v4595_v53 = vor.u32 %v5570_v45, %v4594_v43  ;;  %v5452_v45 = vld [vmem:[#allocation3 + $0xec] sm:$0xf] }
 0x2b0   :  { %2855 = vmatpush.bf16.msrb.mxu0 %v4291_v61  ;;  %v5602_v48 = vld [vmem:[#allocation3 + $0x594] sm:$0xf0]  ;;  %v4850_v51 = vld [vmem:[#allocation3 + $0x688] sm:$0xf]  ;;  %v4995_v54 = vor.u32 %v5670_v22, %v4994_v46  ;;  %v4132_v46 = vld [vmem:[#allocation3 + $0xf8] sm:$0xf0] }
 0x2b1   :  { %v5634_v50 = vld [vmem:[#allocation3 + $0x694] sm:$0xf0]  ;;  %v4578_v56 = vld [vmem:[#allocation3 + $0x468] sm:$0xf]  ;;  %v4723_v49 = vor.u32 %v5602_v48, %v4722_v47  ;;  %v5484_v22 = vld [vmem:[#allocation3 + $0x1ec] sm:$0xf] }
 0x2b2   :  { %2830 = vmatpush.bf16.msra.mxu2 %v4019_v39  ;;  %v5566_v60 = vld [vmem:[#allocation3 + $0x474] sm:$0xf0]  ;;  %v4978_v61 = vld [vmem:[#allocation3 + $0x788] sm:$0xf]  ;;  %v4851_v59 = vor.u32 %v5634_v50, %v4850_v51  ;;  %v4260_v47 = vld [vmem:[#allocation3 + $0x1f8] sm:$0xf0] }
 0x2b3   :  { %2868 = vmatpush.bf16.msrb.mxu1 %v4419_v2  ;;  %2843 = vmatpush.bf16.msra.mxu3 %v4147_v4  ;;  %v5666_v58 = vld [vmem:[#allocation3 + $0x794] sm:$0xf0]  ;;  %v4706_v62 = vld [vmem:[#allocation3 + $0x568] sm:$0xf]  ;;  %v4579_v39 = vor.u32 %v5566_v60, %v4578_v56  ;;  %v4388_v60 = vld [vmem:[#allocation3 + $0x2f8] sm:$0xf0] }
 0x2b4   :  { %2856 = vmatpush.bf16.msrb.mxu0 %v4275_v8  ;;  %v5598_v26 = vld [vmem:[#allocation3 + $0x574] sm:$0xf0]  ;;  %v4834_v63 = vld [vmem:[#allocation3 + $0x668] sm:$0xf]  ;;  %v4979_v2 = vor.u32 %v5666_v58, %v4978_v61  ;;  %v4135_v58 = vor.u32 %v5452_v45, %v4132_v46  ;;  %v4484_v45 = vld [vmem:[#allocation3 + $0x3b8] sm:$0xf0] }
 0x2b5   :  { %2831 = vmatmul.bf16.vlgmr.msra.gmra.mxu2 %v6148_v52  ;;  %v5630_v1 = vld [vmem:[#allocation3 + $0x674] sm:$0xf0]  ;;  %v4562_v18 = vld [vmem:[#allocation3 + $0x448] sm:$0xf]  ;;  %v4707_v3 = vor.u32 %v5598_v26, %v4706_v62  ;;  %v5448_v26 = vld [vmem:[#allocation3 + $0xcc] sm:$0xf] }
 0x2b6   :  { %2875 = vmatpush.bf16.msrb.mxu2 %v4643_v0  ;;  %2844 = vmatmul.bf16.vlgmr.msra.gmra.mxu3 %v6150_v57  ;;  %v5562_v4 = vld [vmem:[#allocation3 + $0x454] sm:$0xf0]  ;;  %v4962_v0 = vld [vmem:[#allocation3 + $0x768] sm:$0xf]  ;;  %v4835_v5 = vor.u32 %v5630_v1, %v4834_v63 }
 0x2b7   :  { %2888 = vmatpush.bf16.msrb.mxu3 %v4771_v7  ;;  %2869 = vmatpush.bf16.msrb.mxu1 %v4403_v19  ;;  %v5662_v55 = vld [vmem:[#allocation3 + $0x774] sm:$0xf0]  ;;  %v4690_v6 = vld [vmem:[#allocation3 + $0x548] sm:$0xf]  ;;  %v4563_v12 = vor.u32 %v5562_v4, %v4562_v18  ;;  %v4116_v18 = vld [vmem:[#allocation3 + $0xd8] sm:$0xf0] }
 0x2b8   :  { %2901 = vmatpush.bf16.msra.mxu0 %v4899_v11  ;;  %v5594_v7 = vld [vmem:[#allocation3 + $0x554] sm:$0xf0]  ;;  %v4818_v8 = vld [vmem:[#allocation3 + $0x648] sm:$0xf]  ;;  %v4963_v13 = vor.u32 %v5662_v55, %v4962_v0  ;;  %v4516_v4 = vld [vmem:[#allocation3 + $0x3f8] sm:$0xf0] }
 0x2b9   :  { %2857 = vmatmul.bf16.vlgmr.msrb.gmra.mxu0 %v6154_v16  ;;  %v5626_v9 = vld [vmem:[#allocation3 + $0x654] sm:$0xf0]  ;;  %v4546_v11 = vld [vmem:[#allocation3 + $0x428] sm:$0xf]  ;;  %v4691_v17 = vor.u32 %v5594_v7, %v4690_v6  ;;  %v5480_v55 = vld [vmem:[#allocation3 + $0x1cc] sm:$0xf] }
 0x2ba   :  { %2876 = vmatpush.bf16.msrb.mxu2 %v4627_v24  ;;  %2870 = vmatmul.bf16.vlgmr.msrb.gmra.mxu1 %v6157_v25  ;;  %v6187_v14 = vld [vmem:[%s6256_s8] sm:$0xf]  ;;  %v4946_v20 = vld [vmem:[#allocation3 + $0x748] sm:$0xf]  ;;  %v4819_v24 = vor.u32 %v5626_v9, %v4818_v8  ;;  %v5512_v9 = vld [vmem:[#allocation3 + $0x2cc] sm:$0xf] }
 0x2bb   :  { %2914 = vmatpush.bf16.msra.mxu1 %v5027_v28  ;;  %2889 = vmatpush.bf16.msrb.mxu3 %v4755_v31  ;;  %v5558_v19 = vld [vmem:[#allocation3 + $0x434] sm:$0xf0]  ;;  %v4674_v28 = vld [vmem:[#allocation3 + $0x528] sm:$0xf]  ;;  %v1327_v33 = vperm.slane %v6187_v14, 0 }
 0x2bc   :  { %2902 = vmatpush.bf16.msra.mxu0 %v4883_v35  ;;  %v5658_v23 = vld [vmem:[#allocation3 + $0x754] sm:$0xf0]  ;;  %v4802_v31 = vld [vmem:[#allocation3 + $0x628] sm:$0xf]  ;;  %v4547_v34 = vor.u32 %v5558_v19, %v4546_v11 }
 0x2bd   :  { %v5590_v30 = vld [vmem:[#allocation3 + $0x534] sm:$0xf0]  ;;  %v4947_v35 = vor.u32 %v5658_v23, %v4946_v20  ;;  %v4530_v36 = vld [vmem:[#allocation3 + $0x408] sm:$0xf]  ;;  %v4100_v23 = vld [vmem:[#allocation3 + $0xb8] sm:$0xf0] }
 0x2be   :  { %2877 = vmatpush.bf16.msrb.mxu2 %v4611_v41  ;;  %v5622_v32 = vld [vmem:[#allocation3 + $0x634] sm:$0xf0]  ;;  %v4658_v38 = vld [vmem:[#allocation3 + $0x508] sm:$0xf]  ;;  %v4675_v40 = vor.u32 %v5590_v30, %v4674_v28  ;;  %v4500_v28 = vld [vmem:[#allocation3 + $0x3d8] sm:$0xf0] }
 0x2bf   :  { %2915 = vmatpush.bf16.msra.mxu1 %v5011_v42  ;;  %2890 = vmatpush.bf16.msrb.mxu3 %v4739_v44  ;;  %v5554_v37 = vld [vmem:[#allocation3 + $0x414] sm:$0xf0]  ;;  %v4930_v42 = vld [vmem:[#allocation3 + $0x728] sm:$0xf]  ;;  %v4803_v44 = vor.u32 %v5622_v32, %v4802_v31  ;;  %v5476_v32 = vld [vmem:[#allocation3 + $0x1ac] sm:$0xf] }
 0x2c0   :  { %2903 = vmatpush.bf16.msra.mxu0 %v4867_v27  ;;  %v5586_v41 = vld [vmem:[#allocation3 + $0x514] sm:$0xf0]  ;;  %v4786_v48 = vld [vmem:[#allocation3 + $0x608] sm:$0xf] }
 0x2c1   :  { %v5654_v43 = vld [vmem:[#allocation3 + $0x734] sm:$0xf0]  ;;  %v4659_v61 = vor.u32 %v5586_v41, %v4658_v38 }
 0x2c2   :  { %2878 = vmatpush.bf16.msrb.mxu2 %v4595_v53  ;;  %v5618_v51 = vld [vmem:[#allocation3 + $0x614] sm:$0xf0]  ;;  %v4931_v56 = vor.u32 %v5654_v43, %v4930_v42  ;;  %v4084_v43 = vld [vmem:[#allocation3 + $0x98] sm:$0xf0] }
 0x2c3   :  { %2916 = vmatpush.bf16.msra.mxu1 %v4995_v54  ;;  %2891 = vmatpush.bf16.msrb.mxu3 %v4723_v49  ;;  %v2624_v27 = vpop.f32.mrf.mxu2  ;;  %v4531_v54 = vor.u32 %v5554_v37, %v4530_v36  ;;  %v5516_v49 = vld [vmem:[#allocation3 + $0x2ec] sm:$0xf]  ;;  %v5650_v62 = vld [vmem:[#allocation3 + $0x714] sm:$0xf0]  ;;  %v4356_v36 = vld [vmem:[#allocation3 + $0x2b8] sm:$0xf0] }
 0x2c4   :  { %2904 = vmatpush.bf16.msra.mxu0 %v4851_v59  ;;  %v2625_v50 = vadd.f32 %v2624_v27, %v1327_v33  ;;  %v2637_v53 = vpop.f32.mrf.mxu3  ;;  %v4914_v59 = vld [vmem:[#allocation3 + $0x708] sm:$0xf]  ;;  %v4391_v0 = vor.u32 %v5516_v49, %v4388_v60  ;;  %v4228_v33 = vld [vmem:[#allocation3 + $0x1b8] sm:$0xf0]  ;;  %v5536_v60 = vld [vmem:[#allocation3 + $0x38c] sm:$0xf] }
 0x2c5   :  { %v4915_v8 = vor.u32 %v5650_v62, %v4914_v59  ;;  %v4231_v42 = vor.u32 %v5476_v32, %v4228_v33  ;;  %v4212_v27 = vld [vmem:[#allocation3 + $0x198] sm:$0xf0]  ;;  %v5468_v59 = vld [vmem:[#allocation3 + $0x16c] sm:$0xf] }
 0x2c6   :  { %2879 = vmatpush.bf16.msrb.mxu2 %v4579_v39  ;;  %v2638_v63 = vadd.f32 %v2637_v53, %v2625_v50  ;;  %v2650_v1 = vpop.f32.mrf.mxu0  ;;  %v4263_v39 = vor.u32 %v5484_v22, %v4260_v47  ;;  %v5472_v22 = vld [vmem:[#allocation3 + $0x18c] sm:$0xf]  ;;  %v4068_v49 = vld [vmem:[#allocation3 + $0x78] sm:$0xf0] }
 0x2c7   :  { %2917 = vmatpush.bf16.msra.mxu1 %v4979_v2  ;;  %2892 = vmatpush.bf16.msrb.mxu3 %v4707_v3  ;;  %v4787_v2 = vor.u32 %v5618_v51, %v4786_v48  ;;  %v5548_v3 = vld [vmem:[#allocation3 + $0x3ec] sm:$0xf]  ;;  %v4340_v51 = vld [vmem:[#allocation3 + $0x298] sm:$0xf0] }
 0x2c8   :  { %2905 = vmatpush.bf16.msra.mxu0 %v4835_v5  ;;  %v4244_v5 = vld [vmem:[#allocation3 + $0x1d8] sm:$0xf0]  ;;  %v2651_v6 = vadd.f32 %v2650_v1, %v2638_v63  ;;  %v4519_v11 = vor.u32 %v5548_v3, %v4516_v4  ;;  %v5504_v48 = vld [vmem:[#allocation3 + $0x28c] sm:$0xf] }
 0x2c9   :  { %v2663_v7 = vpop.f32.mrf.mxu1  ;;  %v4247_v20 = vor.u32 %v5480_v55, %v4244_v5  ;;  %v4196_v62 = vld [vmem:[#allocation3 + $0x178] sm:$0xf0]  ;;  %v5532_v4 = vld [vmem:[#allocation3 + $0x36c] sm:$0xf] }
 0x2ca   :  { %2880 = vmatpush.bf16.msrb.mxu2 %v4563_v12  ;;  %v4372_v12 = vld [vmem:[#allocation3 + $0x2d8] sm:$0xf0]  ;;  %v6190_v19 = vadd.f32 %v2663_v7, %v2651_v6  ;;  %v5464_v5 = vld [vmem:[#allocation3 + $0x14c] sm:$0xf] }
 0x2cb   :  { %2918 = vmatpush.bf16.msra.mxu1 %v4963_v13  ;;  %2893 = vmatpush.bf16.msrb.mxu3 %v4691_v17  ;;  %v4119_v13 = vor.u32 %v5448_v26, %v4116_v18  ;;  %v5444_v17 = vld [vmem:[#allocation3 + $0xac] sm:$0xf]  ;;  %v2626_v30 = vpop.f32.mrf.mxu2  ;;  %v4375_v31 = vor.u32 %v5512_v9, %v4372_v12  ;;  %v4324_v63 = vld [vmem:[#allocation3 + $0x278] sm:$0xf0]  ;;  %v4199_v18 = vor.u32 %v5468_v59, %v4196_v62 }
 0x2cc   :  { %2906 = vmatpush.bf16.msra.mxu0 %v4819_v24  ;;  %v5544_v24 = vld [vmem:[#allocation3 + $0x3cc] sm:$0xf]  ;;  %v4103_v37 = vor.u32 %v5444_v17, %v4100_v23  ;;  %v4052_v3 = vld [vmem:[#allocation3 + $0x58] sm:$0xf0] }
 0x2cd   :  { %v4503_v38 = vor.u32 %v5544_v24, %v4500_v28  ;;  %v5500_v26 = vld [vmem:[#allocation3 + $0x26c] sm:$0xf]  ;;  %v4180_v6 = vld [vmem:[#allocation3 + $0x158] sm:$0xf0] }
 0x2ce   :  { %2881 = vmatpush.bf16.msrb.mxu2 %v4547_v34  ;;  %v2639_v34 = vpop.f32.mrf.mxu3  ;;  %v2652_v41 = vpop.f32.mrf.mxu0  ;;  %v4327_v55 = vor.u32 %v5500_v26, %v4324_v63  ;;  %v4308_v9 = vld [vmem:[#allocation3 + $0x258] sm:$0xf0]  ;;  %v5428_v17 = vld [vmem:[#allocation3 + $0x2c] sm:$0xf] }
 0x2cf   :  { %2919 = vmatpush.bf16.msra.mxu1 %v4947_v35  ;;  %2894 = vmatpush.bf16.msrb.mxu3 %v4675_v40  ;;  %v5508_v35 = vld [vmem:[#allocation3 + $0x2ac] sm:$0xf]  ;;  %v4036_v23 = vld [vmem:[#allocation3 + $0x38] sm:$0xf0] }
 0x2d0   :  { %2907 = vmatpush.bf16.msra.mxu0 %v4803_v44  ;;  %v5440_v40 = vld [vmem:[#allocation3 + $0x8c] sm:$0xf]  ;;  %v4359_v46 = vor.u32 %v5508_v35, %v4356_v36  ;;  %v4436_v28 = vld [vmem:[#allocation3 + $0x358] sm:$0xf0] }
 0x2d1   :  { %v5540_v44 = vld [vmem:[#allocation3 + $0x3ac] sm:$0xf]  ;;  %v2665_v47 = vpop.f32.mrf.mxu1  ;;  %v4087_v50 = vor.u32 %v5440_v40, %v4084_v43  ;;  %v4164_v33 = vld [vmem:[#allocation3 + $0x138] sm:$0xf0] }
 0x2d2   :  { %2882 = vmatpush.bf16.msrb.mxu2 %v4531_v54  ;;  %v4487_v53 = vor.u32 %v5540_v44, %v4484_v45  ;;  %v5436_v54 = vld [vmem:[#allocation3 + $0x6c] sm:$0xf]  ;;  %v4900_v62 = vld [vmem:[#allocation3 + $0x6f8] sm:$0xf0] }
 0x2d3   :  { %2920 = vmatpush.bf16.msra.mxu1 %v4931_v56  ;;  %2895 = vmatpush.bf16.msrb.mxu3 %v4659_v61  ;;  %v4215_v56 = vor.u32 %v5472_v22, %v4212_v27  ;;  %v4468_v61 = vld [vmem:[#allocation3 + $0x398] sm:$0xf0]  ;;  %v4071_v1 = vor.u32 %v5436_v54, %v4068_v49  ;;  %v5528_v24 = vld [vmem:[#allocation3 + $0x34c] sm:$0xf] }
 0x2d4   :  { %2908 = vmatpush.bf16.msra.mxu0 %v4787_v2  ;;  %v5432_v2 = vld [vmem:[#allocation3 + $0x4c] sm:$0xf]  ;;  %v4439_v40 = vor.u32 %v5528_v24, %v4436_v28  ;;  %v4420_v27 = vld [vmem:[#allocation3 + $0x338] sm:$0xf0] }
 0x2d5   :  { %2883 = vmatmul.bf16.vlgmr.msrb.gmra.mxu2 %v6160_v10  ;;  %v5460_v32 = vld [vmem:[#allocation3 + $0x12c] sm:$0xf]  ;;  %v4772_v54 = vld [vmem:[#allocation3 + $0x5f8] sm:$0xf0] }
 0x2d6   :  { %2927 = vmatpush.bf16.msra.mxu2 %v4135_v58  ;;  %2896 = vmatmul.bf16.vlgmr.msrb.gmra.mxu3 %v6162_v15  ;;  %v4343_v58 = vor.u32 %v5504_v48, %v4340_v51  ;;  %v2702_v7 = vpop.f32.mrf.mxu0  ;;  %v5492_v36 = vld [vmem:[#allocation3 + $0x22c] sm:$0xf]  ;;  %v4167_v44 = vor.u32 %v5460_v32, %v4164_v33  ;;  %v4276_v49 = vld [vmem:[#allocation3 + $0x218] sm:$0xf0] }
 0x2d7   :  { %2940 = vmatpush.bf16.msra.mxu3 %v4263_v39  ;;  %2921 = vmatpush.bf16.msra.mxu1 %v4915_v8  ;;  %v4471_v39 = vor.u32 %v5536_v60, %v4468_v61  ;;  %v5496_v8 = vld [vmem:[#allocation3 + $0x24c] sm:$0xf]  ;;  %v5012_v32 = vld [vmem:[#allocation3 + $0x7d8] sm:$0xf0] }
 0x2d8   :  { %2953 = vmatpush.bf16.msrb.mxu0 %v4391_v0  ;;  %v4452_v0 = vld [vmem:[#allocation3 + $0x378] sm:$0xf0]  ;;  %v4311_v30 = vor.u32 %v5496_v8, %v4308_v9  ;;  %v5424_v41 = vld [vmem:[#allocation3 + $0xc] sm:$0xf] }
 0x2d9   :  { %2909 = vmatmul.bf16.vlgmr.msra.gmra.mxu0 %v6164_v21  ;;  %v2715_v12 = vpop.f32.mrf.mxu1  ;;  %v2689_v35 = vpop.f32.mrf.mxu3  ;;  %v5456_v43 = vld [vmem:[#allocation3 + $0x10c] sm:$0xf]  ;;  %v4756_v9 = vld [vmem:[#allocation3 + $0x5d8] sm:$0xf0] }
 0x2da   :  { %2928 = vmatpush.bf16.msra.mxu2 %v4119_v13  ;;  %2922 = vmatmul.bf16.vlgmr.msra.gmra.mxu1 %v6166_v29  ;;  %v4055_v13 = vor.u32 %v5432_v2, %v4052_v3  ;;  %v5524_v22 = vld [vmem:[#allocation3 + $0x32c] sm:$0xf]  ;;  %v4404_v2 = vld [vmem:[#allocation3 + $0x318] sm:$0xf0] }
 0x2db   :  { %2966 = vmatpush.bf16.msrb.mxu1 %v4519_v11  ;;  %2941 = vmatpush.bf16.msra.mxu3 %v4247_v20  ;;  %v4455_v11 = vor.u32 %v5532_v4, %v4452_v0  ;;  %v4183_v20 = vor.u32 %v5464_v5, %v4180_v6  ;;  %v5580_v48 = vld [vmem:[#allocation3 + $0x4ec] sm:$0xf]  ;;  %v4628_v0 = vld [vmem:[#allocation3 + $0x4d8] sm:$0xf0] }
 0x2dc   :  { %2954 = vmatpush.bf16.msrb.mxu0 %v4375_v31  ;;  %v2676_v31 = vpop.f32.mrf.mxu2  ;;  %v5612_v51 = vld [vmem:[#allocation3 + $0x5ec] sm:$0xf]  ;;  %v5028_v5 = vld [vmem:[#allocation3 + $0x7f8] sm:$0xf0] }
 0x2dd   :  { %v2677_v34 = vadd.f32 %v2676_v31, %v6190_v19  ;;  %v4644_v19 = vld [vmem:[#allocation3 + $0x4f8] sm:$0xf0]  ;;  %v5644_v59 = vld [vmem:[#allocation3 + $0x6ec] sm:$0xf]  ;;  %v4775_v3 = vor.u32 %v5612_v51, %v4772_v54 }
 0x2de   :  { %2929 = vmatpush.bf16.msra.mxu2 %v4103_v37  ;;  %v4292_v37 = vld [vmem:[#allocation3 + $0x238] sm:$0xf0]  ;;  %v5608_v8 = vld [vmem:[#allocation3 + $0x5cc] sm:$0xf] }
 0x2df   :  { %2967 = vmatpush.bf16.msrb.mxu1 %v4503_v38  ;;  %2942 = vmatpush.bf16.msra.mxu3 %v4231_v42  ;;  %v4039_v38 = vor.u32 %v5428_v17, %v4036_v23  ;;  %v4020_v42 = vld [vmem:[#allocation3 + $0x18] sm:$0xf0]  ;;  %v2690_v45 = vadd.f32 %v2689_v35, %v2677_v34  ;;  %v4295_v47 = vor.u32 %v5492_v36, %v4292_v37  ;;  %v5572_v24 = vld [vmem:[#allocation3 + $0x4ac] sm:$0xf] }
 0x2e0   :  { %2955 = vmatpush.bf16.msrb.mxu0 %v4359_v46  ;;  %v4148_v46 = vld [vmem:[#allocation3 + $0x118] sm:$0xf0]  ;;  %v4023_v61 = vor.u32 %v5424_v41, %v4020_v42  ;;  %v4759_v28 = vor.u32 %v5608_v8, %v4756_v9  ;;  %v5672_v31 = vld [vmem:[#allocation3 + $0x7cc] sm:$0xf] }
 0x2e1   :  { %v2717_v60 = vpop.f32.mrf.mxu1  ;;  %v4151_v26 = vor.u32 %v5456_v43, %v4148_v46  ;;  %v4884_v17 = vld [vmem:[#allocation3 + $0x6d8] sm:$0xf0]  ;;  %v5604_v34 = vld [vmem:[#allocation3 + $0x5ac] sm:$0xf] }
 0x2e2   :  { %2930 = vmatpush.bf16.msra.mxu2 %v4087_v50  ;;  %v2704_v50 = vpop.f32.mrf.mxu0  ;;  %v4740_v35 = vld [vmem:[#allocation3 + $0x5b8] sm:$0xf0]  ;;  %v5636_v36 = vld [vmem:[#allocation3 + $0x6ac] sm:$0xf] }
 0x2e3   :  { %2968 = vmatpush.bf16.msrb.mxu1 %v4487_v53  ;;  %2943 = vmatpush.bf16.msra.mxu3 %v4215_v56  ;;  %v2703_v53 = vadd.f32 %v2702_v7, %v2690_v45  ;;  %v5488_v56 = vld [vmem:[#allocation3 + $0x20c] sm:$0xf]  ;;  %v4903_v7 = vor.u32 %v5644_v59, %v4900_v62  ;;  %v4868_v37 = vld [vmem:[#allocation3 + $0x6b8] sm:$0xf0]  ;;  %v4743_v42 = vor.u32 %v5604_v34, %v4740_v35 }
 0x2e4   :  { %2956 = vmatpush.bf16.msrb.mxu0 %v4343_v58  ;;  %v4423_v58 = vor.u32 %v5524_v22, %v4420_v27  ;;  %v4279_v4 = vor.u32 %v5488_v56, %v4276_v49  ;;  %v2678_v6 = vpop.f32.mrf.mxu2  ;;  %v5568_v41 = vld [vmem:[#allocation3 + $0x48c] sm:$0xf]  ;;  %v4596_v43 = vld [vmem:[#allocation3 + $0x498] sm:$0xf0] }
 0x2e5   :  { %v6197_v63 = vadd.f32 %v2715_v12, %v2703_v53  ;;  %v5640_v12 = vld [vmem:[#allocation3 + $0x6cc] sm:$0xf]  ;;  %v4996_v45 = vld [vmem:[#allocation3 + $0x7b8] sm:$0xf0] }
 0x2e6   :  { %2931 = vmatpush.bf16.msra.mxu2 %v4071_v1  ;;  %v4647_v1 = vor.u32 %v5580_v48, %v4644_v19  ;;  %v4887_v33 = vor.u32 %v5640_v12, %v4884_v17  ;;  %v5600_v46 = vld [vmem:[#allocation3 + $0x58c] sm:$0xf]  ;;  %v4724_v22 = vld [vmem:[#allocation3 + $0x598] sm:$0xf0] }
 0x2e7   :  { %2969 = vmatpush.bf16.msrb.mxu1 %v4471_v39  ;;  %2944 = vmatpush.bf16.msra.mxu3 %v4199_v18  ;;  %v5520_v39 = vld [vmem:[#allocation3 + $0x30c] sm:$0xf]  ;;  %v4852_v27 = vld [vmem:[#allocation3 + $0x698] sm:$0xf0]  ;;  %v4727_v51 = vor.u32 %v5600_v46, %v4724_v22  ;;  %v5710_v46 = vld [vmem:[#allocation4 + $0xf4] sm:$0xf0] }
 0x2e8   :  { %2957 = vmatpush.bf16.msrb.mxu0 %v4327_v55  ;;  %v5576_v18 = vld [vmem:[#allocation3 + $0x4cc] sm:$0xf]  ;;  %v4580_v50 = vld [vmem:[#allocation3 + $0x478] sm:$0xf0] }
 0x2e9   :  { %v5676_v55 = vld [vmem:[#allocation3 + $0x7ec] sm:$0xf]  ;;  %v4980_v54 = vld [vmem:[#allocation3 + $0x798] sm:$0xf0] }
 0x2ea   :  { %2932 = vmatpush.bf16.msra.mxu2 %v4055_v13  ;;  %v2691_v13 = vpop.f32.mrf.mxu3  ;;  %v5031_v23 = vor.u32 %v5676_v55, %v5028_v5  ;;  %v5564_v19 = vld [vmem:[#allocation3 + $0x46c] sm:$0xf]  ;;  %v4708_v49 = vld [vmem:[#allocation3 + $0x578] sm:$0xf0] }
 0x2eb   :  { %2970 = vmatpush.bf16.msrb.mxu1 %v4455_v11  ;;  %2945 = vmatpush.bf16.msra.mxu3 %v4183_v20  ;;  %v4407_v11 = vor.u32 %v5520_v39, %v4404_v2  ;;  %v4631_v20 = vor.u32 %v5576_v18, %v4628_v0  ;;  %v5664_v53 = vld [vmem:[#allocation3 + $0x78c] sm:$0xf]  ;;  %v4964_v39 = vld [vmem:[#allocation3 + $0x778] sm:$0xf0] }
 0x2ec   :  { %2958 = vmatpush.bf16.msrb.mxu0 %v4311_v30  ;;  %v4612_v30 = vld [vmem:[#allocation3 + $0x4b8] sm:$0xf0]  ;;  %v5596_v56 = vld [vmem:[#allocation3 + $0x56c] sm:$0xf] }
 0x2ed   :  { %v5628_v60 = vld [vmem:[#allocation3 + $0x66c] sm:$0xf]  ;;  %v4711_v62 = vor.u32 %v5596_v56, %v4708_v49  ;;  %v4820_v55 = vld [vmem:[#allocation3 + $0x658] sm:$0xf0]  ;;  %v5082_v56 = vld [vmem:[#allocation4 + $0x60] sm:$0xf] }
 0x2ee   :  { %2933 = vmatpush.bf16.msra.mxu2 %v4039_v38  ;;  %v4615_v38 = vor.u32 %v5572_v24, %v4612_v30  ;;  %v5560_v59 = vld [vmem:[#allocation3 + $0x44c] sm:$0xf]  ;;  %v4548_v13 = vld [vmem:[#allocation3 + $0x438] sm:$0xf0]  ;;  %v5692_v49 = vld [vmem:[#allocation4 + $0x64] sm:$0xf0] }
 0x2ef   :  { %2971 = vmatpush.bf16.msrb.mxu1 %v4439_v40  ;;  %2946 = vmatpush.bf16.msra.mxu3 %v4167_v44  ;;  %v5015_v40 = vor.u32 %v5672_v31, %v5012_v32  ;;  %v5668_v44 = vld [vmem:[#allocation3 + $0x7ac] sm:$0xf]  ;;  %v4948_v12 = vld [vmem:[#allocation3 + $0x758] sm:$0xf0] }
 0x2f0   :  { %2959 = vmatpush.bf16.msrb.mxu0 %v4295_v47  ;;  %v4599_v47 = vor.u32 %v5568_v41, %v4596_v43  ;;  %v4999_v48 = vor.u32 %v5668_v44, %v4996_v45  ;;  %v5592_v18 = vld [vmem:[#allocation3 + $0x54c] sm:$0xf]  ;;  %v4804_v30 = vld [vmem:[#allocation3 + $0x638] sm:$0xf0]  ;;  %v5090_v43 = vld [vmem:[#allocation4 + $0x70] sm:$0xf] }
 0x2f1   :  { %v5624_v0 = vld [vmem:[#allocation3 + $0x64c] sm:$0xf]  ;;  %v4532_v35 = vld [vmem:[#allocation3 + $0x418] sm:$0xf0]  ;;  %v5694_v44 = vld [vmem:[#allocation4 + $0x74] sm:$0xf0] }
 0x2f2   :  { %2934 = vmatpush.bf16.msra.mxu2 %v4023_v61  ;;  %v4836_v61 = vld [vmem:[#allocation3 + $0x678] sm:$0xf0]  ;;  %v5556_v8 = vld [vmem:[#allocation3 + $0x42c] sm:$0xf]  ;;  %v4823_v17 = vor.u32 %v5624_v0, %v4820_v55  ;;  %v5154_v45 = vld [vmem:[#allocation4 + $0xf0] sm:$0xf] }
 0x2f3   :  { %2972 = vmatpush.bf16.msrb.mxu1 %v4423_v58  ;;  %2947 = vmatpush.bf16.msra.mxu3 %v4151_v26  ;;  %v4983_v58 = vor.u32 %v5664_v53, %v4980_v54  ;;  %v4564_v26 = vld [vmem:[#allocation3 + $0x458] sm:$0xf0]  ;;  %v4839_v2 = vor.u32 %v5628_v60, %v4836_v61  ;;  %v4551_v32 = vor.u32 %v5556_v8, %v4548_v13  ;;  %v5552_v34 = vld [vmem:[#allocation3 + $0x40c] sm:$0xf]  ;;  %v1328_v61 = vperm.slane %v6187_v14, 1 }
 0x2f4   :  { %2960 = vmatpush.bf16.msrb.mxu0 %v4279_v4  ;;  %v4567_v6 = vor.u32 %v5560_v59, %v4564_v26  ;;  %v4932_v41 = vld [vmem:[#allocation3 + $0x738] sm:$0xf0]  ;;  %v5616_v22 = vld [vmem:[#allocation3 + $0x60c] sm:$0xf]  ;;  %v5155_v54 = vor.u32 %v5710_v46, %v5154_v45  ;;  %v5083_v26 = vor.u32 %v5692_v49, %v5082_v56  ;;  %v5706_v0 = vld [vmem:[#allocation4 + $0xd4] sm:$0xf0] }
 0x2f5   :  { %2935 = vmatmul.bf16.vlgmr.msra.gmra.mxu2 %v6148_v52  ;;  %v4871_v52 = vor.u32 %v5636_v36, %v4868_v37  ;;  %v5584_v36 = vld [vmem:[#allocation3 + $0x50c] sm:$0xf]  ;;  %v4916_v53 = vld [vmem:[#allocation3 + $0x718] sm:$0xf0]  ;;  %v5704_v13 = vld [vmem:[#allocation4 + $0xc4] sm:$0xf0] }
 0x2f6   :  { %2979 = vmatpush.bf16.msrb.mxu2 %v4647_v1  ;;  %2948 = vmatmul.bf16.vlgmr.msra.gmra.mxu3 %v6150_v57  ;;  %v5632_v57 = vld [vmem:[#allocation3 + $0x68c] sm:$0xf]  ;;  %v6203_v4 = vpop.f32.mrf.mxu0  ;;  %v5682_v45 = vld [vmem:[#allocation4 + $0x14] sm:$0xf0]  ;;  %v5693_v56 = vld [vmem:[#allocation4 + $0x74] sm:$0xf] }
 0x2f7   :  { %2992 = vmatpush.bf16.msrb.mxu3 %v4775_v3  ;;  %2973 = vmatpush.bf16.msrb.mxu1 %v4407_v11  ;;  %v5660_v1 = vld [vmem:[#allocation3 + $0x76c] sm:$0xf]  ;;  %v4692_v3 = vld [vmem:[#allocation3 + $0x558] sm:$0xf0]  ;;  %v6205_v5 = vpop.f32.mrf.mxu1 }
 0x2f8   :  { %3005 = vmatpush.bf16.msra.mxu0 %v4903_v7  ;;  %v4967_v7 = vor.u32 %v5660_v1, %v4964_v39  ;;  %v4695_v9 = vor.u32 %v5592_v18, %v4692_v3  ;;  %v5656_v11 = vld [vmem:[#allocation3 + $0x74c] sm:$0xf]  ;;  %v2728_v24 = vpop.f32.mrf.mxu2  ;;  %v5074_v39 = vld [vmem:[#allocation4 + $0x50] sm:$0xf] }
 0x2f9   :  { %2961 = vmatmul.bf16.vlgmr.msrb.gmra.mxu0 %v6154_v16  ;;  %v4855_v16 = vor.u32 %v5632_v57, %v4852_v27  ;;  %v6207_v31 = vpop.f32.mrf.mxu3  ;;  %v4788_v57 = vld [vmem:[#allocation3 + $0x618] sm:$0xf0]  ;;  %v2729_v18 = vadd.f32 %v2728_v24, %v1328_v61  ;;  %v5138_v3 = vld [vmem:[#allocation4 + $0xd0] sm:$0xf]  ;;  %v5726_v24 = vld [vmem:[#allocation4 + $0x174] sm:$0xf0] }
 0x2fa   :  { %2980 = vmatpush.bf16.msrb.mxu2 %v4631_v20  ;;  %2974 = vmatmul.bf16.vlgmr.msrb.gmra.mxu1 %v6157_v25  ;;  %v4583_v25 = vor.u32 %v5564_v19, %v4580_v50  ;;  %v5588_v20 = vld [vmem:[#allocation3 + $0x52c] sm:$0xf]  ;;  %v5139_v55 = vor.u32 %v5706_v0, %v5138_v3 }
 0x2fb   :  { %3018 = vmatpush.bf16.msra.mxu1 %v5031_v23  ;;  %2993 = vmatpush.bf16.msrb.mxu3 %v4759_v28  ;;  %v4676_v23 = vld [vmem:[#allocation3 + $0x538] sm:$0xf0]  ;;  %v5620_v28 = vld [vmem:[#allocation3 + $0x62c] sm:$0xf]  ;;  %v2742_v8 = vadd.f32 %v6207_v31, %v2729_v18  ;;  %v3031_v18 = vmax.f32 %v6197_v63, 0.0 }
 0x2fc   :  { %3006 = vmatpush.bf16.msra.mxu0 %v4887_v33  ;;  %v4951_v33 = vor.u32 %v5656_v11, %v4948_v12  ;;  %v4679_v37 = vor.u32 %v5588_v20, %v4676_v23  ;;  %v5648_v50 = vld [vmem:[#allocation3 + $0x70c] sm:$0xf]  ;;  %v5686_v12 = vld [vmem:[#allocation4 + $0x34] sm:$0xf0]  ;;  %v5218_v23 = vld [vmem:[#allocation4 + $0x170] sm:$0xf] }
 0x2fd   :  { %v5702_v20 = vld [vmem:[#allocation4 + $0xb4] sm:$0xf0] }
 0x2fe   :  { %2981 = vmatpush.bf16.msrb.mxu2 %v4615_v38  ;;  %v4660_v38 = vld [vmem:[#allocation3 + $0x518] sm:$0xf0] }
 0x2ff   :  { %3019 = vmatpush.bf16.msra.mxu1 %v5015_v40  ;;  %2994 = vmatpush.bf16.msrb.mxu3 %v4743_v42  ;;  %v5652_v40 = vld [vmem:[#allocation3 + $0x72c] sm:$0xf]  ;;  %v4807_v42 = vor.u32 %v5620_v28, %v4804_v30  ;;  %v2769_v27 = vpop.f32.mrf.mxu1  ;;  %v4663_v19 = vor.u32 %v5584_v36, %v4660_v38  ;;  %v5219_v28 = vor.u32 %v5726_v24, %v5218_v23  ;;  %v5724_v38 = vld [vmem:[#allocation4 + $0x164] sm:$0xf0] }
 0x300   :  { %3007 = vmatpush.bf16.msra.mxu0 %v4871_v52  ;;  %v2756_v52 = vpop.f32.mrf.mxu0  ;;  %v2730_v60 = vpop.f32.mrf.mxu2  ;;  %v5202_v27 = vld [vmem:[#allocation4 + $0x150] sm:$0xf]  ;;  %v5716_v23 = vld [vmem:[#allocation4 + $0x124] sm:$0xf0] }
 0x301   :  { %v2743_v59 = vpop.f32.mrf.mxu3  ;;  %v5106_v52 = vld [vmem:[#allocation4 + $0x90] sm:$0xf]  ;;  %v5092_v60 = vld [vmem:[#allocation4 + $0x78] sm:$0xf0] }
 0x302   :  { %2982 = vmatpush.bf16.msrb.mxu2 %v4599_v47  ;;  %v4535_v47 = vor.u32 %v5552_v34, %v4532_v35  ;;  %v5700_v35 = vld [vmem:[#allocation4 + $0xa4] sm:$0xf0]  ;;  %v5709_v59 = vld [vmem:[#allocation4 + $0xf4] sm:$0xf]  ;;  %v5095_v0 = vor.u32 %v5693_v56, %v5092_v60  ;;  %v5212_v60 = vld [vmem:[#allocation4 + $0x168] sm:$0xf0] }
 0x303   :  { %3020 = vmatpush.bf16.msra.mxu1 %v4999_v48  ;;  %2995 = vmatpush.bf16.msrb.mxu3 %v4727_v51  ;;  %v4935_v48 = vor.u32 %v5652_v40, %v4932_v41  ;;  %v5091_v51 = vor.u32 %v5694_v44, %v5090_v43  ;;  %v5042_v44 = vld [vmem:[#allocation4 + $0x10] sm:$0xf] }
 0x304   :  { %3008 = vmatpush.bf16.msra.mxu0 %v4855_v16  ;;  %v4791_v16 = vor.u32 %v5616_v22, %v4788_v57  ;;  %v5698_v57 = vld [vmem:[#allocation4 + $0x94] sm:$0xf0] }
 0x306   :  { %2983 = vmatpush.bf16.msrb.mxu2 %v4583_v25  ;;  %v5146_v25 = vld [vmem:[#allocation4 + $0xe0] sm:$0xf] }
 0x307   :  { %3021 = vmatpush.bf16.msra.mxu1 %v4983_v58  ;;  %2996 = vmatpush.bf16.msrb.mxu3 %v4711_v62  ;;  %v5708_v58 = vld [vmem:[#allocation4 + $0xe4] sm:$0xf0]  ;;  %v4919_v62 = vor.u32 %v5648_v50, %v4916_v53  ;;  %v5107_v53 = vor.u32 %v5698_v57, %v5106_v52  ;;  %v5060_v57 = vld [vmem:[#allocation4 + $0x38] sm:$0xf0] }
 0x308   :  { %3009 = vmatpush.bf16.msra.mxu0 %v4839_v2  ;;  %v5147_v1 = vor.u32 %v5708_v58, %v5146_v25  ;;  %v5690_v2 = vld [vmem:[#allocation4 + $0x54] sm:$0xf0]  ;;  %v5680_v50 = vld [vmem:[#allocation4 + $0x4] sm:$0xf0]  ;;  %v5194_v25 = vld [vmem:[#allocation4 + $0x140] sm:$0xf] }
 0x309   :  { %v5075_v14 = vor.u32 %v5690_v2, %v5074_v39  ;;  %v5720_v58 = vld [vmem:[#allocation4 + $0x144] sm:$0xf0] }
 0x30a   :  { %2984 = vmatpush.bf16.msrb.mxu2 %v4567_v6  ;;  %v5066_v6 = vld [vmem:[#allocation4 + $0x40] sm:$0xf] }
 0x30b   :  { %3022 = vmatpush.bf16.msra.mxu1 %v4967_v7  ;;  %2997 = vmatpush.bf16.msrb.mxu3 %v4695_v9  ;;  %v5688_v7 = vld [vmem:[#allocation4 + $0x44] sm:$0xf0]  ;;  %v5130_v9 = vld [vmem:[#allocation4 + $0xc0] sm:$0xf] }
 0x30c   :  { %3010 = vmatpush.bf16.msra.mxu0 %v4823_v17  ;;  %v5131_v11 = vor.u32 %v5704_v13, %v5130_v9  ;;  %v5122_v17 = vld [vmem:[#allocation4 + $0xb0] sm:$0xf] }
 0x30d   :  { %v5123_v31 = vor.u32 %v5702_v20, %v5122_v17  ;;  %v5186_v13 = vld [vmem:[#allocation4 + $0x130] sm:$0xf]  ;;  %v5178_v20 = vld [vmem:[#allocation4 + $0x120] sm:$0xf] }
 0x30e   :  { %2985 = vmatpush.bf16.msrb.mxu2 %v4551_v32  ;;  %v5684_v32 = vld [vmem:[#allocation4 + $0x24] sm:$0xf0] }
 0x30f   :  { %3023 = vmatpush.bf16.msra.mxu1 %v4951_v33  ;;  %2998 = vmatpush.bf16.msrb.mxu3 %v4679_v37  ;;  %v5114_v33 = vld [vmem:[#allocation4 + $0xa0] sm:$0xf] }
 0x310   :  { %3011 = vmatpush.bf16.msra.mxu0 %v4807_v42  ;;  %v5210_v37 = vld [vmem:[#allocation4 + $0x160] sm:$0xf]  ;;  %v5115_v43 = vor.u32 %v5700_v35, %v5114_v33  ;;  %v5170_v33 = vld [vmem:[#allocation4 + $0x110] sm:$0xf] }
 0x312   :  { %2986 = vmatpush.bf16.msrb.mxu2 %v4535_v47 }
 0x313   :  { %3024 = vmatpush.bf16.msra.mxu1 %v4935_v48  ;;  %2999 = vmatpush.bf16.msrb.mxu3 %v4663_v19  ;;  %v5043_v19 = vor.u32 %v5682_v45, %v5042_v44  ;;  %v5725_v44 = vld [vmem:[#allocation4 + $0x174] sm:$0xf]  ;;  %v5220_v45 = vld [vmem:[#allocation4 + $0x178] sm:$0xf0] }
 0x314   :  { %3012 = vmatpush.bf16.msra.mxu0 %v4791_v16  ;;  %v5696_v16 = vld [vmem:[#allocation4 + $0x84] sm:$0xf0] }
 0x315   :  { %2987 = vmatmul.bf16.vlgmr.msrb.gmra.mxu2 %v6160_v10  ;;  %v5067_v10 = vor.u32 %v5688_v7, %v5066_v6 }
 0x316   :  { %3429 = vmatpush.bf16.msra.mxu2 %v5091_v51  ;;  %3000 = vmatmul.bf16.vlgmr.msrb.gmra.mxu3 %v6162_v15  ;;  %v5058_v15 = vld [vmem:[#allocation4 + $0x30] sm:$0xf]  ;;  %v2806_v36 = vpop.f32.mrf.mxu0  ;;  %v5034_v51 = vld [vmem:[#allocation4] sm:$0xf] }
 0x317   :  { %3442 = vmatpush.bf16.msra.mxu3 %v5155_v54  ;;  %3025 = vmatpush.bf16.msra.mxu1 %v4919_v62  ;;  %v5059_v30 = vor.u32 %v5686_v12, %v5058_v15  ;;  %v2819_v40 = vpop.f32.mrf.mxu1  ;;  %v5098_v54 = vld [vmem:[#allocation4 + $0x80] sm:$0xf]  ;;  %v5156_v62 = vld [vmem:[#allocation4 + $0xf8] sm:$0xf0]  ;;  %v5035_v2 = vor.u32 %v5680_v50, %v5034_v51  ;;  %v5148_v15 = vld [vmem:[#allocation4 + $0xe8] sm:$0xf0] }
 0x318   :  { %3013 = vmatmul.bf16.vlgmr.msra.gmra.mxu0 %v6164_v21  ;;  %v2755_v21 = vadd.f32 %v6203_v4, %v2742_v8  ;;  %v5211_v4 = vor.u32 %v5724_v38, %v5210_v37  ;;  %v2780_v42 = vpop.f32.mrf.mxu2  ;;  %v5099_v3 = vor.u32 %v5696_v16, %v5098_v54  ;;  %v5159_v8 = vor.u32 %v5709_v59, %v5156_v62  ;;  %v5687_v37 = vld [vmem:[#allocation4 + $0x44] sm:$0xf]  ;;  %v5068_v38 = vld [vmem:[#allocation4 + $0x48] sm:$0xf0]  ;;  %v5681_v62 = vld [vmem:[#allocation4 + $0x14] sm:$0xf] }
 0x319   :  { %3455 = vmatpush.bf16.msrb.mxu0 %v5219_v28  ;;  %v2793_v22 = vpop.f32.mrf.mxu3  ;;  %v5689_v28 = vld [vmem:[#allocation4 + $0x54] sm:$0xf]  ;;  %v5071_v52 = vor.u32 %v5687_v37, %v5068_v38  ;;  %v5683_v50 = vld [vmem:[#allocation4 + $0x24] sm:$0xf]  ;;  %v5116_v16 = vld [vmem:[#allocation4 + $0xa8] sm:$0xf0] }
 0x31a   :  { %3430 = vmatpush.bf16.msra.mxu2 %v5083_v26  ;;  %3026 = vmatmul.bf16.vlgmr.msra.gmra.mxu1 %v6166_v29  ;;  %v5050_v29 = vld [vmem:[#allocation4 + $0x20] sm:$0xf]  ;;  %v2768_v34 = vadd.f32 %v6205_v5, %v2755_v21  ;;  %v5722_v5 = vld [vmem:[#allocation4 + $0x154] sm:$0xf0]  ;;  %v6220_v21 = vpack.c.bf16 %v3031_v18, %v3031_v18  ;;  %v5699_v54 = vld [vmem:[#allocation4 + $0xa4] sm:$0xf] }
 0x31b   :  { %3443 = vmatpush.bf16.msra.mxu3 %v5147_v1  ;;  %v5051_v41 = vor.u32 %v5684_v32, %v5050_v29  ;;  %v5203_v47 = vor.u32 %v5722_v5, %v5202_v27  ;;  %v5195_v1 = vor.u32 %v5720_v58, %v5194_v25  ;;  %v5179_v29 = vor.u32 %v5716_v23, %v5178_v20  ;;  %v5140_v32 = vld [vmem:[#allocation4 + $0xd8] sm:$0xf0]  ;;  %v5701_v5 = vld [vmem:[#allocation4 + $0xb4] sm:$0xf]  ;;  %v5742_v37 = vld [vmem:[#allocation4 + $0x1f4] sm:$0xf0] }
 0x31c   :  { %v2781_v46 = vadd.f32 %v2780_v42, %v2768_v34  ;;  %v5714_v34 = vld [vmem:[#allocation4 + $0x114] sm:$0xf0]  ;;  %v5162_v42 = vld [vmem:[#allocation4 + $0x100] sm:$0xf]  ;;  %v5119_v59 = vor.u32 %v5699_v54, %v5116_v16 }
 0x31d   :  { %3456 = vmatpush.bf16.msrb.mxu0 %v5211_v4  ;;  %v5171_v4 = vor.u32 %v5714_v34, %v5170_v33  ;;  %v5715_v34 = vld [vmem:[#allocation4 + $0x124] sm:$0xf]  ;;  %v5258_v16 = vld [vmem:[#allocation4 + $0x1c0] sm:$0xf] }
 0x31e   :  { %3431 = vmatpush.bf16.msra.mxu2 %v5075_v14  ;;  %v2794_v48 = vadd.f32 %v2793_v22, %v2781_v46  ;;  %v2808_v61 = vpop.f32.mrf.mxu0  ;;  %v5691_v14 = vld [vmem:[#allocation4 + $0x64] sm:$0xf]  ;;  %v5685_v22 = vld [vmem:[#allocation4 + $0x34] sm:$0xf] }
 0x31f   :  { %3444 = vmatpush.bf16.msra.mxu3 %v5139_v55  ;;  %v2821_v26 = vpop.f32.mrf.mxu1  ;;  %v5084_v55 = vld [vmem:[#allocation4 + $0x68] sm:$0xf0] }
 0x320   :  { %v2807_v49 = vadd.f32 %v2806_v36, %v2794_v48  ;;  %v2782_v6 = vpop.f32.mrf.mxu2  ;;  %v5087_v63 = vor.u32 %v5691_v14, %v5084_v55  ;;  %v5223_v48 = vor.u32 %v5725_v44, %v5220_v45  ;;  %v5044_v26 = vld [vmem:[#allocation4 + $0x18] sm:$0xf0]  ;;  %v5711_v45 = vld [vmem:[#allocation4 + $0x104] sm:$0xf] }
 0x321   :  { %3457 = vmatpush.bf16.msrb.mxu0 %v5203_v47  ;;  %v2795_v9 = vpop.f32.mrf.mxu3  ;;  %v5124_v47 = vld [vmem:[#allocation4 + $0xb8] sm:$0xf0]  ;;  %v5047_v55 = vor.u32 %v5681_v62, %v5044_v26 }
 0x322   :  { %3432 = vmatpush.bf16.msra.mxu2 %v5067_v10  ;;  %v2820_v39 = vadd.f32 %v2819_v40, %v2807_v49  ;;  %v5718_v10 = vld [vmem:[#allocation4 + $0x134] sm:$0xf0]  ;;  %v5703_v40 = vld [vmem:[#allocation4 + $0xc4] sm:$0xf]  ;;  %v5127_v51 = vor.u32 %v5701_v5, %v5124_v47  ;;  %v5274_v5 = vld [vmem:[#allocation4 + $0x1e0] sm:$0xf] }
 0x323   :  { %3445 = vmatpush.bf16.msra.mxu3 %v5131_v11  ;;  %v5707_v11 = vld [vmem:[#allocation4 + $0xe4] sm:$0xf]  ;;  %v5187_v12 = vor.u32 %v5718_v10, %v5186_v13  ;;  %v5100_v13 = vld [vmem:[#allocation4 + $0x88] sm:$0xf0] }
 0x324   :  { %v3032_v7 = vmax.f32 %v2820_v39, 0.0  ;;  %v5151_v24 = vor.u32 %v5707_v11, %v5148_v15  ;;  %v5723_v49 = vld [vmem:[#allocation4 + $0x164] sm:$0xf]  ;;  %v5196_v15 = vld [vmem:[#allocation4 + $0x148] sm:$0xf0] }
 0x325   :  { %3458 = vmatpush.bf16.msrb.mxu0 %v5195_v1  ;;  %v5215_v25 = vor.u32 %v5723_v49, %v5212_v60  ;;  %v5697_v1 = vld [vmem:[#allocation4 + $0x94] sm:$0xf]  ;;  %v5695_v9 = vld [vmem:[#allocation4 + $0x84] sm:$0xf]  ;;  %v5736_v49 = vld [vmem:[#allocation4 + $0x1c4] sm:$0xf0] }
 0x326   :  { %3433 = vmatpush.bf16.msra.mxu2 %v5059_v30  ;;  %v6218_v17 = vpack.c.bf16 %v3032_v7, %v3032_v7  ;;  %v5076_v30 = vld [vmem:[#allocation4 + $0x58] sm:$0xf0]  ;;  %v5679_v7 = vld [vmem:[#allocation4 + $0x4] sm:$0xf]  ;;  %v5103_v23 = vor.u32 %v5695_v9, %v5100_v13  ;;  %v5226_v9 = vld [vmem:[#allocation4 + $0x180] sm:$0xf] }
 0x327   :  { %3446 = vmatpush.bf16.msra.mxu3 %v5123_v31  ;;  %v5705_v31 = vld [vmem:[#allocation4 + $0xd4] sm:$0xf]  ;;  %v5079_v35 = vor.u32 %v5689_v28, %v5076_v30  ;;  %v5719_v11 = vld [vmem:[#allocation4 + $0x144] sm:$0xf]  ;;  %v5728_v13 = vld [vmem:[#allocation4 + $0x184] sm:$0xf0] }
 0x328   :  { %v5143_v36 = vor.u32 %v5705_v31, %v5140_v32  ;;  %v5717_v30 = vld [vmem:[#allocation4 + $0x134] sm:$0xf]  ;;  %v5188_v31 = vld [vmem:[#allocation4 + $0x138] sm:$0xf0] }
 0x329   :  { %3459 = vmatpush.bf16.msrb.mxu0 %v5187_v12  ;;  %v5191_v33 = vor.u32 %v5717_v30, %v5188_v31 }
 0x32a   :  { %3434 = vmatpush.bf16.msra.mxu2 %v5051_v41  ;;  %v5132_v41 = vld [vmem:[#allocation4 + $0xc8] sm:$0xf0] }
 0x32b   :  { %3447 = vmatpush.bf16.msra.mxu3 %v5115_v43  ;;  %v5712_v43 = vld [vmem:[#allocation4 + $0x104] sm:$0xf0]  ;;  %v5135_v46 = vor.u32 %v5703_v40, %v5132_v41  ;;  %v5713_v41 = vld [vmem:[#allocation4 + $0x114] sm:$0xf] }
 0x32c   :  { %v5163_v27 = vor.u32 %v5712_v43, %v5162_v42  ;;  %v5172_v42 = vld [vmem:[#allocation4 + $0x118] sm:$0xf0] }
 0x32d   :  { %3460 = vmatpush.bf16.msrb.mxu0 %v5179_v29  ;;  %v6231_v29 = vld [vmem:[%s6256_s8] sm:$0xf]  ;;  %v5175_v43 = vor.u32 %v5713_v41, %v5172_v42  ;;  %v5733_v42 = vld [vmem:[#allocation4 + $0x1b4] sm:$0xf] }
 0x32e   :  { %3435 = vmatpush.bf16.msra.mxu2 %v5043_v19  ;;  %v5063_v19 = vor.u32 %v5685_v22, %v5060_v57  ;;  %v1329_v32 = vperm.slane %v6231_v29, 2 }
 0x32f   :  { %3448 = vmatpush.bf16.msra.mxu3 %v5107_v53  ;;  %v5052_v53 = vld [vmem:[#allocation4 + $0x28] sm:$0xf0] }
 0x330   :  { %v5055_v58 = vor.u32 %v5683_v50, %v5052_v53 }
 0x331   :  { %3461 = vmatpush.bf16.msrb.mxu0 %v5171_v4 }
 0x332   :  { %3436 = vmatpush.bf16.msra.mxu2 %v5035_v2  ;;  %v5108_v2 = vld [vmem:[#allocation4 + $0x98] sm:$0xf0] }
 0x333   :  { %3449 = vmatpush.bf16.msra.mxu3 %v5099_v3  ;;  %v5721_v3 = vld [vmem:[#allocation4 + $0x154] sm:$0xf]  ;;  %v5111_v6 = vor.u32 %v5697_v1, %v5108_v2 }
 0x335   :  { %3437 = vmatmul.bf16.vlgmr.msra.gmra.mxu2 %v6220_v21  ;;  %3462 = vmatpush.bf16.msrb.mxu0 %v5163_v27 }
 0x336   :  { %3481 = vmatpush.bf16.msrb.mxu2 %v5095_v0  ;;  %3450 = vmatmul.bf16.vlgmr.msra.gmra.mxu3 %v6218_v17  ;;  %v6224_v56 = vpop.f32.mrf.mxu0  ;;  %v5204_v0 = vld [vmem:[#allocation4 + $0x158] sm:$0xf0] }
 0x337   :  { %3494 = vmatpush.bf16.msrb.mxu3 %v5159_v8  ;;  %v6226_v61 = vpop.f32.mrf.mxu1  ;;  %v5207_v14 = vor.u32 %v5721_v3, %v5204_v0  ;;  %v5036_v8 = vld [vmem:[#allocation4 + $0x8] sm:$0xf0]  ;;  %v5242_v3 = vld [vmem:[#allocation4 + $0x1a0] sm:$0xf]  ;;  %v5732_v0 = vld [vmem:[#allocation4 + $0x1a4] sm:$0xf0] }
 0x338   :  { %v2832_v39 = vpop.f32.mrf.mxu2  ;;  %v5039_v20 = vor.u32 %v5679_v7, %v5036_v8  ;;  %v5730_v7 = vld [vmem:[#allocation4 + $0x194] sm:$0xf0] }
 0x339   :  { %3507 = vmatpush.bf16.msra.mxu0 %v5223_v48  ;;  %v2845_v18 = vpop.f32.mrf.mxu3  ;;  %v2833_v4 = vadd.f32 %v2832_v39, %v1329_v32  ;;  %v5737_v32 = vld [vmem:[#allocation4 + $0x1d4] sm:$0xf] }
 0x33a   :  { %3482 = vmatpush.bf16.msrb.mxu2 %v5087_v63  ;;  %v5199_v63 = vor.u32 %v5719_v11, %v5196_v15  ;;  %v5741_v11 = vld [vmem:[#allocation4 + $0x1f4] sm:$0xf]  ;;  %v5284_v15 = vld [vmem:[#allocation4 + $0x1f8] sm:$0xf0] }
 0x33b   :  { %3495 = vmatpush.bf16.msrb.mxu3 %v5151_v24  ;;  %v2846_v44 = vadd.f32 %v2845_v18, %v2833_v4 }
 0x33d   :  { %3508 = vmatpush.bf16.msra.mxu0 %v5215_v25  ;;  %v2859_v22 = vadd.f32 %v6224_v56, %v2846_v44  ;;  %v5259_v56 = vor.u32 %v5736_v49, %v5258_v16 }
 0x33e   :  { %3483 = vmatpush.bf16.msrb.mxu2 %v5079_v35  ;;  %v2860_v10 = vpop.f32.mrf.mxu0  ;;  %v5180_v35 = vld [vmem:[#allocation4 + $0x128] sm:$0xf0] }
 0x33f   :  { %3496 = vmatpush.bf16.msrb.mxu3 %v5143_v36  ;;  %v2873_v12 = vpop.f32.mrf.mxu1  ;;  %v5282_v36 = vld [vmem:[#allocation4 + $0x1f0] sm:$0xf]  ;;  %v5183_v38 = vor.u32 %v5715_v34, %v5180_v35  ;;  %v2872_v57 = vadd.f32 %v6226_v61, %v2859_v22  ;;  %v5227_v10 = vor.u32 %v5728_v13, %v5226_v9 }
 0x340   :  { %v2834_v24 = vpop.f32.mrf.mxu2  ;;  %v5283_v40 = vor.u32 %v5742_v37, %v5282_v36  ;;  %v5250_v61 = vld [vmem:[#allocation4 + $0x1b0] sm:$0xf]  ;;  %v5287_v12 = vor.u32 %v5741_v11, %v5284_v15  ;;  %v5735_v36 = vld [vmem:[#allocation4 + $0x1c4] sm:$0xf]  ;;  %v5260_v37 = vld [vmem:[#allocation4 + $0x1c8] sm:$0xf0] }
 0x341   :  { %3509 = vmatpush.bf16.msra.mxu0 %v5207_v14  ;;  %v2847_v28 = vpop.f32.mrf.mxu3 }
 0x342   :  { %3484 = vmatpush.bf16.msrb.mxu2 %v5071_v52  ;;  %3468 = vmatpush.bf16.msrb.mxu1 %v5283_v40  ;;  %v5164_v52 = vld [vmem:[#allocation4 + $0x108] sm:$0xf0]  ;;  %v5263_v40 = vor.u32 %v5735_v36, %v5260_v37 }
 0x343   :  { %3497 = vmatpush.bf16.msrb.mxu3 %v5135_v46  ;;  %v5167_v46 = vor.u32 %v5711_v45, %v5164_v52  ;;  %v5731_v45 = vld [vmem:[#allocation4 + $0x1a4] sm:$0xf]  ;;  %v5244_v52 = vld [vmem:[#allocation4 + $0x1a8] sm:$0xf0] }
 0x344   :  { %v5247_v22 = vor.u32 %v5731_v45, %v5244_v52  ;;  %v5744_v36 = vld [vmem:[#allocation12 + $0x8] sm:$0xff] }
 0x345   :  { %3510 = vmatpush.bf16.msra.mxu0 %v5199_v63  ;;  %v5756_v37 = vld [vmem:[#allocation12 + $0x68] sm:$0xff] }
 0x346   :  { %3485 = vmatpush.bf16.msrb.mxu2 %v5063_v19  ;;  %v5266_v19 = vld [vmem:[#allocation4 + $0x1d0] sm:$0xf] }
 0x347   :  { %3498 = vmatpush.bf16.msrb.mxu3 %v5127_v51 }
 0x349   :  { %3511 = vmatpush.bf16.msra.mxu0 %v5191_v33  ;;  %v5268_v33 = vld [vmem:[#allocation4 + $0x1d8] sm:$0xf0] }
 0x34a   :  { %3486 = vmatpush.bf16.msrb.mxu2 %v5055_v58  ;;  %v5271_v34 = vor.u32 %v5737_v32, %v5268_v33  ;;  %v5745_v33 = vld [vmem:[#allocation12 + $0x10] sm:$0xff] }
 0x34b   :  { %3499 = vmatpush.bf16.msrb.mxu3 %v5119_v59  ;;  %v5734_v59 = vld [vmem:[#allocation4 + $0x1b4] sm:$0xf0] }
 0x34c   :  { %v5251_v39 = vor.u32 %v5734_v59, %v5250_v61 }
 0x34d   :  { %3512 = vmatpush.bf16.msra.mxu0 %v5183_v38 }
 0x34e   :  { %3487 = vmatpush.bf16.msrb.mxu2 %v5047_v55  ;;  %v5243_v55 = vor.u32 %v5732_v0, %v5242_v3 }
 0x34f   :  { %3500 = vmatpush.bf16.msrb.mxu3 %v5111_v6  ;;  %v5234_v6 = vld [vmem:[#allocation4 + $0x190] sm:$0xf] }
 0x350   :  { %v5235_v8 = vor.u32 %v5730_v7, %v5234_v6 }
 0x351   :  { %3513 = vmatpush.bf16.msra.mxu0 %v5175_v43  ;;  %v5252_v43 = vld [vmem:[#allocation4 + $0x1b8] sm:$0xf0] }
 0x352   :  { %3488 = vmatpush.bf16.msrb.mxu2 %v5039_v20  ;;  %v5739_v20 = vld [vmem:[#allocation4 + $0x1e4] sm:$0xf]  ;;  %v5255_v44 = vor.u32 %v5733_v42, %v5252_v43  ;;  %v5752_v42 = vld [vmem:[#allocation12 + $0x48] sm:$0xff] }
 0x353   :  { %3501 = vmatpush.bf16.msrb.mxu3 %v5103_v23  ;;  %v5276_v23 = vld [vmem:[#allocation4 + $0x1e8] sm:$0xf0]  ;;  %v5751_v43 = vld [vmem:[#allocation12 + $0x40] sm:$0xff] }
 0x354   :  { %v5279_v28 = vor.u32 %v5739_v20, %v5276_v23  ;;  %v5749_v20 = vld [vmem:[#allocation12 + $0x30] sm:$0xff] }
 0x355   :  { %3489 = vmatmul.bf16.vlgmr.msrb.gmra.mxu2 %v6220_v21  ;;  %3514 = vmatpush.bf16.msra.mxu0 %v5167_v46  ;;  %v5740_v21 = vld [vmem:[#allocation4 + $0x1e4] sm:$0xf0]  ;;  %v1330_v46 = vperm.slane %v6231_v29, 3  ;;  %v5757_v23 = vld [vmem:[#allocation12 + $0x70] sm:$0xff] }
 0x356   :  { %3502 = vmatmul.bf16.vlgmr.msrb.gmra.mxu3 %v6218_v17  ;;  %v2910_v27 = vpop.f32.mrf.mxu0  ;;  %v5275_v48 = vor.u32 %v5740_v21, %v5274_v5  ;;  %v5738_v17 = vld [vmem:[#allocation4 + $0x1d4] sm:$0xf0] }
 0x357   :  { %v2923_v47 = vpop.f32.mrf.mxu1  ;;  %v5267_v50 = vor.u32 %v5738_v17, %v5266_v19 }
 0x358   :  { %v2884_v51 = vpop.f32.mrf.mxu2  ;;  %3469 = vmatpush.bf16.msrb.mxu1 %v5275_v48  ;;  %v5228_v48 = vld [vmem:[#allocation4 + $0x188] sm:$0xf0] }
 0x359   :  { %v2885_v53 = vadd.f32 %v2884_v51, %v2872_v57  ;;  %v2897_v54 = vpop.f32.mrf.mxu3  ;;  %v5729_v57 = vld [vmem:[#allocation4 + $0x194] sm:$0xf] }
 0x35b   :  { %v2898_v60 = vadd.f32 %v2897_v54, %v2885_v53 }
 0x35c   :  { %3470 = vmatpush.bf16.msrb.mxu1 %v5267_v50 }
 0x35d   :  { %v2911_v25 = vadd.f32 %v2910_v27, %v2898_v60  ;;  %v5236_v27 = vld [vmem:[#allocation4 + $0x198] sm:$0xf0] }
 0x35e   :  { %v2912_v58 = vpop.f32.mrf.mxu0  ;;  %v5239_v21 = vor.u32 %v5729_v57, %v5236_v27 }
 0x35f   :  { %v2925_v62 = vpop.f32.mrf.mxu1  ;;  %v2924_v26 = vadd.f32 %v2923_v47, %v2911_v25  ;;  %v5727_v47 = vld [vmem:[#allocation4 + $0x184] sm:$0xf] }
 0x360   :  { %v2886_v1 = vpop.f32.mrf.mxu2  ;;  %3471 = vmatpush.bf16.msrb.mxu1 %v5259_v56  ;;  %v5231_v17 = vor.u32 %v5727_v47, %v5228_v48 }
 0x361   :  { %v3033_v2 = vmax.f32 %v2924_v26, 0.0  ;;  %v2899_v18 = vpop.f32.mrf.mxu3 }
 0x363   :  { %v3102_v14 = vpack.c.bf16 %v3033_v2, %v3033_v2 }
 0x364   :  { %3472 = vmatpush.bf16.msrb.mxu1 %v5251_v39  ;;  %v3099_v39 = vld [vmem:[%s6258_s10] sm:$0x3] }
 0x365   :  { %3463 = vmatmul.bf16.vlgmr.msrb.gmra.mxu0 %v3102_v14  ;;  %v3105_v2 = vperm.slane %v3099_v39, 0  ;;  %v3106_v7 = vperm.slane %v3099_v39, 1 }
 0x368   :  { %3473 = vmatpush.bf16.msrb.mxu1 %v5243_v55 }
 0x36c   :  { %3474 = vmatpush.bf16.msrb.mxu1 %v5235_v8 }
 0x370   :  { %3475 = vmatpush.bf16.msrb.mxu1 %v5227_v10 }
 0x374   :  { %3520 = vmatpush.bf16.msra.mxu1 %v5287_v12  ;;  %v5750_v12 = vld [vmem:[#allocation12 + $0x38] sm:$0xff] }
 0x375   :  { %3515 = vmatmul.bf16.vlgmr.msra.gmra.mxu0 %v3102_v14  ;;  %3669 = vmatpush.bf16.msra.mxu2 %v5750_v12 }
 0x376   :  { %v2962_v63 = vpop.f32.mrf.mxu0 }
 0x377   :  { %v2975_v24 = vpop.f32.mrf.mxu1 }
 0x378   :  { %v2936_v30 = vpop.f32.mrf.mxu2  ;;  %3521 = vmatpush.bf16.msra.mxu1 %v5279_v28 }
 0x379   :  { %v2949_v31 = vpop.f32.mrf.mxu3  ;;  %v2937_v5 = vadd.f32 %v2936_v30, %v1330_v46  ;;  %3670 = vmatpush.bf16.msra.mxu2 %v5749_v20  ;;  %v5747_v30 = vld [vmem:[#allocation12 + $0x20] sm:$0xff] }
 0x37b   :  { %v2950_v19 = vadd.f32 %v2949_v31, %v2937_v5  ;;  %v5746_v31 = vld [vmem:[#allocation12 + $0x18] sm:$0xff] }
 0x37c   :  { %3522 = vmatpush.bf16.msra.mxu1 %v5271_v34 }
 0x37d   :  { %v2963_v51 = vadd.f32 %v2962_v63, %v2950_v19  ;;  %v5758_v63 = vld [vmem:[#allocation12 + $0x78] sm:$0xff] }
 0x37e   :  { %v2964_v35 = vpop.f32.mrf.mxu0  ;;  %3682 = vmatpush.bf16.msra.mxu3 %v5758_v63 }
 0x37f   :  { %v2977_v38 = vpop.f32.mrf.mxu1  ;;  %v2976_v54 = vadd.f32 %v2975_v24, %v2963_v51  ;;  %v5748_v24 = vld [vmem:[#allocation12 + $0x28] sm:$0xff] }
 0x380   :  { %v2938_v4 = vpop.f32.mrf.mxu2  ;;  %3523 = vmatpush.bf16.msra.mxu1 %v5263_v40  ;;  %3671 = vmatpush.bf16.msra.mxu2 %v5748_v24  ;;  %v5743_v38 = vld [vmem:[#allocation12] sm:$0xff] }
 0x381   :  { %v2951_v41 = vpop.f32.mrf.mxu3  ;;  %v5755_v40 = vld [vmem:[#allocation12 + $0x60] sm:$0xff]  ;;  %v5754_v4 = vld [vmem:[#allocation12 + $0x58] sm:$0xff] }
 0x382   :  { %3683 = vmatpush.bf16.msra.mxu3 %v5757_v23  ;;  %v5753_v41 = vld [vmem:[#allocation12 + $0x50] sm:$0xff] }
 0x384   :  { %3524 = vmatpush.bf16.msra.mxu1 %v5255_v44  ;;  %3672 = vmatpush.bf16.msra.mxu2 %v5747_v30 }
 0x386   :  { %3684 = vmatpush.bf16.msra.mxu3 %v5756_v37 }
 0x388   :  { %3525 = vmatpush.bf16.msra.mxu1 %v5247_v22  ;;  %3673 = vmatpush.bf16.msra.mxu2 %v5746_v31 }
 0x38a   :  { %3685 = vmatpush.bf16.msra.mxu3 %v5755_v40 }
 0x38c   :  { %3526 = vmatpush.bf16.msra.mxu1 %v5239_v21  ;;  %3674 = vmatpush.bf16.msra.mxu2 %v5745_v33 }
 0x38e   :  { %3686 = vmatpush.bf16.msra.mxu3 %v5754_v4 }
 0x390   :  { %3527 = vmatpush.bf16.msra.mxu1 %v5231_v17  ;;  %3675 = vmatpush.bf16.msra.mxu2 %v5744_v36 }
 0x392   :  { %3687 = vmatpush.bf16.msra.mxu3 %v5753_v41 }
 0x394   :  { %3676 = vmatpush.bf16.msra.mxu2 %v5743_v38 }
 0x395   :  { %v3014_v50 = vpop.f32.mrf.mxu0 }
 0x396   :  { %3688 = vmatpush.bf16.msra.mxu3 %v5752_v42 }
 0x397   :  { %v3027_v53 = vpop.f32.mrf.mxu1 }
 0x398   :  { %v2988_v16 = vpop.f32.mrf.mxu2 }
 0x399   :  { %v2989_v49 = vadd.f32 %v2988_v16, %v2976_v54  ;;  %v3001_v29 = vpop.f32.mrf.mxu3 }
 0x39a   :  { %3689 = vmatpush.bf16.msra.mxu3 %v5751_v43 }
 0x39b   :  { %v3002_v60 = vadd.f32 %v3001_v29, %v2989_v49 }
 0x39d   :  { %v3016_v56 = vpop.f32.mrf.mxu0  ;;  %v3015_v25 = vadd.f32 %v3014_v50, %v3002_v60  ;;  %v5773_v50 = vld [vmem:[%s6260_s12] ss:$0 sm:$0xff] }
 0x39f   :  { %v3029_v58 = vpop.f32.mrf.mxu1  ;;  %v3028_v61 = vadd.f32 %v3027_v53, %v3015_v25 }
 0x3a0   :  { %v2990_v59 = vpop.f32.mrf.mxu2 }
 0x3a1   :  { %v3034_v62 = vmax.f32 %v3028_v61, 0.0  ;;  %v3003_v26 = vpop.f32.mrf.mxu3 }
 0x3a3   :  { %v3103_v1 = vpack.c.bf16 %v3034_v62, %v3034_v62 }
 0x3a5   :  { %3476 = vmatmul.bf16.vlgmr.msrb.gmra.mxu1 %v3103_v1 }
 0x3b5   :  { %3528 = vmatmul.bf16.vlgmr.msra.gmra.mxu1 %v3103_v1 }
 0x3b8   :  { %v3438_v18 = vpop.f32.mrf.mxu2 }
 0x3b9   :  { %v3439_v3 = vadd.f32 %v3438_v18, %v3105_v2  ;;  %v3451_v0 = vpop.f32.mrf.mxu3 }
 0x3bb   :  { %v3452_v14 = vadd.f32 %v3451_v0, %v3439_v3 }
 0x3c0   :  { %v3440_v55 = vpop.f32.mrf.mxu2 }
 0x3c1   :  { %v3453_v6 = vpop.f32.mrf.mxu3 }
 0x3d8   :  { %v3490_v8 = vpop.f32.mrf.mxu2 }
 0x3d9   :  { %v3491_v9 = vadd.f32 %v3490_v8, %v3106_v7  ;;  %v3503_v13 = vpop.f32.mrf.mxu3 }
 0x3db   :  { %v3504_v10 = vadd.f32 %v3503_v13, %v3491_v9 }
 0x3e0   :  { %v3492_v11 = vpop.f32.mrf.mxu2 }
 0x3e1   :  { %v3505_v15 = vpop.f32.mrf.mxu3 }
 0x3e2   :  { %v3464_v28 = vpop.f32.mrf.mxu0 }
 0x3e3   :  { %v3465_v44 = vadd.f32 %v3464_v28, %v3452_v14 }
 0x3ea   :  { %v3466_v32 = vpop.f32.mrf.mxu0 }
 0x3f2   :  { %v3516_v34 = vpop.f32.mrf.mxu0 }
 0x3f3   :  { %v3517_v27 = vadd.f32 %v3516_v34, %v3504_v10 }
 0x3fa   :  { %v3518_v35 = vpop.f32.mrf.mxu0 }
 0x422   :  { %v3477_v45 = vpop.f32.mrf.mxu1 }
 0x423   :  { %v3478_v52 = vadd.f32 %v3477_v45, %v3465_v44 }
 0x425   :  { %v3533_v46 = vmax.f32 %v3478_v52, 0.0 }
 0x427   :  { %v3568_v22 = vpack.c.bf16 %v3533_v46, %v3533_v46 }
 0x429   :  { %3677 = vmatmul.bf16.vlgmr.msra.gmra.mxu2 %v3568_v22 }
 0x42a   :  { %v3479_v57 = vpop.f32.mrf.mxu1 }
 0x432   :  { %v3529_v5 = vpop.f32.mrf.mxu1 }
 0x433   :  { %v3530_v21 = vadd.f32 %v3529_v5, %v3517_v27 }
 0x435   :  { %v3534_v47 = vmax.f32 %v3530_v21, 0.0 }
 0x437   :  { %v3569_v48 = vpack.c.bf16 %v3534_v47, %v3534_v47 }
 0x439   :  { %3690 = vmatmul.bf16.vlgmr.msra.gmra.mxu3 %v3569_v48 }
 0x43a   :  { %v3531_v19 = vpop.f32.mrf.mxu1 }
 0x4ac   :  { %v3678_v17 = vpop.f32.mrf.mxu2 }
 0x4ad   :  { %v3679_v53 = vadd.f32 %v5773_v50, %v3678_v17 }
 0x4b4   :  { %v3680_v51 = vpop.f32.mrf.mxu2 }
 0x4bc   :  { %v3691_v54 = vpop.f32.mrf.mxu3 }
 0x4bd   :  { %v3692_v16 = vadd.f32 %v3691_v54, %v3679_v53 }
 0x4bf   :  { %3695 = vst [vmem:[#allocation14] sm:$0x3] %v3692_v16 }
 0x4c0   :  { %3706 = dma.vmem_to_hbm [thread:$0]  %s3702_s21, 32, %s3704_s24, [#allocation8]  }
 0x4c4   :  { %v3693_v49 = vpop.f32.mrf.mxu3 }
 0x4c5   :  { %5953 = dma.done.wait [#allocation8], 32  }
 0x4c6   :  { %5954 = vsyncadd [#allocation8], 4294967264 }
 0x4c7   :  { %3711 = vsyncpa [#allocation7], 1 }
 0x4c8   :  { %3712 = vsyncpa [#allocation10], 1 }
 0x4c9   :  { %3713 = vsyncpa [#allocation13], 1 }
 0x4ca   :  { %3714 = vsyncpa [#allocation8], 1 }
 0x4cb   :  { %3715 = vsyncmov [#allocation5] }
 0x4ce   :  { %s3716_s12 = vpop.sfrf %3715 }
 0x4cf   :  { %p5352_p0 = scmp.ne.s32.totalorder %s3716_s12, 0 }
 0x4d1   :  { %3720 = shalt.err (%p5352_p0)  }
 0x4d2   :  { %3722 = vsyncmov [#allocation5 + $0x1] }
 0x4d5   :  { %s3723_s13 = vpop.sfrf %3722 }
 0x4d6   :  { %p5353_p1 = scmp.ne.s32.totalorder %s3723_s13, 0 }
 0x4d8   :  { %3727 = shalt.err (%p5353_p1)  }

</bundles_post_ra>
